<compile_context>
chip_gen: v6e
topology: v6e:2x2x1
jax: 0.10.0
libtpu: 0.0.40
codegen_flags: <defaults>
</compile_context>

<pallas_src>
import functools

import jax
import jax.numpy as jnp
from jax.experimental import pallas as pl
from jax.experimental.pallas import tpu as pltpu


# ----------------------------- in-kernel helpers -----------------------------

def _layernorm(x, g, b, eps=1e-5):
    mu = jnp.mean(x, axis=-1, keepdims=True)
    xc = x - mu
    var = jnp.mean(xc * xc, axis=-1, keepdims=True)
    return xc * jax.lax.rsqrt(var + eps) * g + b


# ----------------------------- fused layer kernel ----------------------------

def _decoder_layer_kernel(
    # per-batch activation blocks
    tgt_ref,      # (1, Lq, D) f32  (residual stream)
    mem_ref,      # (1, Lk, D) bf16
    pos_ref,      # (1, Lk, D) bf16
    qpos_ref,     # (1, Lq, D) bf16
    qsine_ref,    # (1, Lq, D) bf16
    # self-attention branch weights (w_* bf16, b_*/g_*/be_* f32 rows)
    w_sa_tgt, b_sa_tgt, w_sa_pos, b_sa_pos, w_sa_out, b_sa_out, g1, be1,
    # cross-attention branch weights
    w_ca_qc, b_ca_qc, w_ca_qpos, b_ca_qpos, w_ca_mem, b_ca_mem,
    w_ca_kpos, b_ca_kpos, w_ca_qse, b_ca_qse, w_ca_out, b_ca_out, g2, be2,
    # FFN branch weights
    w1, b1, w2, b2, g3, be3,
    # output
    out_ref,      # (1, Lq, D) f32
    # scratch
    attn_slab,    # (Lq, D) f32   per-head outputs (both attention blocks)
    q2_buf,       # (Lq, 2D) bf16 per-head-permuted [q_content_h | q_sine_h]
    k2_buf,       # (k_chunk, 2D) bf16 per-head-permuted [k_content_h | k_pos_h]
    *, nhead, use_query_pos, k_chunk):
    f32 = jnp.float32
    bf16 = jnp.bfloat16

    Lq = tgt_ref.shape[1]
    Lk = mem_ref.shape[1]
    D = tgt_ref.shape[-1]
    hd = D // nhead

    def dense(x, w_ref, b_ref):
        # bf16 operands on the MXU, f32 accumulation, f32 bias added post-accumulation.
        return (jnp.dot(x.astype(bf16), w_ref[...], preferred_element_type=f32)
                + b_ref[...])

    # ------------------ self attention ------------------
    t = tgt_ref[0]            # (Lq, D) f32
    qp = qpos_ref[0]          # (Lq, D) bf16

    proj_t = dense(t, w_sa_tgt, b_sa_tgt)    # (Lq, 3D) = [q_content | k_content | v]
    proj_p = dense(qp, w_sa_pos, b_sa_pos)   # (Lq, 2D) = [q_pos | k_pos]
    q_sa = (proj_t[:, 0:D] + proj_p[:, 0:D]).astype(bf16)
    k_sa = (proj_t[:, D:2 * D] + proj_p[:, D:2 * D]).astype(bf16)
    v_sa = proj_t[:, 2 * D:3 * D].astype(bf16)

    sa_scale = float(hd) ** -0.5
    for h in range(nhead):                   # static unroll over heads (small Lq)
        sl = slice(h * hd, (h + 1) * hd)
        s = jnp.dot(q_sa[:, sl], k_sa[:, sl].T, preferred_element_type=f32) * sa_scale
        s = s - jnp.max(s, axis=-1, keepdims=True)
        p = jnp.exp(s)
        p = p / jnp.sum(p, axis=-1, keepdims=True)
        attn_slab[:, sl] = jnp.dot(p.astype(bf16), v_sa[:, sl],
                                   preferred_element_type=f32)
    tgt1 = _layernorm(t + dense(attn_slab[...], w_sa_out, b_sa_out), g1[...], be1[...])

    # ------------------ cross attention (flash-style over Lk chunks) ------------------
    qs = qsine_ref[0]         # (Lq, D) bf16

    qc = dense(tgt1, w_ca_qc, b_ca_qc)       # (Lq, D) f32
    if use_query_pos:
        q_ca = qc + dense(qp, w_ca_qpos, b_ca_qpos)
    else:
        q_ca = qc
    qse = dense(qs, w_ca_qse, b_ca_qse)      # (Lq, D) f32

    q_ca_b = q_ca.astype(bf16)
    qse_b = qse.astype(bf16)
    # Pack once into per-head-permuted layout so each head does a single 2*hd-deep dot.
    for h in range(nhead):
        sl = slice(h * hd, (h + 1) * hd)
        q2_buf[:, 2 * h * hd:(2 * h + 1) * hd] = q_ca_b[:, sl]
        q2_buf[:, (2 * h + 1) * hd:(2 * h + 2) * hd] = qse_b[:, sl]

    ca_scale = float(2 * hd) ** -0.5         # cross-attn embed dim is 2*D -> head dim 2*hd

    num_chunks = Lk // k_chunk
    m_h = [jnp.full((Lq, 1), -jnp.inf, dtype=f32) for _ in range(nhead)]
    l_h = [jnp.zeros((Lq, 1), dtype=f32) for _ in range(nhead)]
    acc_h = [jnp.zeros((Lq, hd), dtype=f32) for _ in range(nhead)]

    # TODO(synk): at production Lk use lax.fori_loop (pl.ds + pl.multiple_of) to bound live
    #             ranges instead of this static unroll.
    for c in range(num_chunks):
        r0, r1 = c * k_chunk, (c + 1) * k_chunk
        mc = mem_ref[0, r0:r1, :]                    # (k_chunk, D) bf16
        pc = pos_ref[0, r0:r1, :]                    # (k_chunk, D) bf16
        proj_mc = dense(mc, w_ca_mem, b_ca_mem)      # (k_chunk, 2D) = [k_content | v]
        kpos_c = dense(pc, w_ca_kpos, b_ca_kpos)     # (k_chunk, D)
        kc_c = proj_mc[:, 0:D]
        v_c = proj_mc[:, D:2 * D].astype(bf16)
        if use_query_pos:
            k_ca_c = (kc_c + kpos_c).astype(bf16)
        else:
            k_ca_c = kc_c.astype(bf16)
        kpos_b = kpos_c.astype(bf16)

        for h in range(nhead):                       # pack keys per-head [content_h | pos_h]
            sl = slice(h * hd, (h + 1) * hd)
            k2_buf[:, 2 * h * hd:(2 * h + 1) * hd] = k_ca_c[:, sl]
            k2_buf[:, (2 * h + 1) * hd:(2 * h + 2) * hd] = kpos_b[:, sl]

        for h in range(nhead):                       # online-softmax accumulation
            sl = slice(h * hd, (h + 1) * hd)
            sl2 = slice(2 * h * hd, 2 * (h + 1) * hd)
            s = jnp.dot(q2_buf[:, sl2], k2_buf[:, sl2].T,
                        preferred_element_type=f32) * ca_scale     # (Lq, k_chunk)
            m_new = jnp.maximum(m_h[h], jnp.max(s, axis=-1, keepdims=True))
            alpha = jnp.exp(m_h[h] - m_new)
            p = jnp.exp(s - m_new)
            l_h[h] = alpha * l_h[h] + jnp.sum(p, axis=-1, keepdims=True)
            acc_h[h] = alpha * acc_h[h] + jnp.dot(p.astype(bf16), v_c[:, sl],
                                                  preferred_element_type=f32)
            m_h[h] = m_new

    for h in range(nhead):
        attn_slab[:, h * hd:(h + 1) * hd] = acc_h[h] / l_h[h]
    tgt2 = _layernorm(tgt1 + dense(attn_slab[...], w_ca_out, b_ca_out), g2[...], be2[...])

    # ------------------ feed forward ------------------
    hmid = jnp.maximum(dense(tgt2, w1, b1), 0.0)     # relu
    ff = dense(hmid, w2, b2)
    out_ref[0] = _layernorm(tgt2 + ff, g3[...], be3[...])


# ----------------------------- wrappers ---------------------------------------

def transformer_decoder_layer_forward_batch_first(params, tgt, memory, pos, query_pos,
                                                  query_sine_embed, nhead, is_first=False,
                                                  keep_query_pos=False, k_chunk=512):
    """Batch-major (B, L, D) entry point — use this for a whole decoder stack so the
    (L, B, D) <-> (B, L, D) transposes happen once per stack, not once per layer."""
    B, Lq, D = tgt.shape
    Lk = memory.shape[1]
    if Lk % k_chunk != 0:
        # TODO(synk): pad/mask ragged key chunks at production sizes instead of falling back.
        k_chunk = Lk

    bf16 = jnp.bfloat16
    tgt_b = tgt.astype(jnp.float32)          # residual stream stays f32
    mem_b = memory.astype(bf16)
    pos_b = pos.astype(bf16)
    qpos_b = query_pos.astype(bf16)
    qsine_b = query_sine_embed.astype(bf16)

    def wcast(w):
        return w.astype(bf16)

    def row(x):
        return x.reshape(1, -1).astype(jnp.float32)

    # --- fuse projection weights into wide, lane-dense matmuls (done once, on weights only) ---
    w_qc, b_qc = params["sa_qcontent_proj"]
    w_qp, b_qp = params["sa_qpos_proj"]
    w_kc, b_kc = params["sa_kcontent_proj"]
    w_kp, b_kp = params["sa_kpos_proj"]
    w_v, b_v = params["sa_v_proj"]
    w_sa_tgt = wcast(jnp.concatenate([w_qc, w_kc, w_v], axis=1))     # (D, 3D)
    b_sa_tgt = row(jnp.concatenate([b_qc, b_kc, b_v]))
    w_sa_pos = wcast(jnp.concatenate([w_qp, w_kp], axis=1))          # (D, 2D)
    b_sa_pos = row(jnp.concatenate([b_qp, b_kp]))
    w_sa_out, b_sa_out = params["self_attn_out_proj"]

    w_cqc, b_cqc = params["ca_qcontent_proj"]
    w_cqp, b_cqp = params["ca_qpos_proj"]
    w_ckc, b_ckc = params["ca_kcontent_proj"]
    w_ckp, b_ckp = params["ca_kpos_proj"]
    w_cv, b_cv = params["ca_v_proj"]
    w_cqs, b_cqs = params["ca_qpos_sine_proj"]
    w_ca_mem = wcast(jnp.concatenate([w_ckc, w_cv], axis=1))         # (D, 2D)
    b_ca_mem = row(jnp.concatenate([b_ckc, b_cv]))
    w_ca_out, b_ca_out = params["cross_attn_out_proj"]

    w1, b1 = params["linear1"]
    w2, b2 = params["linear2"]
    g1, be1 = params["norm1"]
    g2, be2 = params["norm2"]
    g3, be3 = params["norm3"]

    weight_args = (
        w_sa_tgt, b_sa_tgt, w_sa_pos, b_sa_pos, wcast(w_sa_out), row(b_sa_out),
        row(g1), row(be1),
        wcast(w_cqc), row(b_cqc), wcast(w_cqp), row(b_cqp), w_ca_mem, b_ca_mem,
        wcast(w_ckp), row(b_ckp), wcast(w_cqs), row(b_cqs), wcast(w_ca_out), row(b_ca_out),
        row(g2), row(be2),
        wcast(w1), row(b1), wcast(w2), row(b2), row(g3), row(be3),
    )

    q_spec = pl.BlockSpec((1, Lq, D), lambda b: (b, 0, 0))
    k_spec = pl.BlockSpec((1, Lk, D), lambda b: (b, 0, 0))
    # weights/biases: whole array resident in VMEM, single buffer (constant across the grid).
    w_spec = pl.BlockSpec(memory_space=pltpu.MemorySpace.VMEM)

    kernel = functools.partial(
        _decoder_layer_kernel, nhead=nhead,
        use_query_pos=bool(is_first or keep_query_pos), k_chunk=k_chunk)

    out = pl.pallas_call(
        kernel,
        out_shape=jax.ShapeDtypeStruct((B, Lq, D), jnp.float32),
        grid=(B,),
        in_specs=[q_spec, k_spec, k_spec, q_spec, q_spec] + [w_spec] * len(weight_args),
        out_specs=pl.BlockSpec((1, Lq, D), lambda b: (b, 0, 0)),
        scratch_shapes=[
            pltpu.VMEM((Lq, D), jnp.float32),          # per-head attention output slab
            pltpu.VMEM((Lq, 2 * D), jnp.bfloat16),     # packed [q_content_h | q_sine_h]
            pltpu.VMEM((k_chunk, 2 * D), jnp.bfloat16) # packed [k_content_h | k_pos_h]
        ],
        compiler_params=pltpu.CompilerParams(
            dimension_semantics=("parallel",),          # B>=2 keeps both v7x TCs busy
            vmem_limit_bytes=48 * 1024 * 1024),
    )(tgt_b, mem_b, pos_b, qpos_b, qsine_b, *weight_args)
    return out


def transformer_decoder_layer_forward(params, tgt, memory, pos, query_pos,
                                      query_sine_embed, nhead, is_first=False,
                                      keep_query_pos=False):
    """PyTorch-layout (L, B, D) entry point (one-time boundary transposes)."""
    to_b = lambda x: jnp.transpose(x, (1, 0, 2))
    out = transformer_decoder_layer_forward_batch_first(
        params, to_b(tgt), to_b(memory), to_b(pos), to_b(query_pos), to_b(query_sine_embed),
        nhead, is_first=is_first, keep_query_pos=keep_query_pos)
    return jnp.transpose(out, (1, 0, 2))


# ----------------------------- parameters -----------------------------------

def _make_linear(key, din, dout):
    kw, kb = jax.random.split(key)
    bound = 1.0 / (din ** 0.5)
    w = jax.random.uniform(kw, (din, dout), jnp.float32, -bound, bound)
    b = jax.random.uniform(kb, (dout,), jnp.float32, -bound, bound)
    return w, b


def init_params(key, d_model, nhead, dim_feedforward):
    lin_names = [
        "sa_qcontent_proj", "sa_qpos_proj", "sa_kcontent_proj", "sa_kpos_proj",
        "sa_v_proj", "self_attn_out_proj",
        "ca_qcontent_proj", "ca_qpos_proj", "ca_kcontent_proj", "ca_kpos_proj",
        "ca_v_proj", "ca_qpos_sine_proj", "cross_attn_out_proj",
    ]
    keys = jax.random.split(key, len(lin_names) + 2)
    params = {}
    for name, k in zip(lin_names, keys[: len(lin_names)]):
        params[name] = _make_linear(k, d_model, d_model)
    params["linear1"] = _make_linear(keys[-2], d_model, dim_feedforward)
    params["linear2"] = _make_linear(keys[-1], dim_feedforward, d_model)
    for ln in ("norm1", "norm2", "norm3"):
        params[ln] = (jnp.ones((d_model,), jnp.float32), jnp.zeros((d_model,), jnp.float32))
    return params


# ----------------------------- main ------------------------------------------

if __name__ == "__main__":
    # Toy shapes for a smoke test; all tiling/perf conclusions must be re-derived at
    # production DETR sizes (d_model=256, dff=2048, Lk~1-4k).
    d_model, nhead, dim_feedforward = 32, 4, 64
    num_queries, bs, hw = 8, 2, 16

    key = jax.random.PRNGKey(0)
    kp, k1, k2, k3, k4, k5 = jax.random.split(key, 6)
    params = init_params(kp, d_model, nhead, dim_feedforward)

    tgt = jax.random.normal(k1, (num_queries, bs, d_model), jnp.float32)
    memory = jax.random.normal(k2, (hw, bs, d_model), jnp.float32)
    pos = jax.random.normal(k3, (hw, bs, d_model), jnp.float32)
    query_pos = jax.random.normal(k4, (num_queries, bs, d_model), jnp.float32)
    query_sine_embed = jax.random.normal(k5, (num_queries, bs, d_model), jnp.float32)

    out = transformer_decoder_layer_forward(
        params, tgt, memory, pos, query_pos, query_sine_embed, nhead, is_first=True
    )
    jax.block_until_ready(out)
    assert out.shape == (num_queries, bs, d_model)
    assert bool(jnp.all(jnp.isfinite(out)))
    print("KERNEL_OK")
</pallas_src>

<mosaic_0001>
module attributes {stable_mosaic.version = 11 : i64} {
  func.func @_decoder_layer_kernel(%arg0: i32, %arg1: memref<1x8x32xf32, #tpu.memory_space<vmem>>, %arg2: memref<1x16x32xbf16, #tpu.memory_space<vmem>>, %arg3: memref<1x16x32xbf16, #tpu.memory_space<vmem>>, %arg4: memref<1x8x32xbf16, #tpu.memory_space<vmem>>, %arg5: memref<1x8x32xbf16, #tpu.memory_space<vmem>>, %arg6: memref<32x96xbf16, #tpu.memory_space<vmem>>, %arg7: memref<1x96xf32, #tpu.memory_space<vmem>>, %arg8: memref<32x64xbf16, #tpu.memory_space<vmem>>, %arg9: memref<1x64xf32, #tpu.memory_space<vmem>>, %arg10: memref<32x32xbf16, #tpu.memory_space<vmem>>, %arg11: memref<1x32xf32, #tpu.memory_space<vmem>>, %arg12: memref<1x32xf32, #tpu.memory_space<vmem>>, %arg13: memref<1x32xf32, #tpu.memory_space<vmem>>, %arg14: memref<32x32xbf16, #tpu.memory_space<vmem>>, %arg15: memref<1x32xf32, #tpu.memory_space<vmem>>, %arg16: memref<32x32xbf16, #tpu.memory_space<vmem>>, %arg17: memref<1x32xf32, #tpu.memory_space<vmem>>, %arg18: memref<32x64xbf16, #tpu.memory_space<vmem>>, %arg19: memref<1x64xf32, #tpu.memory_space<vmem>>, %arg20: memref<32x32xbf16, #tpu.memory_space<vmem>>, %arg21: memref<1x32xf32, #tpu.memory_space<vmem>>, %arg22: memref<32x32xbf16, #tpu.memory_space<vmem>>, %arg23: memref<1x32xf32, #tpu.memory_space<vmem>>, %arg24: memref<32x32xbf16, #tpu.memory_space<vmem>>, %arg25: memref<1x32xf32, #tpu.memory_space<vmem>>, %arg26: memref<1x32xf32, #tpu.memory_space<vmem>>, %arg27: memref<1x32xf32, #tpu.memory_space<vmem>>, %arg28: memref<32x64xbf16, #tpu.memory_space<vmem>>, %arg29: memref<1x64xf32, #tpu.memory_space<vmem>>, %arg30: memref<64x32xbf16, #tpu.memory_space<vmem>>, %arg31: memref<1x32xf32, #tpu.memory_space<vmem>>, %arg32: memref<1x32xf32, #tpu.memory_space<vmem>>, %arg33: memref<1x32xf32, #tpu.memory_space<vmem>>, %arg34: memref<1x8x32xf32, #tpu.memory_space<vmem>>, %arg35: memref<8x32xf32, #tpu.memory_space<vmem>>, %arg36: memref<8x64xbf16, #tpu.memory_space<vmem>>, %arg37: memref<16x64xbf16, #tpu.memory_space<vmem>>) attributes {dimension_semantics = [#tpu.dimension_semantics<parallel>], iteration_bounds = array<i64: 2>, scalar_prefetch = 0 : i64, scratch_operands = 3 : i64, tpu.core_type = #tpu.core_type<tc>, window_params = [{transform_indices = @transform_0, window_bounds = array<i64: 1, 8, 32>}, {transform_indices = @transform_1, window_bounds = array<i64: 1, 16, 32>}, {transform_indices = @transform_2, window_bounds = array<i64: 1, 16, 32>}, {transform_indices = @transform_3, window_bounds = array<i64: 1, 8, 32>}, {transform_indices = @transform_4, window_bounds = array<i64: 1, 8, 32>}, {pipeline_mode = #tpu.pipeline_mode<synchronous>, transform_indices = @transform_5, window_bounds = array<i64: 32, 96>}, {pipeline_mode = #tpu.pipeline_mode<synchronous>, transform_indices = @transform_6, window_bounds = array<i64: 1, 96>}, {pipeline_mode = #tpu.pipeline_mode<synchronous>, transform_indices = @transform_7, window_bounds = array<i64: 32, 64>}, {pipeline_mode = #tpu.pipeline_mode<synchronous>, transform_indices = @transform_8, window_bounds = array<i64: 1, 64>}, {pipeline_mode = #tpu.pipeline_mode<synchronous>, transform_indices = @transform_9, window_bounds = array<i64: 32, 32>}, {pipeline_mode = #tpu.pipeline_mode<synchronous>, transform_indices = @transform_10, window_bounds = array<i64: 1, 32>}, {pipeline_mode = #tpu.pipeline_mode<synchronous>, transform_indices = @transform_11, window_bounds = array<i64: 1, 32>}, {pipeline_mode = #tpu.pipeline_mode<synchronous>, transform_indices = @transform_12, window_bounds = array<i64: 1, 32>}, {pipeline_mode = #tpu.pipeline_mode<synchronous>, transform_indices = @transform_13, window_bounds = array<i64: 32, 32>}, {pipeline_mode = #tpu.pipeline_mode<synchronous>, transform_indices = @transform_14, window_bounds = array<i64: 1, 32>}, {pipeline_mode = #tpu.pipeline_mode<synchronous>, transform_indices = @transform_15, window_bounds = array<i64: 32, 32>}, {pipeline_mode = #tpu.pipeline_mode<synchronous>, transform_indices = @transform_16, window_bounds = array<i64: 1, 32>}, {pipeline_mode = #tpu.pipeline_mode<synchronous>, transform_indices = @transform_17, window_bounds = array<i64: 32, 64>}, {pipeline_mode = #tpu.pipeline_mode<synchronous>, transform_indices = @transform_18, window_bounds = array<i64: 1, 64>}, {pipeline_mode = #tpu.pipeline_mode<synchronous>, transform_indices = @transform_19, window_bounds = array<i64: 32, 32>}, {pipeline_mode = #tpu.pipeline_mode<synchronous>, transform_indices = @transform_20, window_bounds = array<i64: 1, 32>}, {pipeline_mode = #tpu.pipeline_mode<synchronous>, transform_indices = @transform_21, window_bounds = array<i64: 32, 32>}, {pipeline_mode = #tpu.pipeline_mode<synchronous>, transform_indices = @transform_22, window_bounds = array<i64: 1, 32>}, {pipeline_mode = #tpu.pipeline_mode<synchronous>, transform_indices = @transform_23, window_bounds = array<i64: 32, 32>}, {pipeline_mode = #tpu.pipeline_mode<synchronous>, transform_indices = @transform_24, window_bounds = array<i64: 1, 32>}, {pipeline_mode = #tpu.pipeline_mode<synchronous>, transform_indices = @transform_25, window_bounds = array<i64: 1, 32>}, {pipeline_mode = #tpu.pipeline_mode<synchronous>, transform_indices = @transform_26, window_bounds = array<i64: 1, 32>}, {pipeline_mode = #tpu.pipeline_mode<synchronous>, transform_indices = @transform_27, window_bounds = array<i64: 32, 64>}, {pipeline_mode = #tpu.pipeline_mode<synchronous>, transform_indices = @transform_28, window_bounds = array<i64: 1, 64>}, {pipeline_mode = #tpu.pipeline_mode<synchronous>, transform_indices = @transform_29, window_bounds = array<i64: 64, 32>}, {pipeline_mode = #tpu.pipeline_mode<synchronous>, transform_indices = @transform_30, window_bounds = array<i64: 1, 32>}, {pipeline_mode = #tpu.pipeline_mode<synchronous>, transform_indices = @transform_31, window_bounds = array<i64: 1, 32>}, {pipeline_mode = #tpu.pipeline_mode<synchronous>, transform_indices = @transform_32, window_bounds = array<i64: 1, 32>}, {transform_indices = @transform_33, window_bounds = array<i64: 1, 8, 32>}]} {
    %c0 = arith.constant 0 : index
    %c0_0 = arith.constant 0 : index
    %c0_1 = arith.constant 0 : index
    %0 = vector.load %arg1[%c0, %c0_0, %c0_1] : memref<1x8x32xf32, #tpu.memory_space<vmem>>, vector<1x8x32xf32>
    %1 = vector.shape_cast %0 : vector<1x8x32xf32> to vector<8x32xf32>
    %c0_2 = arith.constant 0 : index
    %c0_3 = arith.constant 0 : index
    %c0_4 = arith.constant 0 : index
    %2 = vector.load %arg4[%c0_2, %c0_3, %c0_4] : memref<1x8x32xbf16, #tpu.memory_space<vmem>>, vector<1x8x32xbf16>
    %3 = vector.shape_cast %2 : vector<1x8x32xbf16> to vector<8x32xbf16>
    %4 = arith.truncf %1 : vector<8x32xf32> to vector<8x32xbf16>
    %c0_5 = arith.constant 0 : index
    %c0_6 = arith.constant 0 : index
    %5 = vector.load %arg6[%c0_5, %c0_6] : memref<32x96xbf16, #tpu.memory_space<vmem>>, vector<32x96xbf16>
    %cst = arith.constant dense<0.000000e+00> : vector<8x96xf32>
    %6 = tpu.matmul %4, %5, %cst {dimension_numbers = #tpu.dot_dimension_numbers<[1], [0], [0], [1], [0, 0, 1, 1], [], []>} : vector<8x32xbf16>, vector<32x96xbf16>, vector<8x96xf32> -> vector<8x96xf32>
    %c0_7 = arith.constant 0 : index
    %c0_8 = arith.constant 0 : index
    %7 = vector.load %arg7[%c0_7, %c0_8] : memref<1x96xf32, #tpu.memory_space<vmem>>, vector<1x96xf32>
    %8 = vector.broadcast %7 : vector<1x96xf32> to vector<8x96xf32>
    %9 = arith.addf %6, %8 : vector<8x96xf32>
    %c0_9 = arith.constant 0 : index
    %c0_10 = arith.constant 0 : index
    %10 = vector.load %arg8[%c0_9, %c0_10] : memref<32x64xbf16, #tpu.memory_space<vmem>>, vector<32x64xbf16>
    %cst_11 = arith.constant dense<0.000000e+00> : vector<8x64xf32>
    %11 = tpu.matmul %3, %10, %cst_11 {dimension_numbers = #tpu.dot_dimension_numbers<[1], [0], [0], [1], [0, 0, 1, 1], [], []>} : vector<8x32xbf16>, vector<32x64xbf16>, vector<8x64xf32> -> vector<8x64xf32>
    %c0_12 = arith.constant 0 : index
    %c0_13 = arith.constant 0 : index
    %12 = vector.load %arg9[%c0_12, %c0_13] : memref<1x64xf32, #tpu.memory_space<vmem>>, vector<1x64xf32>
    %13 = vector.broadcast %12 : vector<1x64xf32> to vector<8x64xf32>
    %14 = arith.addf %11, %13 : vector<8x64xf32>
    %15 = vector.extract_strided_slice %9 {offsets = [0, 0], sizes = [8, 32], strides = [1, 1]} : vector<8x96xf32> to vector<8x32xf32>
    %16 = vector.extract_strided_slice %14 {offsets = [0, 0], sizes = [8, 32], strides = [1, 1]} : vector<8x64xf32> to vector<8x32xf32>
    %17 = arith.addf %15, %16 : vector<8x32xf32>
    %18 = arith.truncf %17 : vector<8x32xf32> to vector<8x32xbf16>
    %19 = vector.extract_strided_slice %9 {offsets = [0, 32], sizes = [8, 32], strides = [1, 1]} : vector<8x96xf32> to vector<8x32xf32>
    %20 = vector.extract_strided_slice %14 {offsets = [0, 32], sizes = [8, 32], strides = [1, 1]} : vector<8x64xf32> to vector<8x32xf32>
    %21 = arith.addf %19, %20 : vector<8x32xf32>
    %22 = arith.truncf %21 : vector<8x32xf32> to vector<8x32xbf16>
    %23 = vector.extract_strided_slice %9 {offsets = [0, 64], sizes = [8, 32], strides = [1, 1]} : vector<8x96xf32> to vector<8x32xf32>
    %24 = arith.truncf %23 : vector<8x32xf32> to vector<8x32xbf16>
    %25 = vector.extract_strided_slice %18 {offsets = [0, 0], sizes = [8, 8], strides = [1, 1]} : vector<8x32xbf16> to vector<8x8xbf16>
    %26 = vector.extract_strided_slice %22 {offsets = [0, 0], sizes = [8, 8], strides = [1, 1]} : vector<8x32xbf16> to vector<8x8xbf16>
    %27 = tpu.transpose %26, [1, 0] : vector<8x8xbf16> -> vector<8x8xbf16>
    %cst_14 = arith.constant dense<0.000000e+00> : vector<8x8xf32>
    %28 = tpu.matmul %25, %27, %cst_14 {dimension_numbers = #tpu.dot_dimension_numbers<[1], [0], [0], [1], [0, 0, 1, 1], [], []>} : vector<8x8xbf16>, vector<8x8xbf16>, vector<8x8xf32> -> vector<8x8xf32>
    %cst_15 = arith.constant 0.353553385 : f32
    %29 = vector.broadcast %cst_15 : f32 to vector<8x8xf32>
    %30 = arith.mulf %28, %29 : vector<8x8xf32>
    %cst_16 = arith.constant dense<0xFF800000> : vector<8xf32>
    %31 = vector.multi_reduction <maximumf>, %30, %cst_16 [1] : vector<8x8xf32> to vector<8xf32>
    %32 = vector.shape_cast %31 : vector<8xf32> to vector<8x1xf32>
    %33 = vector.broadcast %32 : vector<8x1xf32> to vector<8x8xf32>
    %34 = arith.subf %30, %33 : vector<8x8xf32>
    %35 = math.exp %34 : vector<8x8xf32>
    %cst_17 = arith.constant dense<0.000000e+00> : vector<8xf32>
    %36 = vector.multi_reduction <add>, %35, %cst_17 [1] : vector<8x8xf32> to vector<8xf32>
    %37 = vector.shape_cast %36 : vector<8xf32> to vector<8x1xf32>
    %38 = vector.broadcast %37 : vector<8x1xf32> to vector<8x8xf32>
    %39 = arith.divf %35, %38 : vector<8x8xf32>
    %40 = arith.truncf %39 : vector<8x8xf32> to vector<8x8xbf16>
    %41 = vector.extract_strided_slice %24 {offsets = [0, 0], sizes = [8, 8], strides = [1, 1]} : vector<8x32xbf16> to vector<8x8xbf16>
    %cst_18 = arith.constant dense<0.000000e+00> : vector<8x8xf32>
    %42 = tpu.matmul %40, %41, %cst_18 {dimension_numbers = #tpu.dot_dimension_numbers<[1], [0], [0], [1], [0, 0, 1, 1], [], []>} : vector<8x8xbf16>, vector<8x8xbf16>, vector<8x8xf32> -> vector<8x8xf32>
    %c0_19 = arith.constant 0 : index
    %c0_20 = arith.constant 0 : index
    %43 = vector.load %arg35[%c0_19, %c0_20] : memref<8x32xf32, #tpu.memory_space<vmem>>, vector<8x8xf32>
    tpu.vector_store %arg35[%c0_19, %c0_20], %42 {strides = array<i32>} : memref<8x32xf32, #tpu.memory_space<vmem>>, vector<8x8xf32>,
    %44 = vector.extract_strided_slice %18 {offsets = [0, 8], sizes = [8, 8], strides = [1, 1]} : vector<8x32xbf16> to vector<8x8xbf16>
    %45 = vector.extract_strided_slice %22 {offsets = [0, 8], sizes = [8, 8], strides = [1, 1]} : vector<8x32xbf16> to vector<8x8xbf16>
    %46 = tpu.transpose %45, [1, 0] : vector<8x8xbf16> -> vector<8x8xbf16>
    %cst_21 = arith.constant dense<0.000000e+00> : vector<8x8xf32>
    %47 = tpu.matmul %44, %46, %cst_21 {dimension_numbers = #tpu.dot_dimension_numbers<[1], [0], [0], [1], [0, 0, 1, 1], [], []>} : vector<8x8xbf16>, vector<8x8xbf16>, vector<8x8xf32> -> vector<8x8xf32>
    %cst_22 = arith.constant 0.353553385 : f32
    %48 = vector.broadcast %cst_22 : f32 to vector<8x8xf32>
    %49 = arith.mulf %47, %48 : vector<8x8xf32>
    %cst_23 = arith.constant dense<0xFF800000> : vector<8xf32>
    %50 = vector.multi_reduction <maximumf>, %49, %cst_23 [1] : vector<8x8xf32> to vector<8xf32>
    %51 = vector.shape_cast %50 : vector<8xf32> to vector<8x1xf32>
    %52 = vector.broadcast %51 : vector<8x1xf32> to vector<8x8xf32>
    %53 = arith.subf %49, %52 : vector<8x8xf32>
    %54 = math.exp %53 : vector<8x8xf32>
    %cst_24 = arith.constant dense<0.000000e+00> : vector<8xf32>
    %55 = vector.multi_reduction <add>, %54, %cst_24 [1] : vector<8x8xf32> to vector<8xf32>
    %56 = vector.shape_cast %55 : vector<8xf32> to vector<8x1xf32>
    %57 = vector.broadcast %56 : vector<8x1xf32> to vector<8x8xf32>
    %58 = arith.divf %54, %57 : vector<8x8xf32>
    %59 = arith.truncf %58 : vector<8x8xf32> to vector<8x8xbf16>
    %60 = vector.extract_strided_slice %24 {offsets = [0, 8], sizes = [8, 8], strides = [1, 1]} : vector<8x32xbf16> to vector<8x8xbf16>
    %cst_25 = arith.constant dense<0.000000e+00> : vector<8x8xf32>
    %61 = tpu.matmul %59, %60, %cst_25 {dimension_numbers = #tpu.dot_dimension_numbers<[1], [0], [0], [1], [0, 0, 1, 1], [], []>} : vector<8x8xbf16>, vector<8x8xbf16>, vector<8x8xf32> -> vector<8x8xf32>
    %c0_26 = arith.constant 0 : index
    %c8 = arith.constant 8 : index
    %62 = vector.load %arg35[%c0_26, %c8] : memref<8x32xf32, #tpu.memory_space<vmem>>, vector<8x8xf32>
    tpu.vector_store %arg35[%c0_26, %c8], %61 {strides = array<i32>} : memref<8x32xf32, #tpu.memory_space<vmem>>, vector<8x8xf32>,
    %63 = vector.extract_strided_slice %18 {offsets = [0, 16], sizes = [8, 8], strides = [1, 1]} : vector<8x32xbf16> to vector<8x8xbf16>
    %64 = vector.extract_strided_slice %22 {offsets = [0, 16], sizes = [8, 8], strides = [1, 1]} : vector<8x32xbf16> to vector<8x8xbf16>
    %65 = tpu.transpose %64, [1, 0] : vector<8x8xbf16> -> vector<8x8xbf16>
    %cst_27 = arith.constant dense<0.000000e+00> : vector<8x8xf32>
    %66 = tpu.matmul %63, %65, %cst_27 {dimension_numbers = #tpu.dot_dimension_numbers<[1], [0], [0], [1], [0, 0, 1, 1], [], []>} : vector<8x8xbf16>, vector<8x8xbf16>, vector<8x8xf32> -> vector<8x8xf32>
    %cst_28 = arith.constant 0.353553385 : f32
    %67 = vector.broadcast %cst_28 : f32 to vector<8x8xf32>
    %68 = arith.mulf %66, %67 : vector<8x8xf32>
    %cst_29 = arith.constant dense<0xFF800000> : vector<8xf32>
    %69 = vector.multi_reduction <maximumf>, %68, %cst_29 [1] : vector<8x8xf32> to vector<8xf32>
    %70 = vector.shape_cast %69 : vector<8xf32> to vector<8x1xf32>
    %71 = vector.broadcast %70 : vector<8x1xf32> to vector<8x8xf32>
    %72 = arith.subf %68, %71 : vector<8x8xf32>
    %73 = math.exp %72 : vector<8x8xf32>
    %cst_30 = arith.constant dense<0.000000e+00> : vector<8xf32>
    %74 = vector.multi_reduction <add>, %73, %cst_30 [1] : vector<8x8xf32> to vector<8xf32>
    %75 = vector.shape_cast %74 : vector<8xf32> to vector<8x1xf32>
    %76 = vector.broadcast %75 : vector<8x1xf32> to vector<8x8xf32>
    %77 = arith.divf %73, %76 : vector<8x8xf32>
    %78 = arith.truncf %77 : vector<8x8xf32> to vector<8x8xbf16>
    %79 = vector.extract_strided_slice %24 {offsets = [0, 16], sizes = [8, 8], strides = [1, 1]} : vector<8x32xbf16> to vector<8x8xbf16>
    %cst_31 = arith.constant dense<0.000000e+00> : vector<8x8xf32>
    %80 = tpu.matmul %78, %79, %cst_31 {dimension_numbers = #tpu.dot_dimension_numbers<[1], [0], [0], [1], [0, 0, 1, 1], [], []>} : vector<8x8xbf16>, vector<8x8xbf16>, vector<8x8xf32> -> vector<8x8xf32>
    %c0_32 = arith.constant 0 : index
    %c16 = arith.constant 16 : index
    %81 = vector.load %arg35[%c0_32, %c16] : memref<8x32xf32, #tpu.memory_space<vmem>>, vector<8x8xf32>
    tpu.vector_store %arg35[%c0_32, %c16], %80 {strides = array<i32>} : memref<8x32xf32, #tpu.memory_space<vmem>>, vector<8x8xf32>,
    %82 = vector.extract_strided_slice %18 {offsets = [0, 24], sizes = [8, 8], strides = [1, 1]} : vector<8x32xbf16> to vector<8x8xbf16>
    %83 = vector.extract_strided_slice %22 {offsets = [0, 24], sizes = [8, 8], strides = [1, 1]} : vector<8x32xbf16> to vector<8x8xbf16>
    %84 = tpu.transpose %83, [1, 0] : vector<8x8xbf16> -> vector<8x8xbf16>
    %cst_33 = arith.constant dense<0.000000e+00> : vector<8x8xf32>
    %85 = tpu.matmul %82, %84, %cst_33 {dimension_numbers = #tpu.dot_dimension_numbers<[1], [0], [0], [1], [0, 0, 1, 1], [], []>} : vector<8x8xbf16>, vector<8x8xbf16>, vector<8x8xf32> -> vector<8x8xf32>
    %cst_34 = arith.constant 0.353553385 : f32
    %86 = vector.broadcast %cst_34 : f32 to vector<8x8xf32>
    %87 = arith.mulf %85, %86 : vector<8x8xf32>
    %cst_35 = arith.constant dense<0xFF800000> : vector<8xf32>
    %88 = vector.multi_reduction <maximumf>, %87, %cst_35 [1] : vector<8x8xf32> to vector<8xf32>
    %89 = vector.shape_cast %88 : vector<8xf32> to vector<8x1xf32>
    %90 = vector.broadcast %89 : vector<8x1xf32> to vector<8x8xf32>
    %91 = arith.subf %87, %90 : vector<8x8xf32>
    %92 = math.exp %91 : vector<8x8xf32>
    %cst_36 = arith.constant dense<0.000000e+00> : vector<8xf32>
    %93 = vector.multi_reduction <add>, %92, %cst_36 [1] : vector<8x8xf32> to vector<8xf32>
    %94 = vector.shape_cast %93 : vector<8xf32> to vector<8x1xf32>
    %95 = vector.broadcast %94 : vector<8x1xf32> to vector<8x8xf32>
    %96 = arith.divf %92, %95 : vector<8x8xf32>
    %97 = arith.truncf %96 : vector<8x8xf32> to vector<8x8xbf16>
    %98 = vector.extract_strided_slice %24 {offsets = [0, 24], sizes = [8, 8], strides = [1, 1]} : vector<8x32xbf16> to vector<8x8xbf16>
    %cst_37 = arith.constant dense<0.000000e+00> : vector<8x8xf32>
    %99 = tpu.matmul %97, %98, %cst_37 {dimension_numbers = #tpu.dot_dimension_numbers<[1], [0], [0], [1], [0, 0, 1, 1], [], []>} : vector<8x8xbf16>, vector<8x8xbf16>, vector<8x8xf32> -> vector<8x8xf32>
    %c0_38 = arith.constant 0 : index
    %c24 = arith.constant 24 : index
    %100 = vector.load %arg35[%c0_38, %c24] : memref<8x32xf32, #tpu.memory_space<vmem>>, vector<8x8xf32>
    tpu.vector_store %arg35[%c0_38, %c24], %99 {strides = array<i32>} : memref<8x32xf32, #tpu.memory_space<vmem>>, vector<8x8xf32>,
    %c0_39 = arith.constant 0 : index
    %c0_40 = arith.constant 0 : index
    %101 = vector.load %arg35[%c0_39, %c0_40] : memref<8x32xf32, #tpu.memory_space<vmem>>, vector<8x32xf32>
    %102 = arith.truncf %101 : vector<8x32xf32> to vector<8x32xbf16>
    %c0_41 = arith.constant 0 : index
    %c0_42 = arith.constant 0 : index
    %103 = vector.load %arg10[%c0_41, %c0_42] : memref<32x32xbf16, #tpu.memory_space<vmem>>, vector<32x32xbf16>
    %cst_43 = arith.constant dense<0.000000e+00> : vector<8x32xf32>
    %104 = tpu.matmul %102, %103, %cst_43 {dimension_numbers = #tpu.dot_dimension_numbers<[1], [0], [0], [1], [0, 0, 1, 1], [], []>} : vector<8x32xbf16>, vector<32x32xbf16>, vector<8x32xf32> -> vector<8x32xf32>
    %c0_44 = arith.constant 0 : index
    %c0_45 = arith.constant 0 : index
    %105 = vector.load %arg11[%c0_44, %c0_45] : memref<1x32xf32, #tpu.memory_space<vmem>>, vector<1x32xf32>
    %106 = vector.broadcast %105 : vector<1x32xf32> to vector<8x32xf32>
    %107 = arith.addf %104, %106 : vector<8x32xf32>
    %108 = arith.addf %1, %107 : vector<8x32xf32>
    %c0_46 = arith.constant 0 : index
    %c0_47 = arith.constant 0 : index
    %109 = vector.load %arg12[%c0_46, %c0_47] : memref<1x32xf32, #tpu.memory_space<vmem>>, vector<1x32xf32>
    %c0_48 = arith.constant 0 : index
    %c0_49 = arith.constant 0 : index
    %110 = vector.load %arg13[%c0_48, %c0_49] : memref<1x32xf32, #tpu.memory_space<vmem>>, vector<1x32xf32>
    %cst_50 = arith.constant dense<0.000000e+00> : vector<8xf32>
    %111 = vector.multi_reduction <add>, %108, %cst_50 [1] : vector<8x32xf32> to vector<8xf32>
    %112 = vector.shape_cast %111 : vector<8xf32> to vector<8x1xf32>
    %cst_51 = arith.constant 3.200000e+01 : f32
    %113 = vector.broadcast %cst_51 : f32 to vector<8x1xf32>
    %114 = arith.divf %112, %113 : vector<8x1xf32>
    %115 = vector.broadcast %114 : vector<8x1xf32> to vector<8x32xf32>
    %116 = arith.subf %108, %115 : vector<8x32xf32>
    %117 = arith.mulf %116, %116 : vector<8x32xf32>
    %cst_52 = arith.constant dense<0.000000e+00> : vector<8xf32>
    %118 = vector.multi_reduction <add>, %117, %cst_52 [1] : vector<8x32xf32> to vector<8xf32>
    %119 = vector.shape_cast %118 : vector<8xf32> to vector<8x1xf32>
    %cst_53 = arith.constant 3.200000e+01 : f32
    %120 = vector.broadcast %cst_53 : f32 to vector<8x1xf32>
    %121 = arith.divf %119, %120 : vector<8x1xf32>
    %cst_54 = arith.constant 9.99999974E-6 : f32
    %122 = vector.broadcast %cst_54 : f32 to vector<8x1xf32>
    %123 = arith.addf %121, %122 : vector<8x1xf32>
    %124 = math.rsqrt %123 : vector<8x1xf32>
    %125 = vector.broadcast %124 : vector<8x1xf32> to vector<8x32xf32>
    %126 = arith.mulf %116, %125 : vector<8x32xf32>
    %127 = vector.broadcast %109 : vector<1x32xf32> to vector<8x32xf32>
    %128 = arith.mulf %126, %127 : vector<8x32xf32>
    %129 = vector.broadcast %110 : vector<1x32xf32> to vector<8x32xf32>
    %130 = arith.addf %128, %129 : vector<8x32xf32>
    %c0_55 = arith.constant 0 : index
    %c0_56 = arith.constant 0 : index
    %c0_57 = arith.constant 0 : index
    %131 = vector.load %arg5[%c0_55, %c0_56, %c0_57] : memref<1x8x32xbf16, #tpu.memory_space<vmem>>, vector<1x8x32xbf16>
    %132 = vector.shape_cast %131 : vector<1x8x32xbf16> to vector<8x32xbf16>
    %133 = arith.truncf %130 : vector<8x32xf32> to vector<8x32xbf16>
    %c0_58 = arith.constant 0 : index
    %c0_59 = arith.constant 0 : index
    %134 = vector.load %arg14[%c0_58, %c0_59] : memref<32x32xbf16, #tpu.memory_space<vmem>>, vector<32x32xbf16>
    %cst_60 = arith.constant dense<0.000000e+00> : vector<8x32xf32>
    %135 = tpu.matmul %133, %134, %cst_60 {dimension_numbers = #tpu.dot_dimension_numbers<[1], [0], [0], [1], [0, 0, 1, 1], [], []>} : vector<8x32xbf16>, vector<32x32xbf16>, vector<8x32xf32> -> vector<8x32xf32>
    %c0_61 = arith.constant 0 : index
    %c0_62 = arith.constant 0 : index
    %136 = vector.load %arg15[%c0_61, %c0_62] : memref<1x32xf32, #tpu.memory_space<vmem>>, vector<1x32xf32>
    %137 = vector.broadcast %136 : vector<1x32xf32> to vector<8x32xf32>
    %138 = arith.addf %135, %137 : vector<8x32xf32>
    %c0_63 = arith.constant 0 : index
    %c0_64 = arith.constant 0 : index
    %139 = vector.load %arg16[%c0_63, %c0_64] : memref<32x32xbf16, #tpu.memory_space<vmem>>, vector<32x32xbf16>
    %cst_65 = arith.constant dense<0.000000e+00> : vector<8x32xf32>
    %140 = tpu.matmul %3, %139, %cst_65 {dimension_numbers = #tpu.dot_dimension_numbers<[1], [0], [0], [1], [0, 0, 1, 1], [], []>} : vector<8x32xbf16>, vector<32x32xbf16>, vector<8x32xf32> -> vector<8x32xf32>
    %c0_66 = arith.constant 0 : index
    %c0_67 = arith.constant 0 : index
    %141 = vector.load %arg17[%c0_66, %c0_67] : memref<1x32xf32, #tpu.memory_space<vmem>>, vector<1x32xf32>
    %142 = vector.broadcast %141 : vector<1x32xf32> to vector<8x32xf32>
    %143 = arith.addf %140, %142 : vector<8x32xf32>
    %144 = arith.addf %138, %143 : vector<8x32xf32>
    %c0_68 = arith.constant 0 : index
    %c0_69 = arith.constant 0 : index
    %145 = vector.load %arg22[%c0_68, %c0_69] : memref<32x32xbf16, #tpu.memory_space<vmem>>, vector<32x32xbf16>
    %cst_70 = arith.constant dense<0.000000e+00> : vector<8x32xf32>
    %146 = tpu.matmul %132, %145, %cst_70 {dimension_numbers = #tpu.dot_dimension_numbers<[1], [0], [0], [1], [0, 0, 1, 1], [], []>} : vector<8x32xbf16>, vector<32x32xbf16>, vector<8x32xf32> -> vector<8x32xf32>
    %c0_71 = arith.constant 0 : index
    %c0_72 = arith.constant 0 : index
    %147 = vector.load %arg23[%c0_71, %c0_72] : memref<1x32xf32, #tpu.memory_space<vmem>>, vector<1x32xf32>
    %148 = vector.broadcast %147 : vector<1x32xf32> to vector<8x32xf32>
    %149 = arith.addf %146, %148 : vector<8x32xf32>
    %150 = arith.truncf %144 : vector<8x32xf32> to vector<8x32xbf16>
    %151 = arith.truncf %149 : vector<8x32xf32> to vector<8x32xbf16>
    %152 = vector.extract_strided_slice %150 {offsets = [0, 0], sizes = [8, 8], strides = [1, 1]} : vector<8x32xbf16> to vector<8x8xbf16>
    %c0_73 = arith.constant 0 : index
    %c0_74 = arith.constant 0 : index
    %153 = vector.load %arg36[%c0_73, %c0_74] : memref<8x64xbf16, #tpu.memory_space<vmem>>, vector<8x8xbf16>
    tpu.vector_store %arg36[%c0_73, %c0_74], %152 {strides = array<i32>} : memref<8x64xbf16, #tpu.memory_space<vmem>>, vector<8x8xbf16>,
    %154 = vector.extract_strided_slice %151 {offsets = [0, 0], sizes = [8, 8], strides = [1, 1]} : vector<8x32xbf16> to vector<8x8xbf16>
    %c0_75 = arith.constant 0 : index
    %c8_76 = arith.constant 8 : index
    %155 = vector.load %arg36[%c0_75, %c8_76] : memref<8x64xbf16, #tpu.memory_space<vmem>>, vector<8x8xbf16>
    tpu.vector_store %arg36[%c0_75, %c8_76], %154 {strides = array<i32>} : memref<8x64xbf16, #tpu.memory_space<vmem>>, vector<8x8xbf16>,
    %156 = vector.extract_strided_slice %150 {offsets = [0, 8], sizes = [8, 8], strides = [1, 1]} : vector<8x32xbf16> to vector<8x8xbf16>
    %c0_77 = arith.constant 0 : index
    %c16_78 = arith.constant 16 : index
    %157 = vector.load %arg36[%c0_77, %c16_78] : memref<8x64xbf16, #tpu.memory_space<vmem>>, vector<8x8xbf16>
    tpu.vector_store %arg36[%c0_77, %c16_78], %156 {strides = array<i32>} : memref<8x64xbf16, #tpu.memory_space<vmem>>, vector<8x8xbf16>,
    %158 = vector.extract_strided_slice %151 {offsets = [0, 8], sizes = [8, 8], strides = [1, 1]} : vector<8x32xbf16> to vector<8x8xbf16>
    %c0_79 = arith.constant 0 : index
    %c24_80 = arith.constant 24 : index
    %159 = vector.load %arg36[%c0_79, %c24_80] : memref<8x64xbf16, #tpu.memory_space<vmem>>, vector<8x8xbf16>
    tpu.vector_store %arg36[%c0_79, %c24_80], %158 {strides = array<i32>} : memref<8x64xbf16, #tpu.memory_space<vmem>>, vector<8x8xbf16>,
    %160 = vector.extract_strided_slice %150 {offsets = [0, 16], sizes = [8, 8], strides = [1, 1]} : vector<8x32xbf16> to vector<8x8xbf16>
    %c0_81 = arith.constant 0 : index
    %c32 = arith.constant 32 : index
    %161 = vector.load %arg36[%c0_81, %c32] : memref<8x64xbf16, #tpu.memory_space<vmem>>, vector<8x8xbf16>
    tpu.vector_store %arg36[%c0_81, %c32], %160 {strides = array<i32>} : memref<8x64xbf16, #tpu.memory_space<vmem>>, vector<8x8xbf16>,
    %162 = vector.extract_strided_slice %151 {offsets = [0, 16], sizes = [8, 8], strides = [1, 1]} : vector<8x32xbf16> to vector<8x8xbf16>
    %c0_82 = arith.constant 0 : index
    %c40 = arith.constant 40 : index
    %163 = vector.load %arg36[%c0_82, %c40] : memref<8x64xbf16, #tpu.memory_space<vmem>>, vector<8x8xbf16>
    tpu.vector_store %arg36[%c0_82, %c40], %162 {strides = array<i32>} : memref<8x64xbf16, #tpu.memory_space<vmem>>, vector<8x8xbf16>,
    %164 = vector.extract_strided_slice %150 {offsets = [0, 24], sizes = [8, 8], strides = [1, 1]} : vector<8x32xbf16> to vector<8x8xbf16>
    %c0_83 = arith.constant 0 : index
    %c48 = arith.constant 48 : index
    %165 = vector.load %arg36[%c0_83, %c48] : memref<8x64xbf16, #tpu.memory_space<vmem>>, vector<8x8xbf16>
    tpu.vector_store %arg36[%c0_83, %c48], %164 {strides = array<i32>} : memref<8x64xbf16, #tpu.memory_space<vmem>>, vector<8x8xbf16>,
    %166 = vector.extract_strided_slice %151 {offsets = [0, 24], sizes = [8, 8], strides = [1, 1]} : vector<8x32xbf16> to vector<8x8xbf16>
    %c0_84 = arith.constant 0 : index
    %c56 = arith.constant 56 : index
    %167 = vector.load %arg36[%c0_84, %c56] : memref<8x64xbf16, #tpu.memory_space<vmem>>, vector<8x8xbf16>
    tpu.vector_store %arg36[%c0_84, %c56], %166 {strides = array<i32>} : memref<8x64xbf16, #tpu.memory_space<vmem>>, vector<8x8xbf16>,
    %cst_85 = arith.constant 0xFF800000 : f32
    %168 = vector.broadcast %cst_85 : f32 to vector<8x1xf32>
    %cst_86 = arith.constant 0xFF800000 : f32
    %169 = vector.broadcast %cst_86 : f32 to vector<8x1xf32>
    %cst_87 = arith.constant 0xFF800000 : f32
    %170 = vector.broadcast %cst_87 : f32 to vector<8x1xf32>
    %cst_88 = arith.constant 0xFF800000 : f32
    %171 = vector.broadcast %cst_88 : f32 to vector<8x1xf32>
    %cst_89 = arith.constant 0.000000e+00 : f32
    %172 = vector.broadcast %cst_89 : f32 to vector<8x1xf32>
    %cst_90 = arith.constant 0.000000e+00 : f32
    %173 = vector.broadcast %cst_90 : f32 to vector<8x1xf32>
    %cst_91 = arith.constant 0.000000e+00 : f32
    %174 = vector.broadcast %cst_91 : f32 to vector<8x1xf32>
    %cst_92 = arith.constant 0.000000e+00 : f32
    %175 = vector.broadcast %cst_92 : f32 to vector<8x1xf32>
    %cst_93 = arith.constant 0.000000e+00 : f32
    %176 = vector.broadcast %cst_93 : f32 to vector<8x8xf32>
    %cst_94 = arith.constant 0.000000e+00 : f32
    %177 = vector.broadcast %cst_94 : f32 to vector<8x8xf32>
    %cst_95 = arith.constant 0.000000e+00 : f32
    %178 = vector.broadcast %cst_95 : f32 to vector<8x8xf32>
    %cst_96 = arith.constant 0.000000e+00 : f32
    %179 = vector.broadcast %cst_96 : f32 to vector<8x8xf32>
    %c0_97 = arith.constant 0 : index
    %c0_98 = arith.constant 0 : index
    %c0_99 = arith.constant 0 : index
    %180 = vector.load %arg2[%c0_97, %c0_98, %c0_99] : memref<1x16x32xbf16, #tpu.memory_space<vmem>>, vector<1x16x32xbf16>
    %181 = vector.shape_cast %180 : vector<1x16x32xbf16> to vector<16x32xbf16>
    %c0_100 = arith.constant 0 : index
    %c0_101 = arith.constant 0 : index
    %c0_102 = arith.constant 0 : index
    %182 = vector.load %arg3[%c0_100, %c0_101, %c0_102] : memref<1x16x32xbf16, #tpu.memory_space<vmem>>, vector<1x16x32xbf16>
    %183 = vector.shape_cast %182 : vector<1x16x32xbf16> to vector<16x32xbf16>
    %c0_103 = arith.constant 0 : index
    %c0_104 = arith.constant 0 : index
    %184 = vector.load %arg18[%c0_103, %c0_104] : memref<32x64xbf16, #tpu.memory_space<vmem>>, vector<32x64xbf16>
    %cst_105 = arith.constant dense<0.000000e+00> : vector<16x64xf32>
    %185 = tpu.matmul %181, %184, %cst_105 {dimension_numbers = #tpu.dot_dimension_numbers<[1], [0], [0], [1], [0, 0, 1, 1], [], []>} : vector<16x32xbf16>, vector<32x64xbf16>, vector<16x64xf32> -> vector<16x64xf32>
    %c0_106 = arith.constant 0 : index
    %c0_107 = arith.constant 0 : index
    %186 = vector.load %arg19[%c0_106, %c0_107] : memref<1x64xf32, #tpu.memory_space<vmem>>, vector<1x64xf32>
    %187 = vector.broadcast %186 : vector<1x64xf32> to vector<16x64xf32>
    %188 = arith.addf %185, %187 : vector<16x64xf32>
    %c0_108 = arith.constant 0 : index
    %c0_109 = arith.constant 0 : index
    %189 = vector.load %arg20[%c0_108, %c0_109] : memref<32x32xbf16, #tpu.memory_space<vmem>>, vector<32x32xbf16>
    %cst_110 = arith.constant dense<0.000000e+00> : vector<16x32xf32>
    %190 = tpu.matmul %183, %189, %cst_110 {dimension_numbers = #tpu.dot_dimension_numbers<[1], [0], [0], [1], [0, 0, 1, 1], [], []>} : vector<16x32xbf16>, vector<32x32xbf16>, vector<16x32xf32> -> vector<16x32xf32>
    %c0_111 = arith.constant 0 : index
    %c0_112 = arith.constant 0 : index
    %191 = vector.load %arg21[%c0_111, %c0_112] : memref<1x32xf32, #tpu.memory_space<vmem>>, vector<1x32xf32>
    %192 = vector.broadcast %191 : vector<1x32xf32> to vector<16x32xf32>
    %193 = arith.addf %190, %192 : vector<16x32xf32>
    %194 = vector.extract_strided_slice %188 {offsets = [0, 0], sizes = [16, 32], strides = [1, 1]} : vector<16x64xf32> to vector<16x32xf32>
    %195 = vector.extract_strided_slice %188 {offsets = [0, 32], sizes = [16, 32], strides = [1, 1]} : vector<16x64xf32> to vector<16x32xf32>
    %196 = arith.truncf %195 : vector<16x32xf32> to vector<16x32xbf16>
    %197 = arith.addf %194, %193 : vector<16x32xf32>
    %198 = arith.truncf %197 : vector<16x32xf32> to vector<16x32xbf16>
    %199 = arith.truncf %193 : vector<16x32xf32> to vector<16x32xbf16>
    %200 = vector.extract_strided_slice %198 {offsets = [0, 0], sizes = [16, 8], strides = [1, 1]} : vector<16x32xbf16> to vector<16x8xbf16>
    %c0_113 = arith.constant 0 : index
    %c0_114 = arith.constant 0 : index
    %201 = vector.load %arg37[%c0_113, %c0_114] : memref<16x64xbf16, #tpu.memory_space<vmem>>, vector<16x8xbf16>
    tpu.vector_store %arg37[%c0_113, %c0_114], %200 {strides = array<i32>} : memref<16x64xbf16, #tpu.memory_space<vmem>>, vector<16x8xbf16>,
    %202 = vector.extract_strided_slice %199 {offsets = [0, 0], sizes = [16, 8], strides = [1, 1]} : vector<16x32xbf16> to vector<16x8xbf16>
    %c0_115 = arith.constant 0 : index
    %c8_116 = arith.constant 8 : index
    %203 = vector.load %arg37[%c0_115, %c8_116] : memref<16x64xbf16, #tpu.memory_space<vmem>>, vector<16x8xbf16>
    tpu.vector_store %arg37[%c0_115, %c8_116], %202 {strides = array<i32>} : memref<16x64xbf16, #tpu.memory_space<vmem>>, vector<16x8xbf16>,
    %204 = vector.extract_strided_slice %198 {offsets = [0, 8], sizes = [16, 8], strides = [1, 1]} : vector<16x32xbf16> to vector<16x8xbf16>
    %c0_117 = arith.constant 0 : index
    %c16_118 = arith.constant 16 : index
    %205 = vector.load %arg37[%c0_117, %c16_118] : memref<16x64xbf16, #tpu.memory_space<vmem>>, vector<16x8xbf16>
    tpu.vector_store %arg37[%c0_117, %c16_118], %204 {strides = array<i32>} : memref<16x64xbf16, #tpu.memory_space<vmem>>, vector<16x8xbf16>,
    %206 = vector.extract_strided_slice %199 {offsets = [0, 8], sizes = [16, 8], strides = [1, 1]} : vector<16x32xbf16> to vector<16x8xbf16>
    %c0_119 = arith.constant 0 : index
    %c24_120 = arith.constant 24 : index
    %207 = vector.load %arg37[%c0_119, %c24_120] : memref<16x64xbf16, #tpu.memory_space<vmem>>, vector<16x8xbf16>
    tpu.vector_store %arg37[%c0_119, %c24_120], %206 {strides = array<i32>} : memref<16x64xbf16, #tpu.memory_space<vmem>>, vector<16x8xbf16>,
    %208 = vector.extract_strided_slice %198 {offsets = [0, 16], sizes = [16, 8], strides = [1, 1]} : vector<16x32xbf16> to vector<16x8xbf16>
    %c0_121 = arith.constant 0 : index
    %c32_122 = arith.constant 32 : index
    %209 = vector.load %arg37[%c0_121, %c32_122] : memref<16x64xbf16, #tpu.memory_space<vmem>>, vector<16x8xbf16>
    tpu.vector_store %arg37[%c0_121, %c32_122], %208 {strides = array<i32>} : memref<16x64xbf16, #tpu.memory_space<vmem>>, vector<16x8xbf16>,
    %210 = vector.extract_strided_slice %199 {offsets = [0, 16], sizes = [16, 8], strides = [1, 1]} : vector<16x32xbf16> to vector<16x8xbf16>
    %c0_123 = arith.constant 0 : index
    %c40_124 = arith.constant 40 : index
    %211 = vector.load %arg37[%c0_123, %c40_124] : memref<16x64xbf16, #tpu.memory_space<vmem>>, vector<16x8xbf16>
    tpu.vector_store %arg37[%c0_123, %c40_124], %210 {strides = array<i32>} : memref<16x64xbf16, #tpu.memory_space<vmem>>, vector<16x8xbf16>,
    %212 = vector.extract_strided_slice %198 {offsets = [0, 24], sizes = [16, 8], strides = [1, 1]} : vector<16x32xbf16> to vector<16x8xbf16>
    %c0_125 = arith.constant 0 : index
    %c48_126 = arith.constant 48 : index
    %213 = vector.load %arg37[%c0_125, %c48_126] : memref<16x64xbf16, #tpu.memory_space<vmem>>, vector<16x8xbf16>
    tpu.vector_store %arg37[%c0_125, %c48_126], %212 {strides = array<i32>} : memref<16x64xbf16, #tpu.memory_space<vmem>>, vector<16x8xbf16>,
    %214 = vector.extract_strided_slice %199 {offsets = [0, 24], sizes = [16, 8], strides = [1, 1]} : vector<16x32xbf16> to vector<16x8xbf16>
    %c0_127 = arith.constant 0 : index
    %c56_128 = arith.constant 56 : index
    %215 = vector.load %arg37[%c0_127, %c56_128] : memref<16x64xbf16, #tpu.memory_space<vmem>>, vector<16x8xbf16>
    tpu.vector_store %arg37[%c0_127, %c56_128], %214 {strides = array<i32>} : memref<16x64xbf16, #tpu.memory_space<vmem>>, vector<16x8xbf16>,
    %c0_129 = arith.constant 0 : index
    %c0_130 = arith.constant 0 : index
    %216 = vector.load %arg36[%c0_129, %c0_130] : memref<8x64xbf16, #tpu.memory_space<vmem>>, vector<8x16xbf16>
    %c0_131 = arith.constant 0 : index
    %c0_132 = arith.constant 0 : index
    %217 = vector.load %arg37[%c0_131, %c0_132] : memref<16x64xbf16, #tpu.memory_space<vmem>>, vector<16x16xbf16>
    %218 = tpu.transpose %217, [1, 0] : vector<16x16xbf16> -> vector<16x16xbf16>
    %cst_133 = arith.constant dense<0.000000e+00> : vector<8x16xf32>
    %219 = tpu.matmul %216, %218, %cst_133 {dimension_numbers = #tpu.dot_dimension_numbers<[1], [0], [0], [1], [0, 0, 1, 1], [], []>} : vector<8x16xbf16>, vector<16x16xbf16>, vector<8x16xf32> -> vector<8x16xf32>
    %cst_134 = arith.constant 2.500000e-01 : f32
    %220 = vector.broadcast %cst_134 : f32 to vector<8x16xf32>
    %221 = arith.mulf %219, %220 : vector<8x16xf32>
    %cst_135 = arith.constant dense<0xFF800000> : vector<8xf32>
    %222 = vector.multi_reduction <maximumf>, %221, %cst_135 [1] : vector<8x16xf32> to vector<8xf32>
    %223 = vector.shape_cast %222 : vector<8xf32> to vector<8x1xf32>
    %224 = arith.maximumf %168, %223 : vector<8x1xf32>
    %225 = arith.subf %168, %224 : vector<8x1xf32>
    %226 = math.exp %225 : vector<8x1xf32>
    %227 = vector.broadcast %224 : vector<8x1xf32> to vector<8x16xf32>
    %228 = arith.subf %221, %227 : vector<8x16xf32>
    %229 = math.exp %228 : vector<8x16xf32>
    %230 = arith.mulf %226, %172 : vector<8x1xf32>
    %cst_136 = arith.constant dense<0.000000e+00> : vector<8xf32>
    %231 = vector.multi_reduction <add>, %229, %cst_136 [1] : vector<8x16xf32> to vector<8xf32>
    %232 = vector.shape_cast %231 : vector<8xf32> to vector<8x1xf32>
    %233 = arith.addf %230, %232 : vector<8x1xf32>
    %234 = vector.broadcast %226 : vector<8x1xf32> to vector<8x8xf32>
    %235 = arith.mulf %234, %176 : vector<8x8xf32>
    %236 = arith.truncf %229 : vector<8x16xf32> to vector<8x16xbf16>
    %237 = vector.extract_strided_slice %196 {offsets = [0, 0], sizes = [16, 8], strides = [1, 1]} : vector<16x32xbf16> to vector<16x8xbf16>
    %cst_137 = arith.constant dense<0.000000e+00> : vector<8x8xf32>
    %238 = tpu.matmul %236, %237, %cst_137 {dimension_numbers = #tpu.dot_dimension_numbers<[1], [0], [0], [1], [0, 0, 1, 1], [], []>} : vector<8x16xbf16>, vector<16x8xbf16>, vector<8x8xf32> -> vector<8x8xf32>
    %239 = arith.addf %235, %238 : vector<8x8xf32>
    %c0_138 = arith.constant 0 : index
    %c16_139 = arith.constant 16 : index
    %240 = vector.load %arg36[%c0_138, %c16_139] : memref<8x64xbf16, #tpu.memory_space<vmem>>, vector<8x16xbf16>
    %c0_140 = arith.constant 0 : index
    %c16_141 = arith.constant 16 : index
    %241 = vector.load %arg37[%c0_140, %c16_141] : memref<16x64xbf16, #tpu.memory_space<vmem>>, vector<16x16xbf16>
    %242 = tpu.transpose %241, [1, 0] : vector<16x16xbf16> -> vector<16x16xbf16>
    %cst_142 = arith.constant dense<0.000000e+00> : vector<8x16xf32>
    %243 = tpu.matmul %240, %242, %cst_142 {dimension_numbers = #tpu.dot_dimension_numbers<[1], [0], [0], [1], [0, 0, 1, 1], [], []>} : vector<8x16xbf16>, vector<16x16xbf16>, vector<8x16xf32> -> vector<8x16xf32>
    %cst_143 = arith.constant 2.500000e-01 : f32
    %244 = vector.broadcast %cst_143 : f32 to vector<8x16xf32>
    %245 = arith.mulf %243, %244 : vector<8x16xf32>
    %cst_144 = arith.constant dense<0xFF800000> : vector<8xf32>
    %246 = vector.multi_reduction <maximumf>, %245, %cst_144 [1] : vector<8x16xf32> to vector<8xf32>
    %247 = vector.shape_cast %246 : vector<8xf32> to vector<8x1xf32>
    %248 = arith.maximumf %169, %247 : vector<8x1xf32>
    %249 = arith.subf %169, %248 : vector<8x1xf32>
    %250 = math.exp %249 : vector<8x1xf32>
    %251 = vector.broadcast %248 : vector<8x1xf32> to vector<8x16xf32>
    %252 = arith.subf %245, %251 : vector<8x16xf32>
    %253 = math.exp %252 : vector<8x16xf32>
    %254 = arith.mulf %250, %173 : vector<8x1xf32>
    %cst_145 = arith.constant dense<0.000000e+00> : vector<8xf32>
    %255 = vector.multi_reduction <add>, %253, %cst_145 [1] : vector<8x16xf32> to vector<8xf32>
    %256 = vector.shape_cast %255 : vector<8xf32> to vector<8x1xf32>
    %257 = arith.addf %254, %256 : vector<8x1xf32>
    %258 = vector.broadcast %250 : vector<8x1xf32> to vector<8x8xf32>
    %259 = arith.mulf %258, %177 : vector<8x8xf32>
    %260 = arith.truncf %253 : vector<8x16xf32> to vector<8x16xbf16>
    %261 = vector.extract_strided_slice %196 {offsets = [0, 8], sizes = [16, 8], strides = [1, 1]} : vector<16x32xbf16> to vector<16x8xbf16>
    %cst_146 = arith.constant dense<0.000000e+00> : vector<8x8xf32>
    %262 = tpu.matmul %260, %261, %cst_146 {dimension_numbers = #tpu.dot_dimension_numbers<[1], [0], [0], [1], [0, 0, 1, 1], [], []>} : vector<8x16xbf16>, vector<16x8xbf16>, vector<8x8xf32> -> vector<8x8xf32>
    %263 = arith.addf %259, %262 : vector<8x8xf32>
    %c0_147 = arith.constant 0 : index
    %c32_148 = arith.constant 32 : index
    %264 = vector.load %arg36[%c0_147, %c32_148] : memref<8x64xbf16, #tpu.memory_space<vmem>>, vector<8x16xbf16>
    %c0_149 = arith.constant 0 : index
    %c32_150 = arith.constant 32 : index
    %265 = vector.load %arg37[%c0_149, %c32_150] : memref<16x64xbf16, #tpu.memory_space<vmem>>, vector<16x16xbf16>
    %266 = tpu.transpose %265, [1, 0] : vector<16x16xbf16> -> vector<16x16xbf16>
    %cst_151 = arith.constant dense<0.000000e+00> : vector<8x16xf32>
    %267 = tpu.matmul %264, %266, %cst_151 {dimension_numbers = #tpu.dot_dimension_numbers<[1], [0], [0], [1], [0, 0, 1, 1], [], []>} : vector<8x16xbf16>, vector<16x16xbf16>, vector<8x16xf32> -> vector<8x16xf32>
    %cst_152 = arith.constant 2.500000e-01 : f32
    %268 = vector.broadcast %cst_152 : f32 to vector<8x16xf32>
    %269 = arith.mulf %267, %268 : vector<8x16xf32>
    %cst_153 = arith.constant dense<0xFF800000> : vector<8xf32>
    %270 = vector.multi_reduction <maximumf>, %269, %cst_153 [1] : vector<8x16xf32> to vector<8xf32>
    %271 = vector.shape_cast %270 : vector<8xf32> to vector<8x1xf32>
    %272 = arith.maximumf %170, %271 : vector<8x1xf32>
    %273 = arith.subf %170, %272 : vector<8x1xf32>
    %274 = math.exp %273 : vector<8x1xf32>
    %275 = vector.broadcast %272 : vector<8x1xf32> to vector<8x16xf32>
    %276 = arith.subf %269, %275 : vector<8x16xf32>
    %277 = math.exp %276 : vector<8x16xf32>
    %278 = arith.mulf %274, %174 : vector<8x1xf32>
    %cst_154 = arith.constant dense<0.000000e+00> : vector<8xf32>
    %279 = vector.multi_reduction <add>, %277, %cst_154 [1] : vector<8x16xf32> to vector<8xf32>
    %280 = vector.shape_cast %279 : vector<8xf32> to vector<8x1xf32>
    %281 = arith.addf %278, %280 : vector<8x1xf32>
    %282 = vector.broadcast %274 : vector<8x1xf32> to vector<8x8xf32>
    %283 = arith.mulf %282, %178 : vector<8x8xf32>
    %284 = arith.truncf %277 : vector<8x16xf32> to vector<8x16xbf16>
    %285 = vector.extract_strided_slice %196 {offsets = [0, 16], sizes = [16, 8], strides = [1, 1]} : vector<16x32xbf16> to vector<16x8xbf16>
    %cst_155 = arith.constant dense<0.000000e+00> : vector<8x8xf32>
    %286 = tpu.matmul %284, %285, %cst_155 {dimension_numbers = #tpu.dot_dimension_numbers<[1], [0], [0], [1], [0, 0, 1, 1], [], []>} : vector<8x16xbf16>, vector<16x8xbf16>, vector<8x8xf32> -> vector<8x8xf32>
    %287 = arith.addf %283, %286 : vector<8x8xf32>
    %c0_156 = arith.constant 0 : index
    %c48_157 = arith.constant 48 : index
    %288 = vector.load %arg36[%c0_156, %c48_157] : memref<8x64xbf16, #tpu.memory_space<vmem>>, vector<8x16xbf16>
    %c0_158 = arith.constant 0 : index
    %c48_159 = arith.constant 48 : index
    %289 = vector.load %arg37[%c0_158, %c48_159] : memref<16x64xbf16, #tpu.memory_space<vmem>>, vector<16x16xbf16>
    %290 = tpu.transpose %289, [1, 0] : vector<16x16xbf16> -> vector<16x16xbf16>
    %cst_160 = arith.constant dense<0.000000e+00> : vector<8x16xf32>
    %291 = tpu.matmul %288, %290, %cst_160 {dimension_numbers = #tpu.dot_dimension_numbers<[1], [0], [0], [1], [0, 0, 1, 1], [], []>} : vector<8x16xbf16>, vector<16x16xbf16>, vector<8x16xf32> -> vector<8x16xf32>
    %cst_161 = arith.constant 2.500000e-01 : f32
    %292 = vector.broadcast %cst_161 : f32 to vector<8x16xf32>
    %293 = arith.mulf %291, %292 : vector<8x16xf32>
    %cst_162 = arith.constant dense<0xFF800000> : vector<8xf32>
    %294 = vector.multi_reduction <maximumf>, %293, %cst_162 [1] : vector<8x16xf32> to vector<8xf32>
    %295 = vector.shape_cast %294 : vector<8xf32> to vector<8x1xf32>
    %296 = arith.maximumf %171, %295 : vector<8x1xf32>
    %297 = arith.subf %171, %296 : vector<8x1xf32>
    %298 = math.exp %297 : vector<8x1xf32>
    %299 = vector.broadcast %296 : vector<8x1xf32> to vector<8x16xf32>
    %300 = arith.subf %293, %299 : vector<8x16xf32>
    %301 = math.exp %300 : vector<8x16xf32>
    %302 = arith.mulf %298, %175 : vector<8x1xf32>
    %cst_163 = arith.constant dense<0.000000e+00> : vector<8xf32>
    %303 = vector.multi_reduction <add>, %301, %cst_163 [1] : vector<8x16xf32> to vector<8xf32>
    %304 = vector.shape_cast %303 : vector<8xf32> to vector<8x1xf32>
    %305 = arith.addf %302, %304 : vector<8x1xf32>
    %306 = vector.broadcast %298 : vector<8x1xf32> to vector<8x8xf32>
    %307 = arith.mulf %306, %179 : vector<8x8xf32>
    %308 = arith.truncf %301 : vector<8x16xf32> to vector<8x16xbf16>
    %309 = vector.extract_strided_slice %196 {offsets = [0, 24], sizes = [16, 8], strides = [1, 1]} : vector<16x32xbf16> to vector<16x8xbf16>
    %cst_164 = arith.constant dense<0.000000e+00> : vector<8x8xf32>
    %310 = tpu.matmul %308, %309, %cst_164 {dimension_numbers = #tpu.dot_dimension_numbers<[1], [0], [0], [1], [0, 0, 1, 1], [], []>} : vector<8x16xbf16>, vector<16x8xbf16>, vector<8x8xf32> -> vector<8x8xf32>
    %311 = arith.addf %307, %310 : vector<8x8xf32>
    %312 = vector.broadcast %233 : vector<8x1xf32> to vector<8x8xf32>
    %313 = arith.divf %239, %312 : vector<8x8xf32>
    %c0_165 = arith.constant 0 : index
    %c0_166 = arith.constant 0 : index
    %314 = vector.load %arg35[%c0_165, %c0_166] : memref<8x32xf32, #tpu.memory_space<vmem>>, vector<8x8xf32>
    tpu.vector_store %arg35[%c0_165, %c0_166], %313 {strides = array<i32>} : memref<8x32xf32, #tpu.memory_space<vmem>>, vector<8x8xf32>,
    %315 = vector.broadcast %257 : vector<8x1xf32> to vector<8x8xf32>
    %316 = arith.divf %263, %315 : vector<8x8xf32>
    %c0_167 = arith.constant 0 : index
    %c8_168 = arith.constant 8 : index
    %317 = vector.load %arg35[%c0_167, %c8_168] : memref<8x32xf32, #tpu.memory_space<vmem>>, vector<8x8xf32>
    tpu.vector_store %arg35[%c0_167, %c8_168], %316 {strides = array<i32>} : memref<8x32xf32, #tpu.memory_space<vmem>>, vector<8x8xf32>,
    %318 = vector.broadcast %281 : vector<8x1xf32> to vector<8x8xf32>
    %319 = arith.divf %287, %318 : vector<8x8xf32>
    %c0_169 = arith.constant 0 : index
    %c16_170 = arith.constant 16 : index
    %320 = vector.load %arg35[%c0_169, %c16_170] : memref<8x32xf32, #tpu.memory_space<vmem>>, vector<8x8xf32>
    tpu.vector_store %arg35[%c0_169, %c16_170], %319 {strides = array<i32>} : memref<8x32xf32, #tpu.memory_space<vmem>>, vector<8x8xf32>,
    %321 = vector.broadcast %305 : vector<8x1xf32> to vector<8x8xf32>
    %322 = arith.divf %311, %321 : vector<8x8xf32>
    %c0_171 = arith.constant 0 : index
    %c24_172 = arith.constant 24 : index
    %323 = vector.load %arg35[%c0_171, %c24_172] : memref<8x32xf32, #tpu.memory_space<vmem>>, vector<8x8xf32>
    tpu.vector_store %arg35[%c0_171, %c24_172], %322 {strides = array<i32>} : memref<8x32xf32, #tpu.memory_space<vmem>>, vector<8x8xf32>,
    %c0_173 = arith.constant 0 : index
    %c0_174 = arith.constant 0 : index
    %324 = vector.load %arg35[%c0_173, %c0_174] : memref<8x32xf32, #tpu.memory_space<vmem>>, vector<8x32xf32>
    %325 = arith.truncf %324 : vector<8x32xf32> to vector<8x32xbf16>
    %c0_175 = arith.constant 0 : index
    %c0_176 = arith.constant 0 : index
    %326 = vector.load %arg24[%c0_175, %c0_176] : memref<32x32xbf16, #tpu.memory_space<vmem>>, vector<32x32xbf16>
    %cst_177 = arith.constant dense<0.000000e+00> : vector<8x32xf32>
    %327 = tpu.matmul %325, %326, %cst_177 {dimension_numbers = #tpu.dot_dimension_numbers<[1], [0], [0], [1], [0, 0, 1, 1], [], []>} : vector<8x32xbf16>, vector<32x32xbf16>, vector<8x32xf32> -> vector<8x32xf32>
    %c0_178 = arith.constant 0 : index
    %c0_179 = arith.constant 0 : index
    %328 = vector.load %arg25[%c0_178, %c0_179] : memref<1x32xf32, #tpu.memory_space<vmem>>, vector<1x32xf32>
    %329 = vector.broadcast %328 : vector<1x32xf32> to vector<8x32xf32>
    %330 = arith.addf %327, %329 : vector<8x32xf32>
    %331 = arith.addf %130, %330 : vector<8x32xf32>
    %c0_180 = arith.constant 0 : index
    %c0_181 = arith.constant 0 : index
    %332 = vector.load %arg26[%c0_180, %c0_181] : memref<1x32xf32, #tpu.memory_space<vmem>>, vector<1x32xf32>
    %c0_182 = arith.constant 0 : index
    %c0_183 = arith.constant 0 : index
    %333 = vector.load %arg27[%c0_182, %c0_183] : memref<1x32xf32, #tpu.memory_space<vmem>>, vector<1x32xf32>
    %cst_184 = arith.constant dense<0.000000e+00> : vector<8xf32>
    %334 = vector.multi_reduction <add>, %331, %cst_184 [1] : vector<8x32xf32> to vector<8xf32>
    %335 = vector.shape_cast %334 : vector<8xf32> to vector<8x1xf32>
    %cst_185 = arith.constant 3.200000e+01 : f32
    %336 = vector.broadcast %cst_185 : f32 to vector<8x1xf32>
    %337 = arith.divf %335, %336 : vector<8x1xf32>
    %338 = vector.broadcast %337 : vector<8x1xf32> to vector<8x32xf32>
    %339 = arith.subf %331, %338 : vector<8x32xf32>
    %340 = arith.mulf %339, %339 : vector<8x32xf32>
    %cst_186 = arith.constant dense<0.000000e+00> : vector<8xf32>
    %341 = vector.multi_reduction <add>, %340, %cst_186 [1] : vector<8x32xf32> to vector<8xf32>
    %342 = vector.shape_cast %341 : vector<8xf32> to vector<8x1xf32>
    %cst_187 = arith.constant 3.200000e+01 : f32
    %343 = vector.broadcast %cst_187 : f32 to vector<8x1xf32>
    %344 = arith.divf %342, %343 : vector<8x1xf32>
    %cst_188 = arith.constant 9.99999974E-6 : f32
    %345 = vector.broadcast %cst_188 : f32 to vector<8x1xf32>
    %346 = arith.addf %344, %345 : vector<8x1xf32>
    %347 = math.rsqrt %346 : vector<8x1xf32>
    %348 = vector.broadcast %347 : vector<8x1xf32> to vector<8x32xf32>
    %349 = arith.mulf %339, %348 : vector<8x32xf32>
    %350 = vector.broadcast %332 : vector<1x32xf32> to vector<8x32xf32>
    %351 = arith.mulf %349, %350 : vector<8x32xf32>
    %352 = vector.broadcast %333 : vector<1x32xf32> to vector<8x32xf32>
    %353 = arith.addf %351, %352 : vector<8x32xf32>
    %354 = arith.truncf %353 : vector<8x32xf32> to vector<8x32xbf16>
    %c0_189 = arith.constant 0 : index
    %c0_190 = arith.constant 0 : index
    %355 = vector.load %arg28[%c0_189, %c0_190] : memref<32x64xbf16, #tpu.memory_space<vmem>>, vector<32x64xbf16>
    %cst_191 = arith.constant dense<0.000000e+00> : vector<8x64xf32>
    %356 = tpu.matmul %354, %355, %cst_191 {dimension_numbers = #tpu.dot_dimension_numbers<[1], [0], [0], [1], [0, 0, 1, 1], [], []>} : vector<8x32xbf16>, vector<32x64xbf16>, vector<8x64xf32> -> vector<8x64xf32>
    %c0_192 = arith.constant 0 : index
    %c0_193 = arith.constant 0 : index
    %357 = vector.load %arg29[%c0_192, %c0_193] : memref<1x64xf32, #tpu.memory_space<vmem>>, vector<1x64xf32>
    %358 = vector.broadcast %357 : vector<1x64xf32> to vector<8x64xf32>
    %359 = arith.addf %356, %358 : vector<8x64xf32>
    %cst_194 = arith.constant 0.000000e+00 : f32
    %360 = vector.broadcast %cst_194 : f32 to vector<8x64xf32>
    %361 = arith.maximumf %359, %360 : vector<8x64xf32>
    %362 = arith.truncf %361 : vector<8x64xf32> to vector<8x64xbf16>
    %c0_195 = arith.constant 0 : index
    %c0_196 = arith.constant 0 : index
    %363 = vector.load %arg30[%c0_195, %c0_196] : memref<64x32xbf16, #tpu.memory_space<vmem>>, vector<64x32xbf16>
    %cst_197 = arith.constant dense<0.000000e+00> : vector<8x32xf32>
    %364 = tpu.matmul %362, %363, %cst_197 {dimension_numbers = #tpu.dot_dimension_numbers<[1], [0], [0], [1], [0, 0, 1, 1], [], []>} : vector<8x64xbf16>, vector<64x32xbf16>, vector<8x32xf32> -> vector<8x32xf32>
    %c0_198 = arith.constant 0 : index
    %c0_199 = arith.constant 0 : index
    %365 = vector.load %arg31[%c0_198, %c0_199] : memref<1x32xf32, #tpu.memory_space<vmem>>, vector<1x32xf32>
    %366 = vector.broadcast %365 : vector<1x32xf32> to vector<8x32xf32>
    %367 = arith.addf %364, %366 : vector<8x32xf32>
    %368 = arith.addf %353, %367 : vector<8x32xf32>
    %c0_200 = arith.constant 0 : index
    %c0_201 = arith.constant 0 : index
    %369 = vector.load %arg32[%c0_200, %c0_201] : memref<1x32xf32, #tpu.memory_space<vmem>>, vector<1x32xf32>
    %c0_202 = arith.constant 0 : index
    %c0_203 = arith.constant 0 : index
    %370 = vector.load %arg33[%c0_202, %c0_203] : memref<1x32xf32, #tpu.memory_space<vmem>>, vector<1x32xf32>
    %cst_204 = arith.constant dense<0.000000e+00> : vector<8xf32>
    %371 = vector.multi_reduction <add>, %368, %cst_204 [1] : vector<8x32xf32> to vector<8xf32>
    %372 = vector.shape_cast %371 : vector<8xf32> to vector<8x1xf32>
    %cst_205 = arith.constant 3.200000e+01 : f32
    %373 = vector.broadcast %cst_205 : f32 to vector<8x1xf32>
    %374 = arith.divf %372, %373 : vector<8x1xf32>
    %375 = vector.broadcast %374 : vector<8x1xf32> to vector<8x32xf32>
    %376 = arith.subf %368, %375 : vector<8x32xf32>
    %377 = arith.mulf %376, %376 : vector<8x32xf32>
    %cst_206 = arith.constant dense<0.000000e+00> : vector<8xf32>
    %378 = vector.multi_reduction <add>, %377, %cst_206 [1] : vector<8x32xf32> to vector<8xf32>
    %379 = vector.shape_cast %378 : vector<8xf32> to vector<8x1xf32>
    %cst_207 = arith.constant 3.200000e+01 : f32
    %380 = vector.broadcast %cst_207 : f32 to vector<8x1xf32>
    %381 = arith.divf %379, %380 : vector<8x1xf32>
    %cst_208 = arith.constant 9.99999974E-6 : f32
    %382 = vector.broadcast %cst_208 : f32 to vector<8x1xf32>
    %383 = arith.addf %381, %382 : vector<8x1xf32>
    %384 = math.rsqrt %383 : vector<8x1xf32>
    %385 = vector.broadcast %384 : vector<8x1xf32> to vector<8x32xf32>
    %386 = arith.mulf %376, %385 : vector<8x32xf32>
    %387 = vector.broadcast %369 : vector<1x32xf32> to vector<8x32xf32>
    %388 = arith.mulf %386, %387 : vector<8x32xf32>
    %389 = vector.broadcast %370 : vector<1x32xf32> to vector<8x32xf32>
    %390 = arith.addf %388, %389 : vector<8x32xf32>
    %c0_209 = arith.constant 0 : index
    %c0_210 = arith.constant 0 : index
    %c0_211 = arith.constant 0 : index
    %391 = vector.load %arg34[%c0_209, %c0_210, %c0_211] : memref<1x8x32xf32, #tpu.memory_space<vmem>>, vector<1x8x32xf32>
    %392 = vector.shape_cast %391 : vector<1x8x32xf32> to vector<8x32xf32>
    %393 = vector.shape_cast %390 : vector<8x32xf32> to vector<1x8x32xf32>
    tpu.vector_store %arg34[%c0_209, %c0_210, %c0_211], %393 {strides = array<i32>} : memref<1x8x32xf32, #tpu.memory_space<vmem>>, vector<1x8x32xf32>,
    return
  }
  func.func @transform_0(%arg0: i32) -> (i32, i32, i32) {
    %c0_i32 = arith.constant 0 : i32
    %c0_i32_0 = arith.constant 0 : i32
    %c0_i32_1 = arith.constant 0 : i32
    return %arg0, %c0_i32, %c0_i32_0 : i32, i32, i32
  }
  func.func @transform_1(%arg0: i32) -> (i32, i32, i32) {
    %c0_i32 = arith.constant 0 : i32
    %c0_i32_0 = arith.constant 0 : i32
    %c0_i32_1 = arith.constant 0 : i32
    return %arg0, %c0_i32, %c0_i32_0 : i32, i32, i32
  }
  func.func @transform_2(%arg0: i32) -> (i32, i32, i32) {
    %c0_i32 = arith.constant 0 : i32
    %c0_i32_0 = arith.constant 0 : i32
    %c0_i32_1 = arith.constant 0 : i32
    return %arg0, %c0_i32, %c0_i32_0 : i32, i32, i32
  }
  func.func @transform_3(%arg0: i32) -> (i32, i32, i32) {
    %c0_i32 = arith.constant 0 : i32
    %c0_i32_0 = arith.constant 0 : i32
    %c0_i32_1 = arith.constant 0 : i32
    return %arg0, %c0_i32, %c0_i32_0 : i32, i32, i32
  }
  func.func @transform_4(%arg0: i32) -> (i32, i32, i32) {
    %c0_i32 = arith.constant 0 : i32
    %c0_i32_0 = arith.constant 0 : i32
    %c0_i32_1 = arith.constant 0 : i32
    return %arg0, %c0_i32, %c0_i32_0 : i32, i32, i32
  }
  func.func @transform_5(%arg0: i32) -> (i32, i32) {
    %c0_i32 = arith.constant 0 : i32
    %c0_i32_0 = arith.constant 0 : i32
    %c0_i32_1 = arith.constant 0 : i32
    return %c0_i32, %c0_i32_0 : i32, i32
  }
  func.func @transform_6(%arg0: i32) -> (i32, i32) {
    %c0_i32 = arith.constant 0 : i32
    %c0_i32_0 = arith.constant 0 : i32
    %c0_i32_1 = arith.constant 0 : i32
    return %c0_i32, %c0_i32_0 : i32, i32
  }
  func.func @transform_7(%arg0: i32) -> (i32, i32) {
    %c0_i32 = arith.constant 0 : i32
    %c0_i32_0 = arith.constant 0 : i32
    %c0_i32_1 = arith.constant 0 : i32
    return %c0_i32, %c0_i32_0 : i32, i32
  }
  func.func @transform_8(%arg0: i32) -> (i32, i32) {
    %c0_i32 = arith.constant 0 : i32
    %c0_i32_0 = arith.constant 0 : i32
    %c0_i32_1 = arith.constant 0 : i32
    return %c0_i32, %c0_i32_0 : i32, i32
  }
  func.func @transform_9(%arg0: i32) -> (i32, i32) {
    %c0_i32 = arith.constant 0 : i32
    %c0_i32_0 = arith.constant 0 : i32
    %c0_i32_1 = arith.constant 0 : i32
    return %c0_i32, %c0_i32_0 : i32, i32
  }
  func.func @transform_10(%arg0: i32) -> (i32, i32) {
    %c0_i32 = arith.constant 0 : i32
    %c0_i32_0 = arith.constant 0 : i32
    %c0_i32_1 = arith.constant 0 : i32
    return %c0_i32, %c0_i32_0 : i32, i32
  }
  func.func @transform_11(%arg0: i32) -> (i32, i32) {
    %c0_i32 = arith.constant 0 : i32
    %c0_i32_0 = arith.constant 0 : i32
    %c0_i32_1 = arith.constant 0 : i32
    return %c0_i32, %c0_i32_0 : i32, i32
  }
  func.func @transform_12(%arg0: i32) -> (i32, i32) {
    %c0_i32 = arith.constant 0 : i32
    %c0_i32_0 = arith.constant 0 : i32
    %c0_i32_1 = arith.constant 0 : i32
    return %c0_i32, %c0_i32_0 : i32, i32
  }
  func.func @transform_13(%arg0: i32) -> (i32, i32) {
    %c0_i32 = arith.constant 0 : i32
    %c0_i32_0 = arith.constant 0 : i32
    %c0_i32_1 = arith.constant 0 : i32
    return %c0_i32, %c0_i32_0 : i32, i32
  }
  func.func @transform_14(%arg0: i32) -> (i32, i32) {
    %c0_i32 = arith.constant 0 : i32
    %c0_i32_0 = arith.constant 0 : i32
    %c0_i32_1 = arith.constant 0 : i32
    return %c0_i32, %c0_i32_0 : i32, i32
  }
  func.func @transform_15(%arg0: i32) -> (i32, i32) {
    %c0_i32 = arith.constant 0 : i32
    %c0_i32_0 = arith.constant 0 : i32
    %c0_i32_1 = arith.constant 0 : i32
    return %c0_i32, %c0_i32_0 : i32, i32
  }
  func.func @transform_16(%arg0: i32) -> (i32, i32) {
    %c0_i32 = arith.constant 0 : i32
    %c0_i32_0 = arith.constant 0 : i32
    %c0_i32_1 = arith.constant 0 : i32
    return %c0_i32, %c0_i32_0 : i32, i32
  }
  func.func @transform_17(%arg0: i32) -> (i32, i32) {
    %c0_i32 = arith.constant 0 : i32
    %c0_i32_0 = arith.constant 0 : i32
    %c0_i32_1 = arith.constant 0 : i32
    return %c0_i32, %c0_i32_0 : i32, i32
  }
  func.func @transform_18(%arg0: i32) -> (i32, i32) {
    %c0_i32 = arith.constant 0 : i32
    %c0_i32_0 = arith.constant 0 : i32
    %c0_i32_1 = arith.constant 0 : i32
    return %c0_i32, %c0_i32_0 : i32, i32
  }
  func.func @transform_19(%arg0: i32) -> (i32, i32) {
    %c0_i32 = arith.constant 0 : i32
    %c0_i32_0 = arith.constant 0 : i32
    %c0_i32_1 = arith.constant 0 : i32
    return %c0_i32, %c0_i32_0 : i32, i32
  }
  func.func @transform_20(%arg0: i32) -> (i32, i32) {
    %c0_i32 = arith.constant 0 : i32
    %c0_i32_0 = arith.constant 0 : i32
    %c0_i32_1 = arith.constant 0 : i32
    return %c0_i32, %c0_i32_0 : i32, i32
  }
  func.func @transform_21(%arg0: i32) -> (i32, i32) {
    %c0_i32 = arith.constant 0 : i32
    %c0_i32_0 = arith.constant 0 : i32
    %c0_i32_1 = arith.constant 0 : i32
    return %c0_i32, %c0_i32_0 : i32, i32
  }
  func.func @transform_22(%arg0: i32) -> (i32, i32) {
    %c0_i32 = arith.constant 0 : i32
    %c0_i32_0 = arith.constant 0 : i32
    %c0_i32_1 = arith.constant 0 : i32
    return %c0_i32, %c0_i32_0 : i32, i32
  }
  func.func @transform_23(%arg0: i32) -> (i32, i32) {
    %c0_i32 = arith.constant 0 : i32
    %c0_i32_0 = arith.constant 0 : i32
    %c0_i32_1 = arith.constant 0 : i32
    return %c0_i32, %c0_i32_0 : i32, i32
  }
  func.func @transform_24(%arg0: i32) -> (i32, i32) {
    %c0_i32 = arith.constant 0 : i32
    %c0_i32_0 = arith.constant 0 : i32
    %c0_i32_1 = arith.constant 0 : i32
    return %c0_i32, %c0_i32_0 : i32, i32
  }
  func.func @transform_25(%arg0: i32) -> (i32, i32) {
    %c0_i32 = arith.constant 0 : i32
    %c0_i32_0 = arith.constant 0 : i32
    %c0_i32_1 = arith.constant 0 : i32
    return %c0_i32, %c0_i32_0 : i32, i32
  }
  func.func @transform_26(%arg0: i32) -> (i32, i32) {
    %c0_i32 = arith.constant 0 : i32
    %c0_i32_0 = arith.constant 0 : i32
    %c0_i32_1 = arith.constant 0 : i32
    return %c0_i32, %c0_i32_0 : i32, i32
  }
  func.func @transform_27(%arg0: i32) -> (i32, i32) {
    %c0_i32 = arith.constant 0 : i32
    %c0_i32_0 = arith.constant 0 : i32
    %c0_i32_1 = arith.constant 0 : i32
    return %c0_i32, %c0_i32_0 : i32, i32
  }
  func.func @transform_28(%arg0: i32) -> (i32, i32) {
    %c0_i32 = arith.constant 0 : i32
    %c0_i32_0 = arith.constant 0 : i32
    %c0_i32_1 = arith.constant 0 : i32
    return %c0_i32, %c0_i32_0 : i32, i32
  }
  func.func @transform_29(%arg0: i32) -> (i32, i32) {
    %c0_i32 = arith.constant 0 : i32
    %c0_i32_0 = arith.constant 0 : i32
    %c0_i32_1 = arith.constant 0 : i32
    return %c0_i32, %c0_i32_0 : i32, i32
  }
  func.func @transform_30(%arg0: i32) -> (i32, i32) {
    %c0_i32 = arith.constant 0 : i32
    %c0_i32_0 = arith.constant 0 : i32
    %c0_i32_1 = arith.constant 0 : i32
    return %c0_i32, %c0_i32_0 : i32, i32
  }
  func.func @transform_31(%arg0: i32) -> (i32, i32) {
    %c0_i32 = arith.constant 0 : i32
    %c0_i32_0 = arith.constant 0 : i32
    %c0_i32_1 = arith.constant 0 : i32
    return %c0_i32, %c0_i32_0 : i32, i32
  }
  func.func @transform_32(%arg0: i32) -> (i32, i32) {
    %c0_i32 = arith.constant 0 : i32
    %c0_i32_0 = arith.constant 0 : i32
    %c0_i32_1 = arith.constant 0 : i32
    return %c0_i32, %c0_i32_0 : i32, i32
  }
  func.func @transform_33(%arg0: i32) -> (i32, i32, i32) {
    %c0_i32 = arith.constant 0 : i32
    %c0_i32_0 = arith.constant 0 : i32
    %c0_i32_1 = arith.constant 0 : i32
    return %arg0, %c0_i32, %c0_i32_0 : i32, i32, i32
  }
}

</mosaic_0001>

<bundles_post_ra>
// kernel: tpu_custom_call.1
= control target key start
LH: loop header
LB: loop body
LE: loop exit
PB: predicated region body
PF: predicated region fallthrough
CT: control target
= control target key end

     0   :  { %s5161_s6 = smov 1   ;;  %s5162_s10 = smov 2   ;;  %s6049_s0 = inlined_call_operand.smem [shape: u32[34], index: -1, kind: input, shape index: {}] }
   0x1   :  { %s5244_s5 = sld [smem:[%s6049_s0]]   ;;  %s5163_s14 = smov 3  }
   0x2   :  { %s5249_s9 = sld [smem:[%s6049_s0 + %s5161_s6]]   ;;  %s5164_s18 = smov 4  }
   0x3   :  { %s5254_s13 = sld [smem:[%s6049_s0 + %s5162_s10]]   ;;  %s5165_s22 = smov 5  }
   0x4   :  { %s5259_s17 = sld [smem:[%s6049_s0 + %s5163_s14]]   ;;  %s5166_s26 = smov 6  }
   0x5   :  { %s5264_s21 = sld [smem:[%s6049_s0 + %s5164_s18]]   ;;  %s5167_s30 = smov 7  }
   0x6   :  { %s5269_s25 = sld [smem:[%s6049_s0 + %s5165_s22]]   ;;  %s5168_s4 = smov 8  }
   0x7   :  { %6066 = sst [smem:[#allocation55_spill]] %s5244_s5  ;;  %s5169_s10 = smov 9  }
   0x8   :  { %6067 = sst [smem:[#allocation56_spill]] %s5249_s9  ;;  %s5170_s15 = smov 10  }
   0x9   :  { %6068 = sst [smem:[#allocation57_spill]] %s5254_s13  ;;  %s5171_s20 = smov 11  }
   0xa   :  { %6069 = sst [smem:[#allocation58_spill]] %s5259_s17  ;;  %s5173_s1 = smov 13  }
   0xb   :  { %6070 = sst [smem:[#allocation59_spill]] %s5264_s21  ;;  %s5174_s7 = smov 14  }
   0xc   :  { %s5274_s29 = sld [smem:[%s6049_s0 + %s5166_s26]]   ;;  %s5172_s26 = smov 12  }
   0xd   :  { %s5279_s3 = sld [smem:[%s6049_s0 + %s5167_s30]]   ;;  %s5176_s22 = smov 16  }
   0xe   :  { %s5284_s8 = sld [smem:[%s6049_s0 + %s5168_s4]]   ;;  %s5177_s28 = smov 17  }
   0xf   :  { %s5289_s14 = sld [smem:[%s6049_s0 + %s5169_s10]]  }
  0x10   :  { %s5294_s19 = sld [smem:[%s6049_s0 + %s5170_s15]]   ;;  %s5175_s15 = smov 15  }
  0x11   :  { %s5299_s24 = sld [smem:[%s6049_s0 + %s5171_s20]]  }
  0x12   :  { %s5304_s30 = sld [smem:[%s6049_s0 + %s5172_s26]]  }
  0x13   :  { %6071 = sst [smem:[#allocation60_spill]] %s5279_s3 }
  0x14   :  { %6072 = sst [smem:[#allocation61_spill]] %s5284_s8 }
  0x15   :  { %6073 = sst [smem:[#allocation62_spill]] %s5289_s14 }
  0x16   :  { %6074 = sst [smem:[#allocation63_spill]] %s5294_s19 }
  0x17   :  { %s5309_s6 = sld [smem:[%s6049_s0 + %s5173_s1]]  }
  0x18   :  { %s5314_s12 = sld [smem:[%s6049_s0 + %s5174_s7]]   ;;  %s5178_s7 = smov 18  }
  0x19   :  { %s5319_s20 = sld [smem:[%s6049_s0 + %s5175_s15]]   ;;  %s5179_s15 = smov 19  }
  0x1a   :  { %s5324_s27 = sld [smem:[%s6049_s0 + %s5176_s22]]   ;;  %s5180_s22 = smov 20  }
  0x1b   :  { %s5329_s4 = sld [smem:[%s6049_s0 + %s5177_s28]]   ;;  %s5181_s28 = smov 21  }
  0x1c   :  { %s5334_s13 = sld [smem:[%s6049_s0 + %s5178_s7]]   ;;  %s5182_s7 = smov 22  }
  0x1d   :  { %6075 = sst [smem:[#allocation64_spill]] %s5309_s6 }
  0x1e   :  { %6076 = sst [smem:[#allocation65_spill]] %s5314_s12 }
  0x1f   :  { %6077 = sst [smem:[#allocation66_spill]] %s5319_s20 }
  0x20   :  { %6078 = sst [smem:[#allocation67_spill]] %s5324_s27 }
  0x21   :  { %6079 = sst [smem:[#allocation68_spill]] %s5329_s4 }
  0x22   :  { %6080 = sst [smem:[#allocation69_spill]] %s5334_s13 }
  0x23   :  { %s5339_s9 = sld [smem:[%s6049_s0 + %s5179_s15]]   ;;  %s5183_s15 = smov 23  }
  0x24   :  { %s5344_s14 = sld [smem:[%s6049_s0 + %s5180_s22]]   ;;  %s5184_s22 = smov 24  }
  0x25   :  { %s5349_s5 = sld [smem:[%s6049_s0 + %s5181_s28]]   ;;  %s5185_s28 = smov 25  }
  0x26   :  { %s5354_s21 = sld [smem:[%s6049_s0 + %s5182_s7]]   ;;  %s5186_s7 = smov 26  }
  0x27   :  { %s5359_s17 = sld [smem:[%s6049_s0 + %s5183_s15]]   ;;  %s5187_s15 = smov 27  }
  0x28   :  { %s5374_s13 = sld [smem:[%s6049_s0 + %s5186_s7]]   ;;  %s5190_s7 = smov 30  }
  0x29   :  { %6081 = sst [smem:[#allocation70_spill]] %s5339_s9 }
  0x2a   :  { %6082 = sst [smem:[#allocation71_spill]] %s5344_s14 }
  0x2b   :  { %6083 = sst [smem:[#allocation72_spill]] %s5349_s5 }
  0x2c   :  { %s5364_s14 = sld [smem:[%s6049_s0 + %s5184_s22]]   ;;  %s5188_s22 = smov 28  }
  0x2d   :  { %6084 = sst [smem:[#allocation73_spill]] %s5359_s17 }
  0x2e   :  { %s5369_s5 = sld [smem:[%s6049_s0 + %s5185_s28]]   ;;  %s5189_s28 = smov 29  }
  0x2f   :  { %6087 = sst [smem:[#allocation76_spill]] %s5374_s13 }
  0x30   :  { %s5379_s17 = sld [smem:[%s6049_s0 + %s5187_s15]]   ;;  %s5191_s15 = smov 31  }
  0x31   :  { %s5384_s27 = sld [smem:[%s6049_s0 + %s5188_s22]]   ;;  %s5192_s22 = smov 32  }
  0x32   :  { %6085 = sst [smem:[#allocation74_spill]] %s5364_s14 }
  0x33   :  { %s5394_s13 = sld [smem:[%s6049_s0 + %s5190_s7]]  }
  0x34   :  { %6086 = sst [smem:[#allocation75_spill]] %s5369_s5 }
  0x35   :  { %s5389_s5 = sld [smem:[%s6049_s0 + %s5189_s28]]   ;;  %s5193_s28 = smov 33  }
  0x36   :  { %6088 = sst [smem:[#allocation77_spill]] %s5379_s17 }
  0x37   :  { %6089 = sst [smem:[#allocation78_spill]] %s5384_s27 }
  0x38   :  { %s5399_s17 = sld [smem:[%s6049_s0 + %s5191_s15]]  }
  0x39   :  { %6091 = sst [smem:[#allocation80_spill]] %s5394_s13 }
  0x3a   :  { %s5404_s27 = sld [smem:[%s6049_s0 + %s5192_s22]]  }
  0x3b   :  { %6090 = sst [smem:[#allocation79_spill]] %s5389_s5 }
  0x3c   :  { %s5409_s5 = sld [smem:[%s6049_s0 + %s5193_s28]]  }
  0x3e   :  { %6092 = sst [smem:[#allocation81_spill]] %s5399_s17 }
  0x40   :  { %6093 = sst [smem:[#allocation82_spill]] %s5404_s27 }
  0x42   :  { %6094 = sst [smem:[#allocation83_spill]] %s5409_s5 }
  0x43   :  { %72 = vsyncpa [#allocation6], 0 }
  0x44   :  { %74 = vsyncpa [#allocation6 + $0x1], 0 }
  0x45   :  { %75 = vsyncpa [#allocation9], 0 }
  0x46   :  { %77 = vsyncpa [#allocation9 + $0x1], 0 }
  0x47   :  { %78 = vsyncpa [#allocation12], 0 }
  0x48   :  { %79 = vsyncpa [#allocation15], 0 }
  0x49   :  { %80 = vsyncpa [#allocation18], 0 }
  0x4a   :  { %81 = vsyncpa [#allocation21], 0 }
  0x4b   :  { %82 = vsyncpa [#allocation24], 0 }
  0x4c   :  { %83 = vsyncpa [#allocation27], 0 }
  0x4d   :  { %84 = vsyncpa [#allocation30], 0 }
  0x4e   :  { %85 = vsyncpa [#allocation33], 0 }
  0x4f   :  { %86 = vsyncpa [#allocation36], 0 }
  0x50   :  { %87 = vsyncpa [#allocation39], 0 }
  0x51   :  { %88 = vsyncpa [#allocation7], 0 }
  0x52   :  { %90 = vsyncpa [#allocation7 + $0x1], 0  ;;  %s5411_s7 = smov 0   ;;  %s5413_s0 = smov 0  }
  0x53   :  { %s5415_s10 = smov 0   ;;  %s5417_s11 = smov 0  }
  0x54 LB: > { %s5194_s15 = smov [#allocation10]   ;;  %s5432_s18 = sadd.s32 4294967295, %s5159_s11   ;;  %s5159_s11 = sphi %s5417_s11, %s6166_s11   ;;  %s5155_s10 = sphi %s5415_s10, %s6165_s10   ;;  %s5151_s0 = sphi %s5413_s0, %s6164_s0   ;;  %s5147_s7 = sphi %s5411_s7, %s6163_s7  }
  0x55   : > { %s857_s16 = sshll.u32 %s5194_s15, 4  ;;  %p3693_p0 = scmp.ge.s32.totalorder %s5159_s11, 1  ;;  %s858_s16 = int_to_ptr.vmem [resolvable:$true] %s857_s16 }
  0x56   : > { %p6060_p1 = scmp.eq.s32.totalorder %s5432_s18, 0  ;;  %p845_p2 = scmp.lt.s32.totalorder %s5159_s11, 3 }
  0x57   : > { %s5195_s23 = smov [#allocation11]   ;;  %s5196_s1 = smov [#allocation14]  }
  0x58   : > { %p5437_p3 = pnand %p3693_p0, %p845_p2  ;;  %s871_s26 = sshll.u32 %s5195_s23, 4  ;;  %s872_s26 = int_to_ptr.vmem [resolvable:$true] %s871_s26 }
  0x59   : > { %s895_s2 = sshll.u32 %s5196_s1, 4  ;;  %s4482_s5 = scalar_lea.vmem %s858_s16, 256  ;;  %s5450_s2 = int_to_ptr.vmem [resolvable:$true] %s895_s2 }
  0x5a   : > { %s6095_s22 = scalar_select %p5437_p3, 1, 0 }
  0x5b   : > { %p4179_p5 = pneg %p5437_p3  ;;  %p4483_p8 = scmp.ne.s32.totalorder %s858_s16, %s4482_s5 }
  0x5c   : > { %p4490_p11 = scmp.lt.s32.totalorder %s858_s16, %s858_s16  ;;  %p4491_p12 = scmp.lt.s32.totalorder %s4482_s5, %s4482_s5 }
  0x5d   : > { %p5446_p6 = pnand %p4179_p5, %p6060_p1 }
  0x5e   : > { %p4492_p13 = por %p4491_p12, %p4490_p11 }
  0x5f   : > { %p5454_p7 = pneg %p5446_p6 }
  0x61   : > { %p4485_p9 = pnand %p4483_p8, %p5454_p7 }
  0x63   : > { %p4486_p10 = pneg %p4485_p9 }
  0x65   : > { %p4493_p0 = pnand %p4492_p13, %p4486_p10 }
  0x67   : > { %4496 = shalt.err (!%p4493_p0)
}
  0x68   : > { %s6056_s23 = smov 64   ;;  %s6058_s1 = smov 4  }
  0x69   : > { %4182 = dma.hbm_to_vmem [thread:$0]  (!%p5446_p6), %s5269_s25, 256, %s858_s16, [#allocation9], %s6056_s23, %s6056_s23, %s6058_s1  }
  0x6a   : > { %s4508_s27 = scalar_lea.vmem %s872_s26, 16  ;;  %s4515_s17 = scalar_lea.vmem %s872_s26, 32 }
  0x6b   : > { %p4509_p2 = scmp.ne.s32.totalorder %s872_s26, %s4508_s27  ;;  %p4516_p9 = scmp.lt.s32.totalorder %s872_s26, %s872_s26 }
  0x6c   : > { %p4517_p11 = scmp.lt.s32.totalorder %s4515_s17, %s4508_s27 }
  0x6d   : > { %p4511_p5 = pnand %p4509_p2, %p5454_p7 }
  0x6e   : > { %p4518_p10 = por %p4517_p11, %p4516_p9 }
  0x6f   : > { %p4512_p8 = pneg %p4511_p5 }
  0x71   : > { %p4519_p12 = pnand %p4518_p10, %p4512_p8 }
  0x73   : > { %4522 = shalt.err (!%p4519_p12)
}
  0x74   : > { %4185 = dma.hbm_to_vmem [thread:$0]  (!%p5446_p6), %s5274_s29, 16, %s872_s26, [#allocation12]  }
  0x75   : > { %s4534_s5 = scalar_lea.vmem %s5450_s2, 16  ;;  %s4541_s16 = scalar_lea.vmem %s5450_s2, 32 }
  0x76   : > { %p4535_p13 = scmp.ne.s32.totalorder %s5450_s2, %s4534_s5  ;;  %p4542_p5 = scmp.lt.s32.totalorder %s5450_s2, %s5450_s2 }
  0x77   : > { %p4543_p9 = scmp.lt.s32.totalorder %s4541_s16, %s4534_s5 }
  0x78   : > { %p4537_p0 = pnand %p4535_p13, %p5454_p7 }
  0x79   : > { %p4544_p8 = por %p4543_p9, %p4542_p5 }
  0x7a   : > { %p4538_p2 = pneg %p4537_p0 }
  0x7c   : > { %p4545_p11 = pnand %p4544_p8, %p4538_p2 }
  0x7e   : > { %4548 = shalt.err (!%p4545_p11)
}
  0x7f   : > { %s6098_s8 = sld [smem:[#allocation61_spill]]  ;;  %s5199_s17 = smov [#allocation17]  }
  0x80   : > { %s920_s27 = sshll.u32 %s5199_s17, 4  ;;  %s5200_s26 = smov [#allocation20]   ;;  %s921_s27 = int_to_ptr.vmem [resolvable:$true] %s920_s27 }
  0x81   : > { %s941_s23 = sshll.u32 %s5200_s26, 4  ;;  %s4560_s1 = scalar_lea.vmem %s921_s27, 16  ;;  %s942_s23 = int_to_ptr.vmem [resolvable:$true] %s941_s23 }
  0x82   : > { %p4561_p10 = scmp.ne.s32.totalorder %s921_s27, %s4560_s1  ;;  %s4567_s5 = scalar_lea.vmem %s921_s27, 32 }
  0x83   : > { %p4568_p0 = scmp.lt.s32.totalorder %s921_s27, %s921_s27  ;;  %p4569_p2 = scmp.lt.s32.totalorder %s4567_s5, %s4560_s1 }
  0x84   : > { %p4563_p12 = pnand %p4561_p10, %p5454_p7 }
  0x85   : > { %4191 = dma.hbm_to_vmem [thread:$0]  (!%p5446_p6), %s6098_s8, 16, %s5450_s2, [#allocation15]  }
  0x86   : > { %p4564_p13 = pneg %p4563_p12  ;;  %p4570_p5 = por %p4569_p2, %p4568_p0 }
  0x88   : > { %p4571_p9 = pnand %p4570_p5, %p4564_p13 }
  0x8a   : > { %4574 = shalt.err (!%p4571_p9)
}
  0x8b   : > { %4197 = dma.hbm_to_vmem [thread:$0]  (!%p5446_p6), %s5299_s24, 16, %s921_s27, [#allocation18]  }
  0x8c   : > { %s4586_s2 = scalar_lea.vmem %s942_s23, 256  ;;  %p4594_p1 = scmp.lt.s32.totalorder %s942_s23, %s942_s23 }
  0x8d   : > { %p4587_p8 = scmp.ne.s32.totalorder %s942_s23, %s4586_s2  ;;  %p4595_p10 = scmp.lt.s32.totalorder %s4586_s2, %s4586_s2 }
  0x8f   : > { %p4589_p11 = pnand %p4587_p8, %p5454_p7  ;;  %p4596_p12 = por %p4595_p10, %p4594_p1 }
  0x91   : > { %p4590_p4 = pneg %p4589_p11 }
  0x93   : > { %p4597_p3 = pnand %p4596_p12, %p4590_p4 }
  0x95   : > { %4600 = shalt.err (!%p4597_p3)
}
  0x96   : > { %s6099_s1 = smov 4   ;;  %s6100_s16 = smov 64  }
  0x97   : > { %s6101_s6 = sld [smem:[#allocation64_spill]]  ;;  %s5201_s17 = smov [#allocation23]  }
  0x98   : > { %s965_s27 = sshll.u32 %s5201_s17, 4  ;;  %s5202_s26 = smov [#allocation26]   ;;  %s966_s27 = int_to_ptr.vmem [resolvable:$true] %s965_s27 }
  0x99   : > { %s989_s5 = sshll.u32 %s5202_s26, 4  ;;  %s4612_s8 = scalar_lea.vmem %s966_s27, 256  ;;  %s990_s5 = int_to_ptr.vmem [resolvable:$true] %s989_s5 }
  0x9a   : > { %p4613_p13 = scmp.ne.s32.totalorder %s966_s27, %s4612_s8  ;;  %p4620_p4 = scmp.lt.s32.totalorder %s966_s27, %s966_s27 }
  0x9b   : > { %p4621_p3 = scmp.lt.s32.totalorder %s4612_s8, %s4612_s8 }
  0x9c   : > { %p4615_p0 = pnand %p4613_p13, %p5454_p7 }
  0x9d   : > { %4203 = dma.hbm_to_vmem [thread:$0]  (!%p5446_p6), %s6101_s6, 256, %s942_s23, [#allocation21], %s6100_s16, %s6100_s16, %s6099_s1  }
  0x9e   : > { %p4616_p1 = pneg %p4615_p0  ;;  %p4622_p2 = por %p4621_p3, %p4620_p4 }
  0xa0   : > { %p4623_p5 = pnand %p4622_p2, %p4616_p1 }
  0xa2   : > { %4626 = shalt.err (!%p4623_p5)
}
  0xa3   : > { %s6102_s20 = sld [smem:[#allocation66_spill]]  ;;  %s4638_s23 = scalar_lea.vmem %s990_s5, 256 }
  0xa4   : > { %p4639_p9 = scmp.ne.s32.totalorder %s990_s5, %s4638_s23  ;;  %p4646_p10 = scmp.lt.s32.totalorder %s990_s5, %s990_s5 }
  0xa5   : > { %p4647_p12 = scmp.lt.s32.totalorder %s4638_s23, %s4638_s23 }
  0xa6   : > { %p4641_p8 = pnand %p4639_p9, %p5454_p7 }
  0xa7   : > { %p4648_p13 = por %p4647_p12, %p4646_p10 }
  0xa8   : > { %p4642_p11 = pneg %p4641_p8 }
  0xa9   : > { %4209 = dma.hbm_to_vmem [thread:$0]  (!%p5446_p6), %s6102_s20, 256, %s966_s27, [#allocation24], %s6100_s16, %s6100_s16, %s6099_s1  }
  0xaa   : > { %p4649_p0 = pnand %p4648_p13, %p4642_p11 }
  0xac   : > { %4652 = shalt.err (!%p4649_p0)
}
  0xad   : > { %s6103_s4 = sld [smem:[#allocation68_spill]]  ;;  %s5203_s8 = smov [#allocation29]  }
  0xae   : > { %s1013_s2 = sshll.u32 %s5203_s8, 4  ;;  %s5204_s17 = smov [#allocation32]   ;;  %s1014_s2 = int_to_ptr.vmem [resolvable:$true] %s1013_s2 }
  0xaf   : > { %s1043_s27 = sshll.u32 %s5204_s17, 4  ;;  %s4664_s26 = scalar_lea.vmem %s1014_s2, 256  ;;  %s1044_s27 = int_to_ptr.vmem [resolvable:$true] %s1043_s27 }
  0xb0   : > { %p4665_p1 = scmp.ne.s32.totalorder %s1014_s2, %s4664_s26  ;;  %p4672_p2 = scmp.lt.s32.totalorder %s1014_s2, %s1014_s2 }
  0xb1   : > { %p4673_p5 = scmp.lt.s32.totalorder %s4664_s26, %s4664_s26 }
  0xb2   : > { %p4667_p4 = pnand %p4665_p1, %p5454_p7 }
  0xb3   : > { %4215 = dma.hbm_to_vmem [thread:$0]  (!%p5446_p6), %s6103_s4, 256, %s990_s5, [#allocation27], %s6100_s16, %s6100_s16, %s6099_s1  }
  0xb4   : > { %p4668_p3 = pneg %p4667_p4  ;;  %p4674_p9 = por %p4673_p5, %p4672_p2 }
  0xb6   : > { %p4675_p8 = pnand %p4674_p9, %p4668_p3 }
  0xb8   : > { %4678 = shalt.err (!%p4675_p8)
}
  0xb9   : > { %s6104_s9 = sld [smem:[#allocation70_spill]]  ;;  %s4690_s5 = scalar_lea.vmem %s1044_s27, 16 }
  0xba   : > { %p4691_p11 = scmp.ne.s32.totalorder %s1044_s27, %s4690_s5  ;;  %s4697_s23 = scalar_lea.vmem %s1044_s27, 32 }
  0xbb   : > { %p4698_p13 = scmp.lt.s32.totalorder %s1044_s27, %s1044_s27  ;;  %p4699_p0 = scmp.lt.s32.totalorder %s4697_s23, %s4690_s5 }
  0xbc   : > { %p4693_p10 = pnand %p4691_p11, %p5454_p7 }
  0xbd   : > { %p4700_p1 = por %p4699_p0, %p4698_p13 }
  0xbe   : > { %p4694_p12 = pneg %p4693_p10 }
  0xbf   : > { %4221 = dma.hbm_to_vmem [thread:$0]  (!%p5446_p6), %s6104_s9, 256, %s1014_s2, [#allocation30], %s6100_s16, %s6100_s16, %s6099_s1  }
  0xc0   : > { %p4701_p4 = pnand %p4700_p1, %p4694_p12 }
  0xc2   : > { %4704 = shalt.err (!%p4701_p4)
}
  0xc3   : > { %4227 = dma.hbm_to_vmem [thread:$0]  (!%p5446_p6), %s5354_s21, 16, %s1044_s27, [#allocation33]  }
  0xc4   : > { %s5205_s8 = smov [#allocation35]   ;;  %s5206_s2 = smov [#allocation13]  }
  0xc5   : > { %s1067_s17 = sshll.u32 %s5205_s8, 4  ;;  %s881_s26 = sshll.u32 %s5206_s2, 4  ;;  %s1068_s17 = int_to_ptr.vmem [resolvable:$true] %s1067_s17  ;;  %s882_s26 = int_to_ptr.vmem [resolvable:$true] %s881_s26 }
  0xc6   : > { %s4716_s4 = scalar_lea.vmem %s1068_s17, 16  ;;  %s4723_s6 = scalar_lea.vmem %s1068_s17, 32 }
  0xc7   : > { %p4717_p3 = scmp.ne.s32.totalorder %s1068_s17, %s4716_s4  ;;  %p4724_p9 = scmp.lt.s32.totalorder %s1068_s17, %s1068_s17 }
  0xc8   : > { %p4725_p8 = scmp.lt.s32.totalorder %s4723_s6, %s4716_s4 }
  0xc9   : > { %p4719_p2 = pnand %p4717_p3, %p5454_p7 }
  0xca   : > { %p4726_p11 = por %p4725_p8, %p4724_p9 }
  0xcb   : > { %p4720_p5 = pneg %p4719_p2 }
  0xcd   : > { %p4727_p10 = pnand %p4726_p11, %p4720_p5 }
  0xcf   : > { %4730 = shalt.err (!%p4727_p10)
}
  0xd0   : > { %s6105_s14 = sld [smem:[#allocation74_spill]]  ;;  %s4742_s27 = scalar_lea.vmem %s882_s26, 256 }
  0xd1   : > { %p4743_p12 = scmp.ne.s32.totalorder %s882_s26, %s4742_s27  ;;  %p4750_p1 = scmp.lt.s32.totalorder %s882_s26, %s882_s26 }
  0xd2   : > { %p4751_p4 = scmp.lt.s32.totalorder %s4742_s27, %s4742_s27 }
  0xd3   : > { %p4745_p13 = pnand %p4743_p12, %p5454_p7 }
  0xd4   : > { %p4752_p3 = por %p4751_p4, %p4750_p1 }
  0xd5   : > { %p4746_p0 = pneg %p4745_p13 }
  0xd6   : > { %4233 = dma.hbm_to_vmem [thread:$0]  (!%p5446_p6), %s6105_s14, 16, %s1068_s17, [#allocation36]  }
  0xd7   : > { %p4753_p2 = pnand %p4752_p3, %p4746_p0 }
  0xd9   : > { %4756 = shalt.err (!%p4753_p2)
}
  0xda   : > { %s6106_s3 = sld [smem:[#allocation60_spill]]  ;;  %s5207_s6 = smov [#allocation16]  }
  0xdb   : > { %s909_s4 = sshll.u32 %s5207_s6, 4  ;;  %s5208_s5 = smov [#allocation19]   ;;  %s910_s4 = int_to_ptr.vmem [resolvable:$true] %s909_s4 }
  0xdc   : > { %s931_s23 = sshll.u32 %s5208_s5, 4  ;;  %s4768_s8 = scalar_lea.vmem %s910_s4, 16  ;;  %s932_s23 = int_to_ptr.vmem [resolvable:$true] %s931_s23 }
  0xdd   : > { %p4769_p5 = scmp.ne.s32.totalorder %s910_s4, %s4768_s8  ;;  %s4775_s17 = scalar_lea.vmem %s910_s4, 32 }
  0xde   : > { %p4776_p11 = scmp.lt.s32.totalorder %s910_s4, %s910_s4  ;;  %p4777_p10 = scmp.lt.s32.totalorder %s4775_s17, %s4768_s8 }
  0xdf   : > { %p4771_p9 = pnand %p4769_p5, %p5454_p7 }
  0xe0   : > { %4188 = dma.hbm_to_vmem [thread:$0]  (!%p5446_p6), %s6106_s3, 256, %s882_s26, [#allocation12], %s6100_s16, %s6100_s16, %s6099_s1  }
  0xe1   : > { %p4772_p8 = pneg %p4771_p9  ;;  %p4778_p12 = por %p4777_p10, %p4776_p11 }
  0xe3   : > { %p4779_p13 = pnand %p4778_p12, %p4772_p8 }
  0xe5   : > { %4782 = shalt.err (!%p4779_p13)
}
  0xe6   : > { %s6107_s19 = sld [smem:[#allocation63_spill]]  ;;  %s4794_s2 = scalar_lea.vmem %s932_s23, 16 }
  0xe7   : > { %p4795_p0 = scmp.ne.s32.totalorder %s932_s23, %s4794_s2  ;;  %s4801_s26 = scalar_lea.vmem %s932_s23, 32 }
  0xe8   : > { %p4802_p3 = scmp.lt.s32.totalorder %s932_s23, %s932_s23  ;;  %p4803_p2 = scmp.lt.s32.totalorder %s4801_s26, %s4794_s2 }
  0xe9   : > { %p4797_p1 = pnand %p4795_p0, %p5454_p7 }
  0xea   : > { %p4804_p5 = por %p4803_p2, %p4802_p3 }
  0xeb   : > { %p4798_p4 = pneg %p4797_p1 }
  0xec   : > { %4194 = dma.hbm_to_vmem [thread:$0]  (!%p5446_p6), %s6107_s19, 16, %s910_s4, [#allocation15]  }
  0xed   : > { %p4805_p9 = pnand %p4804_p5, %p4798_p4 }
  0xef   : > { %4808 = shalt.err (!%p4805_p9)
}
  0xf0   : > { %4200 = dma.hbm_to_vmem [thread:$0]  (!%p5446_p6), %s5304_s30, 16, %s932_s23, [#allocation18]  }
  0xf1   : > { %s5209_s27 = smov [#allocation22]   ;;  %s5210_s4 = smov [#allocation25]  }
  0xf2   : > { %s955_s6 = sshll.u32 %s5209_s27, 4  ;;  %s979_s5 = sshll.u32 %s5210_s4, 4  ;;  %s956_s6 = int_to_ptr.vmem [resolvable:$true] %s955_s6  ;;  %s980_s5 = int_to_ptr.vmem [resolvable:$true] %s979_s5 }
  0xf3   : > { %s4820_s8 = scalar_lea.vmem %s956_s6, 16  ;;  %s4827_s17 = scalar_lea.vmem %s956_s6, 32 }
  0xf4   : > { %p4821_p8 = scmp.ne.s32.totalorder %s956_s6, %s4820_s8  ;;  %p4828_p12 = scmp.lt.s32.totalorder %s956_s6, %s956_s6 }
  0xf5   : > { %p4829_p13 = scmp.lt.s32.totalorder %s4827_s17, %s4820_s8 }
  0xf6   : > { %p4823_p11 = pnand %p4821_p8, %p5454_p7 }
  0xf7   : > { %p4830_p0 = por %p4829_p13, %p4828_p12 }
  0xf8   : > { %p4824_p10 = pneg %p4823_p11 }
  0xfa   : > { %p4831_p1 = pnand %p4830_p0, %p4824_p10 }
  0xfc   : > { %4834 = shalt.err (!%p4831_p1)
}
  0xfd   : > { %s6108_s12 = sld [smem:[#allocation65_spill]]  ;;  %s4846_s23 = scalar_lea.vmem %s980_s5, 16 }
  0xfe   : > { %p4847_p4 = scmp.ne.s32.totalorder %s980_s5, %s4846_s23  ;;  %s4853_s2 = scalar_lea.vmem %s980_s5, 32 }
  0xff   : > { %p4854_p5 = scmp.lt.s32.totalorder %s980_s5, %s980_s5  ;;  %p4855_p9 = scmp.lt.s32.totalorder %s4853_s2, %s4846_s23 }
 0x100   : > { %p4849_p3 = pnand %p4847_p4, %p5454_p7 }
 0x101   : > { %p4856_p8 = por %p4855_p9, %p4854_p5 }
 0x102   : > { %p4850_p2 = pneg %p4849_p3 }
 0x103   : > { %4206 = dma.hbm_to_vmem [thread:$0]  (!%p5446_p6), %s6108_s12, 16, %s956_s6, [#allocation21]  }
 0x104   : > { %p4857_p11 = pnand %p4856_p8, %p4850_p2 }
 0x106   : > { %4860 = shalt.err (!%p4857_p11)
}
 0x107   : > { %s6109_s26 = sld [smem:[#allocation67_spill]]  ;;  %s5211_s27 = smov [#allocation28]  }
 0x108   : > { %s1003_s4 = sshll.u32 %s5211_s27, 4  ;;  %s5212_s6 = smov [#allocation31]   ;;  %s1004_s4 = int_to_ptr.vmem [resolvable:$true] %s1003_s4 }
 0x109   : > { %s1029_s8 = sshll.u32 %s5212_s6, 4  ;;  %s4872_s17 = scalar_lea.vmem %s1004_s4, 16  ;;  %s1030_s8 = int_to_ptr.vmem [resolvable:$true] %s1029_s8 }
 0x10a   : > { %p4873_p10 = scmp.ne.s32.totalorder %s1004_s4, %s4872_s17  ;;  %s4879_s3 = scalar_lea.vmem %s1004_s4, 32 }
 0x10b   : > { %p4880_p0 = scmp.lt.s32.totalorder %s1004_s4, %s1004_s4  ;;  %p4881_p1 = scmp.lt.s32.totalorder %s4879_s3, %s4872_s17 }
 0x10c   : > { %p4875_p12 = pnand %p4873_p10, %p5454_p7 }
 0x10d   : > { %4212 = dma.hbm_to_vmem [thread:$0]  (!%p5446_p6), %s6109_s26, 16, %s980_s5, [#allocation24]  }
 0x10e   : > { %p4876_p13 = pneg %p4875_p12  ;;  %p4882_p4 = por %p4881_p1, %p4880_p0 }
 0x110   : > { %p4883_p3 = pnand %p4882_p4, %p4876_p13 }
 0x112   : > { %4886 = shalt.err (!%p4883_p3)
}
 0x113   : > { %s6110_s23 = sld [smem:[#allocation69_spill]]  ;;  %s4898_s5 = scalar_lea.vmem %s1030_s8, 256 }
 0x114   : > { %p4899_p2 = scmp.ne.s32.totalorder %s1030_s8, %s4898_s5  ;;  %p4906_p8 = scmp.lt.s32.totalorder %s1030_s8, %s1030_s8 }
 0x115   : > { %p4907_p11 = scmp.lt.s32.totalorder %s4898_s5, %s4898_s5 }
 0x116   : > { %p4901_p5 = pnand %p4899_p2, %p5454_p7 }
 0x117   : > { %p4908_p10 = por %p4907_p11, %p4906_p8 }
 0x118   : > { %p4902_p9 = pneg %p4901_p5 }
 0x119   : > { %4218 = dma.hbm_to_vmem [thread:$0]  (!%p5446_p6), %s6110_s23, 16, %s1004_s4, [#allocation27]  }
 0x11a   : > { %p4909_p12 = pnand %p4908_p10, %p4902_p9 }
 0x11c   : > { %4912 = shalt.err (!%p4909_p12)
}
 0x11d   : > { %s6111_s3 = sld [smem:[#allocation72_spill]]  ;;  %s5213_s2 = smov [#allocation34]  }
 0x11e   : > { %s1053_s26 = sshll.u32 %s5213_s2, 4  ;;  %s5214_s27 = smov [#allocation37]   ;;  %s1054_s26 = int_to_ptr.vmem [resolvable:$true] %s1053_s26 }
 0x11f   : > { %s1078_s4 = sshll.u32 %s5214_s27, 4  ;;  %s4924_s6 = scalar_lea.vmem %s1054_s26, 256  ;;  %s1079_s4 = int_to_ptr.vmem [resolvable:$true] %s1078_s4 }
 0x120   : > { %p4925_p13 = scmp.ne.s32.totalorder %s1054_s26, %s4924_s6  ;;  %p4932_p4 = scmp.lt.s32.totalorder %s1054_s26, %s1054_s26 }
 0x121   : > { %p4933_p3 = scmp.lt.s32.totalorder %s4924_s6, %s4924_s6 }
 0x122   : > { %p4927_p0 = pnand %p4925_p13, %p5454_p7 }
 0x123   : > { %4224 = dma.hbm_to_vmem [thread:$0]  (!%p5446_p6), %s6111_s3, 256, %s1030_s8, [#allocation30], %s6100_s16, %s6100_s16, %s6099_s1  }
 0x124   : > { %p4928_p1 = pneg %p4927_p0  ;;  %p4934_p2 = por %p4933_p3, %p4932_p4 }
 0x126   : > { %p4935_p5 = pnand %p4934_p2, %p4928_p1 }
 0x128   : > { %4938 = shalt.err (!%p4935_p5)
}
 0x129   : > { %s6112_s8 = sld [smem:[#allocation73_spill]]  ;;  %s4950_s17 = scalar_lea.vmem %s1079_s4, 16 }
 0x12a   : > { %p4951_p9 = scmp.ne.s32.totalorder %s1079_s4, %s4950_s17  ;;  %s4957_s23 = scalar_lea.vmem %s1079_s4, 32 }
 0x12b   : > { %p4958_p10 = scmp.lt.s32.totalorder %s1079_s4, %s1079_s4  ;;  %p4959_p12 = scmp.lt.s32.totalorder %s4957_s23, %s4950_s17 }
 0x12c   : > { %p4953_p8 = pnand %p4951_p9, %p5454_p7 }
 0x12d   : > { %p4960_p13 = por %p4959_p12, %p4958_p10 }
 0x12e   : > { %p4954_p11 = pneg %p4953_p8 }
 0x12f   : > { %4230 = dma.hbm_to_vmem [thread:$0]  (!%p5446_p6), %s6112_s8, 256, %s1054_s26, [#allocation33], %s6100_s16, %s6100_s16, %s6099_s1  }
 0x130   : > { %p4961_p0 = pnand %p4960_p13, %p4954_p11 }
 0x132   : > { %4964 = shalt.err (!%p4961_p0)
}
 0x133   : > { %s6113_s5 = sld [smem:[#allocation75_spill]]  ;;  %s5215_s3 = smov [#allocation38]  }
 0x134   : > { %s1089_s2 = sshll.u32 %s5215_s3, 4  ;;  %s1090_s2 = int_to_ptr.vmem [resolvable:$true] %s1089_s2 }
 0x135   : > { %s4976_s1 = scalar_lea.vmem %s1090_s2, 16  ;;  %s4983_s16 = scalar_lea.vmem %s1090_s2, 32 }
 0x136   : > { %p4977_p1 = scmp.ne.s32.totalorder %s1090_s2, %s4976_s1  ;;  %p4984_p2 = scmp.lt.s32.totalorder %s1090_s2, %s1090_s2 }
 0x137   : > { %p4985_p5 = scmp.lt.s32.totalorder %s4983_s16, %s4976_s1 }
 0x138   : > { %p4979_p4 = pnand %p4977_p1, %p5454_p7 }
 0x139   : > { %4236 = dma.hbm_to_vmem [thread:$0]  (!%p5446_p6), %s6113_s5, 16, %s1079_s4, [#allocation36]  }
 0x13a   : > { %p4980_p3 = pneg %p4979_p4  ;;  %p4986_p9 = por %p4985_p5, %p4984_p2 }
 0x13c   : > { %p4987_p8 = pnand %p4986_p9, %p4980_p3 }
 0x13e   : > { %4990 = shalt.err (!%p4987_p8)
}
 0x13f   : > { %s6114_s26 = sld [smem:[#allocation76_spill]]  ;;  %s3692_s15 = sadd.s32 4294967294, %s5159_s11  }
 0x140   : > { %s5590_s27 = sadd.s32 1, %s5159_s11   ;;  %s181_s4 = sadd.s32 1, %s5155_s10 }
 0x141   : > { %s178_s28 = ssub.s32 %s5159_s11, %s5590_s27  ;;  %s6115_s6 = sld [smem:[#allocation58_spill]] }
 0x142   : > { %p179_p7 = scmp.eq.s32.totalorder %s178_s28, 0  ;;  %p188_p11 = scmp.ne.s32.totalorder %s5155_s10, %s5151_s0 }
 0x143   : > { %p189_p10 = scmp.eq.s32.totalorder %s5159_s11, 0  ;;  %p194_p12 = scmp.ne.s32.totalorder %s5151_s0, %s5147_s7 }
 0x144   : > { %s5601_s8 = scalar_select %p179_p7, %s5155_s10, %s181_s4  }
 0x145   : > { %4239 = dma.hbm_to_vmem [thread:$0]  (!%p5446_p6), %s6114_s26, 16, %s1090_s2, [#allocation39]  }
 0x146   : > { %s6116_s17 = sld [smem:[#allocation59_spill]]  ;;  %p5603_p13 = por %p189_p10, %p188_p11 }
 0x147   : > { %p6118_p6 = scmp.eq.s32.totalorder %s5432_s18, 0  ;;  %p832_p1 = scmp.eq.s32.totalorder %s5432_s18, 1 }
 0x148   : > { %p838_p4 = scmp.eq.s32.totalorder %s3692_s15, 1  ;;  %p4271_p3 = scmp.lt.s32.totalorder %s5159_s11, 2 }
 0x149   : > { %p5609_p0 = por %p6118_p6, %p194_p12  ;;  %s1141_s3 = sand.u32 1, %s5155_s10  }
 0x14a   : > { %p5616_p2 = por %p832_p1, %p188_p11  ;;  %p5620_p5 = por %p838_p4, %p194_p12 }
 0x14b   : > { %s6119_s5 = scalar_select %p5609_p0, 1, 0 }
 0x14c   : > { %s6120_s2 = scalar_select %p5616_p2, 1, 0 }
 0x14d   : > { %s6121_s1 = scalar_select %p5620_p5, 1, 0 }
 0x14e   : > { %s5624_s16 = sshll.u32 %s1141_s3, 2  ;;  %s3716_s26 = sshll.u32 %s5159_s11, 6 }
 0x14f   : > { %s5628_s28 = scalar_lea.hbm %s6115_s6, %s3716_s26  ;;  %s1145_s15 = scalar_lea.vmem [#allocation5], %s5624_s16 }
 0x150   : > { %s1152_s4 = sshll.u32 %s1145_s15, 4  ;;  %p5635_p9 = pnand %p4271_p3, %p5603_p13  ;;  %s5631_s4 = int_to_ptr.vmem [resolvable:$true] %s1152_s4 }
 0x151   : > { %s5640_s12 = scalar_lea.hbm %s6116_s17, %s3716_s26  ;;  %s1142_s19 = scalar_lea.sflag [#allocation6], %s1141_s3 }
 0x152   : > { %s4991_s20 = scalar_lea.hbm %s5628_s28, 64  ;;  %p4993_p7 = pneg %p5635_p9 }
 0x153   : > { %p4992_p8 = scmp.ne.s32.totalorder %s5628_s28, %s4991_s20  ;;  %s4996_s15 = scalar_lea.hbm %s6115_s6, 128 }
 0x154   : > { %p4997_p12 = scmp.lt.s32.totalorder %s5628_s28, %s6115_s6  ;;  %p4998_p13 = scmp.lt.s32.totalorder %s4996_s15, %s4991_s20 }
 0x155   : > { %p4994_p11 = pnand %p4993_p7, %p4992_p8 }
 0x156   : > { %p4999_p6 = por %p4998_p13, %p4997_p12 }
 0x157   : > { %p4995_p10 = pneg %p4994_p11 }
 0x159   : > { %p5000_p1 = pnand %p4999_p6, %p4995_p10 }
 0x15b   : > { %5003 = shalt.err (!%p5000_p1)
}
 0x15c   : > { %s5004_s23 = scalar_lea.vmem %s5631_s4, 64  ;;  %s5216_s3 = smov [#allocation5]  }
 0x15d   : > { %p5005_p4 = scmp.ne.s32.totalorder %s5631_s4, %s5004_s23  ;;  %s5009_s26 = sshll.u32 %s5216_s3, 4  ;;  %s5010_s26 = int_to_ptr.vmem [resolvable:$false] %s5009_s26 }
 0x15e   : > { %s5011_s14 = scalar_lea.vmem %s5010_s26, 128  ;;  %p5012_p8 = scmp.lt.s32.totalorder %s5631_s4, %s5010_s26 }
 0x15f   : > { %p5007_p3 = pnand %p5005_p4, %p4993_p7  ;;  %p5013_p11 = scmp.lt.s32.totalorder %s5011_s14, %s5004_s23 }
 0x161   : > { %p5008_p5 = pneg %p5007_p3  ;;  %p5014_p2 = por %p5013_p11, %p5012_p8 }
 0x163   : > { %p5015_p12 = pnand %p5014_p2, %p5008_p5 }
 0x165   : > { %5018 = shalt.err (!%p5015_p12)
}
 0x166   : > { %4243 = dma.hbm_to_vmem [thread:$0]  (!%p5635_p9), %s5628_s28, 64, %s5631_s4, %s1142_s19  }
 0x167   : > { %s1163_s20 = scalar_lea.vmem [#allocation8], %s5624_s16  ;;  %s6123_s14 = sand.u32 1, %s5159_s11  }
 0x168   : > { %s1170_s15 = sshll.u32 %s1163_s20, 4  ;;  %s1160_s23 = scalar_lea.sflag [#allocation9], %s6123_s14  ;;  %s1171_s15 = int_to_ptr.vmem [resolvable:$true] %s1170_s15 }
 0x169   : > { %s5019_s3 = scalar_lea.hbm %s5640_s12, 64  ;;  %s5024_s26 = scalar_lea.hbm %s6116_s17, 128 }
 0x16a   : > { %p5020_p2 = scmp.ne.s32.totalorder %s5640_s12, %s5019_s3  ;;  %p5025_p13 = scmp.lt.s32.totalorder %s5640_s12, %s6116_s17 }
 0x16b   : > { %p5026_p6 = scmp.lt.s32.totalorder %s5024_s26, %s5019_s3 }
 0x16c   : > { %p5022_p5 = pnand %p5020_p2, %p4993_p7 }
 0x16d   : > { %p5027_p1 = por %p5026_p6, %p5025_p13 }
 0x16e   : > { %p5023_p10 = pneg %p5022_p5 }
 0x170   : > { %p5028_p4 = pnand %p5027_p1, %p5023_p10 }
 0x172   : > { %5031 = shalt.err (!%p5028_p4)
}
 0x173   : > { %s5032_s6 = scalar_lea.vmem %s1171_s15, 64  ;;  %s5217_s19 = smov [#allocation8]  }
 0x174   : > { %p5033_p3 = scmp.ne.s32.totalorder %s1171_s15, %s5032_s6  ;;  %s5037_s16 = sshll.u32 %s5217_s19, 4  ;;  %s5038_s16 = int_to_ptr.vmem [resolvable:$false] %s5037_s16 }
 0x175   : > { %s5039_s28 = scalar_lea.vmem %s5038_s16, 128  ;;  %p5040_p12 = scmp.lt.s32.totalorder %s1171_s15, %s5038_s16 }
 0x176   : > { %p5035_p8 = pnand %p5033_p3, %p4993_p7  ;;  %p5041_p2 = scmp.lt.s32.totalorder %s5039_s28, %s5032_s6 }
 0x178   : > { %p5036_p11 = pneg %p5035_p8  ;;  %p5042_p5 = por %p5041_p2, %p5040_p12 }
 0x17a   : > { %p5043_p0 = pnand %p5042_p5, %p5036_p11 }
 0x17c   : > { %5046 = shalt.err (!%p5043_p0)
}
 0x17d   : > { %4246 = dma.hbm_to_vmem [thread:$0]  (!%p5635_p9), %s5640_s12, 64, %s1171_s15, %s1160_s23  }
 0x17e   : > { %p6124_p10 = scmp.ne.s32.totalorder %s6095_s22, 0 }
 0x17f   : > { %s5683_s4 = sand.u32 (!%p6124_p10), 1, %s5151_s0   ;;  %p6125_p7 = scmp.ne.s32.totalorder (!%p6124_p10), %s6119_s5, 0 }
 0x180   : > { %1179 = sbr.rel (%p6124_p10) target bundleno = 4570 (0x11da), region = 152  ;;  %s3720_s20 = sshll.u32 (!%p6124_p10), %s5683_s4, 2 }
 0x181   : > { %s1182_s14 = scalar_lea.sflag (!%p6124_p10), [#allocation6], %s5683_s4  ;;  %s5687_s3 = scalar_lea.vmem (!%p6124_p10), [#allocation5], %s3720_s20 }
 0x185   : > { %5090 = dma.done.wait (%p6125_p7), %s1182_s14, 64  }
 0x186   : > { %5092 = vsyncadd (%p6125_p7), %s1182_s14, 4294967232  ;;  %s1190_s9 = sand.u32 1, %s5432_s18   ;;  %s5694_s22 = scalar_lea.vmem [#allocation8], %s3720_s20 }
 0x187   : > { %s1191_s12 = scalar_lea.sflag [#allocation9], %s1190_s9 }
 0x188   : > { %5094 = dma.done.wait (%p6125_p7), %s1191_s12, 64  }
 0x189   : > { %5096 = vsyncadd (%p6125_p7), %s1191_s12, 4294967232  ;;  %p6126_p0 = scmp.eq.s32.totalorder %s5432_s18, 0 }
 0x18b   : > { %5098 = dma.done.wait (%p6126_p0), [#allocation9], 256   ;;  %p6127_p9 = pmov %p6126_p0 }
 0x18c   : > { %p6128_p13 = pmov %p6126_p0 }
 0x18d   : > { %5100 = vsyncadd (%p6127_p9), [#allocation9], 4294967040 }
 0x18e   : > { %5102 = dma.done.wait (%p6128_p13), [#allocation12], 272   ;;  %p6129_p6 = pmov %p6126_p0 }
 0x18f   : > { %p6130_p1 = pmov %p6126_p0 }
 0x190   : > { %5104 = vsyncadd (%p6129_p6), [#allocation12], 4294967024 }
 0x191   : > { %5106 = dma.done.wait (%p6130_p1), [#allocation15], 32   ;;  %p6131_p4 = pmov %p6126_p0 }
 0x192   : > { %p6132_p3 = pmov %p6126_p0 }
 0x193   : > { %5108 = vsyncadd (%p6131_p4), [#allocation15], 4294967264 }
 0x194   : > { %5110 = dma.done.wait (%p6132_p3), [#allocation18], 32   ;;  %p6133_p8 = pmov %p6126_p0 }
 0x195   : > { %p6134_p11 = pmov %p6126_p0 }
 0x196   : > { %5112 = vsyncadd (%p6133_p8), [#allocation18], 4294967264 }
 0x197   : > { %5114 = dma.done.wait (%p6134_p11), [#allocation21], 272   ;;  %p6135_p12 = pmov %p6126_p0 }
 0x198   : > { %p6136_p2 = pmov %p6126_p0 }
 0x199   : > { %5116 = vsyncadd (%p6135_p12), [#allocation21], 4294967024 }
 0x19a   : > { %5118 = dma.done.wait (%p6136_p2), [#allocation24], 272   ;;  %p6137_p5 = pmov %p6126_p0 }
 0x19b   : > { %p6138_p10 = pmov %p6126_p0 }
 0x19c   : > { %5120 = vsyncadd (%p6137_p5), [#allocation24], 4294967024 }
 0x19d   : > { %5122 = dma.done.wait (%p6138_p10), [#allocation27], 272   ;;  %p6139_p7 = pmov %p6126_p0 }
 0x19f   : > { %5124 = vsyncadd (%p6139_p7), [#allocation27], 4294967024 }
 0x1a0   : > { %5126 = dma.done.wait (%p6126_p0), [#allocation30], 512   ;;  %p6140_p9 = pmov %p6126_p0 }
 0x1a1   : > { %p6141_p13 = pmov %p6126_p0 }
 0x1a2   : > { %5128 = vsyncadd (%p6140_p9), [#allocation30], 4294966784 }
 0x1a3   : > { %5130 = dma.done.wait (%p6141_p13), [#allocation33], 272   ;;  %p6142_p6 = pmov %p6126_p0 }
 0x1a4   : > { %p6143_p1 = pmov %p6126_p0 }
 0x1a5   : > { %5132 = vsyncadd (%p6142_p6), [#allocation33], 4294967024 }
 0x1a6   : > { %5134 = dma.done.wait (%p6143_p1), [#allocation36], 32   ;;  %p6144_p4 = pmov %p6126_p0 }
 0x1a7   : > { %p6145_p3 = pmov %p6126_p0 }
 0x1a8   : > { %5136 = vsyncadd (%p6144_p4), [#allocation36], 4294967264 }
 0x1a9   : > { %5138 = dma.done.wait (%p6145_p3), [#allocation39], 16   ;;  %p6146_p8 = pmov %p6126_p0 }
 0x1aa   : > { %s6147_s6 = sld [smem:[#allocation55_spill]]  ;;  %p1376_p11 = scmp.lt.s32.totalorder %s5432_s18, 1  ;;  %v5218_v0 = vmov 0.0   ;;  %vm5219_vm0 = vmmov 0   ;;  %v4397_v1 = vld [vmem:[#allocation10 + $0x8] sm:$0xff]   ;;  %v4398_v2 = vld [vmem:[#allocation10] sm:$0xff]  }
 0x1ab   : > { %5140 = vsyncadd (%p6146_p8), [#allocation39], 4294967280  ;;  %3905 = vmatprep.subr.bf16.mxu1 %v5218_v0  ;;  %3909 = vmatprep.mubr.msk.bf16.mxu1 %vm5219_vm0, %v5218_v0  ;;  %vm1417_vm1 = vcmask 261120   ;;  %v4399_v4 = vld [vmem:[#allocation13 + $0x8] sm:$0xff]   ;;  %v4400_v6 = vld [vmem:[#allocation13] sm:$0xff]   ;;  %s5220_s26 = smov 120  }
 0x1ac   : > { %s1377_s5 = scalar_select %p1376_p11, %s5432_s18, 1  ;;  %3921 = vmatprep.subr.bf16.mxu0 %v5218_v0  ;;  %3923 = vmatprep.mubr.msk.bf16.mxu0 %vm5219_vm0, %v5218_v0  ;;  %v5767_v7 = vld [vmem:[%s5687_s3] sm:$0xf]  ;;  %v3752_v13 = vld [vmem:[#allocation14] ss:$0 sm:$0xff]  ;;  %vm1533_vm2 = vcmask 64512  }
 0x1ad   : > { %3906 = vmatpush3.bf16.msra.mxu1 %v4397_v1  ;;  %v3748_v11 = vld [vmem:[#allocation11] ss:$0 sm:$0xff]  ;;  %s5221_s19 = smov 96   ;;  %s5222_s16 = smov 80   ;;  %vm1599_vm3 = vcmask 1043456   ;;  %vm1759_vm4 = vcmask 130112  }
 0x1ae   : > { %s5752_s15 = sshll.u32 %s1377_s5, 3  ;;  %3907 = vmatprep.subr.bf16.mxu1 %v5218_v0  ;;  %s5223_s28 = smov 88   ;;  %vm1876_vm5 = vcmask 195712   ;;  %vm1993_vm6 = vcmask 261312   ;;  %vm2294_vm7 = vcmask 60416   ;;  %vm2302_vm8 = vcmask 126016  }
 0x1af   : > { %s6065_s20 = smov 72   ;;  %s5225_s14 = smov 112   ;;  %vm2310_vm9 = vcmask 191616   ;;  %vm2315_vm10 = vcmask 257216   ;;  %vm2320_vm11 = vcmask 322816   ;;  %vm2325_vm12 = vcmask 388416  }
 0x1b0   : > { %s1379_s23 = scalar_lea.vmem %s6147_s6, %s5752_s15  ;;  %s5226_s3 = smov 104   ;;  %vm2330_vm13 = vcmask 454016   ;;  %vm2335_vm14 = vcmask 519616   ;;  %vm2568_vm15 = vcmask 130048  }
 0x1b1   : > { %v5756_v3 = vld [vmem:[%s1379_s23] sm:$0xff]  ;;  %3908 = vmatpush3.bf16.msra.mxu1 %v4398_v2  ;;  %s5227_s9 = smov 56   ;;  %s5228_s12 = smov 64  }
 0x1b2   : > { %v1393_v5 = vpack.c.bf16 %v5756_v3, %v5756_v3  ;;  %3913 = vmatprep.subr.bf16.mxu1 %v5218_v0  ;;  %s5229_s6 = smov 40   ;;  %s5230_s5 = smov 48  }
 0x1b3   : > { %s6148_s23 = sld [smem:[#allocation62_spill]]  ;;  %p6160_p2 = scmp.ne.s32.totalorder %s6120_s2, 0 }
 0x1b4   : > { %3910 = vmatmul.mubr.msk.bf16.vlgmr.msra.gmra.mxu1 %vm1417_vm1, %v1393_v5  ;;  %s6156_s13 = sld [smem:[#allocation80_spill]] }
 0x1b5   : > { %3914 = vmatpush3.bf16.msra.mxu1 %v4399_v4  ;;  %3917 = vmatprep.mubr.msk.bf16.mxu1 %vm5219_vm0, %v5218_v0 }
 0x1b6   : > { %3915 = vmatprep.subr.bf16.mxu1 %v5218_v0 }
 0x1b9   : > { %3916 = vmatpush3.bf16.msra.mxu1 %v4400_v6 }
 0x1ba   : > { %3927 = vmatprep.subr.bf16.mxu1 %v5218_v0 }
 0x1bc   : > { %3918 = vmatmul.mubr.msk.bf16.vlgmr.msra.gmra.mxu1 %vm1417_vm1, %v5767_v7 }
 0x1bd   : > { %3929 = vmatprep.mubr.msk.bf16.mxu1 %vm5219_vm0, %v5218_v0 }
 0x274   : > { %v1455_v8 = vpop.f32.mrf.mxu1 }
 0x275   : > { %v5774_v15 = vadd.f32 %v3748_v11, %v1455_v8 }
 0x276   : > { %v3911_v9 = vpop.f32.mrf.mxu1 }
 0x277   : > { %v1529_v11 = vpack.c.bf16 %v5774_v15, %v5774_v15 }
 0x278   : > { %v1458_v10 = vpop.f32.mrf.mxu1 }
 0x27a   : > { %v3912_v12 = vpop.f32.mrf.mxu1 }
 0x27c   : > { %v1521_v14 = vpop.f32.mrf.mxu1 }
 0x27d   : > { %v1522_v16 = vadd.f32 %v3752_v13, %v1521_v14 }
 0x27e   : > { %v3919_v17 = vpop.f32.mrf.mxu1 }
 0x27f   : > { %v1527_v18 = vadd.f32 %v1522_v16, %v5774_v15 }
 0x280   : > { %v1524_v19 = vpop.f32.mrf.mxu1 }
 0x281   : > { %v1528_v20 = vpack.c.bf16 %v1527_v18, %v1527_v18 }
 0x282   : > { %v3920_v21 = vpop.f32.mrf.mxu1 }
 0x283   : > { %1644 = vrot.lane.b32.xlu1 %v1528_v20, %s5220_s26  ;;  %1531 = vrot.lane.b32.xlu0 %v1528_v20, %s5221_s19  ;;  %s5231_s26 = smov 8  }
 0x287   : > { %1763 = vrot.lane.b32.xlu1 %v1528_v20, %s5222_s16  ;;  %1646 = vrot.lane.b32.xlu0 %v1528_v20, %s5223_s28 }
 0x28b   : > { %1880 = vrot.lane.b32.xlu1 %v1528_v20, %s6065_s20  ;;  %1761 = vrot.lane.b32.xlu0 %v1528_v20, %s5225_s14 }
 0x28f   : > { %1878 = vrot.lane.b32.xlu0 %v1528_v20, %s5226_s3  ;;  %s5232_s3 = smov 16  }
 0x2f5   : > { %v1532_v22 = vpop.permute.xlu0 %1531  ;;  %v1645_v25 = vpop.permute.xlu1 %1644 }
 0x2f6   : > { %v1538_v23 = vsel %vm1533_vm2, %v1532_v22, 0 }
 0x2f7   : > { %3922 = vmatpush3.bf16.xpose.msra.mxu0 %v1538_v23 }
 0x2f8   : > { %3933 = vmatprep.subr.bf16.mxu0 %v5218_v0 }
 0x2f9   : > { %v1647_v24 = vpop.permute.xlu0 %1646  ;;  %v1764_v27 = vpop.permute.xlu1 %1763 }
 0x2fa   : > { %v1652_v26 = vsel %vm1533_vm2, %v1647_v24, 0  ;;  %v1769_v28 = vsel %vm1533_vm2, %v1764_v27, 0 }
 0x2fd   : > { %v1881_v29 = vpop.permute.xlu1 %1880  ;;  %v1762_v30 = vpop.permute.xlu0 %1761 }
 0x2fe   : > { %3924 = vmatmul.mubr.msk.bf16.vlgmr.msra.gmra.mxu0 %vm1533_vm2, %v1528_v20  ;;  %v1886_v31 = vsel %vm1533_vm2, %v1881_v29, 0 }
 0x2ff   : > { %3934 = vmatpush3.bf16.xpose.msra.mxu0 %v1652_v26  ;;  %3935 = vmatprep.mubr.msk.bf16.mxu0 %vm5219_vm0, %v5218_v0 }
 0x300   : > { %3945 = vmatprep.subr.bf16.mxu0 %v5218_v0 }
 0x301   : > { %v1879_v32 = vpop.permute.xlu0 %1878 }
 0x306   : > { %3936 = vmatmul.mubr.msk.bf16.vlgmr.msra.gmra.mxu0 %vm1533_vm2, %v1645_v25 }
 0x307   : > { %3946 = vmatpush3.bf16.xpose.msra.mxu0 %v1769_v28  ;;  %3947 = vmatprep.mubr.msk.bf16.mxu0 %vm5219_vm0, %v5218_v0 }
 0x308   : > { %3957 = vmatprep.subr.bf16.mxu0 %v5218_v0 }
 0x30e   : > { %3948 = vmatmul.mubr.msk.bf16.vlgmr.msra.gmra.mxu0 %vm1533_vm2, %v1762_v30 }
 0x30f   : > { %3958 = vmatpush3.bf16.xpose.msra.mxu0 %v1886_v31  ;;  %3959 = vmatprep.mubr.msk.bf16.mxu0 %vm5219_vm0, %v5218_v0 }
 0x310   : > { %3969 = vmatprep.subr.bf16.mxu0 %v5218_v0 }
 0x316   : > { %3960 = vmatmul.mubr.msk.bf16.vlgmr.msra.gmra.mxu0 %vm1533_vm2, %v1879_v32 }
 0x317   : > { %3973 = vmatprep.mubr.msk.bf16.mxu0 %vm5219_vm0, %v5218_v0 }
 0x3be   : > { %v1574_v33 = vpop.f32.mrf.mxu0 }
 0x3bf   : > { %v1580_v34 = vmul.f32 0.35355338, %v1574_v33 }
 0x3c0   : > { %v3925_v35 = vpop.f32.mrf.mxu0 }
 0x3c1   : > { %v1581_v36 = vsel %vm1533_vm2, %v1580_v34, -inf }
 0x3c2   : > { %1582 = vmax.xlane.f32.xlu1 %v1581_v36  ;;  %v1577_v37 = vpop.f32.mrf.mxu0 }
 0x3c4   : > { %v3926_v38 = vpop.f32.mrf.mxu0 }
 0x3c6   : > { %v1688_v39 = vpop.f32.mrf.mxu0 }
 0x3c7   : > { %v1694_v40 = vmul.f32 0.35355338, %v1688_v39 }
 0x3c8   : > { %v3937_v41 = vpop.f32.mrf.mxu0 }
 0x3c9   : > { %v1695_v42 = vsel %vm1533_vm2, %v1694_v40, -inf }
 0x3ca   : > { %1696 = vmax.xlane.f32.xlu0 %v1695_v42  ;;  %v1691_v43 = vpop.f32.mrf.mxu0 }
 0x3cc   : > { %v3938_v44 = vpop.f32.mrf.mxu0 }
 0x3ce   : > { %v1805_v45 = vpop.f32.mrf.mxu0 }
 0x3cf   : > { %v1811_v46 = vmul.f32 0.35355338, %v1805_v45 }
 0x3d0   : > { %v3949_v47 = vpop.f32.mrf.mxu0 }
 0x3d1   : > { %v1812_v48 = vsel %vm1533_vm2, %v1811_v46, -inf }
 0x3d2   : > { %1813 = vmax.xlane.f32.xlu0 %v1812_v48  ;;  %v1808_v49 = vpop.f32.mrf.mxu0 }
 0x3d3   : > { %v4401_v49 = vld [vmem:[%s6148_s23 + $0x8] sm:$0xff]  }
 0x3d4   : > { %v3950_v50 = vpop.f32.mrf.mxu0  ;;  %3970 = vmatpush3.bf16.msra.mxu0 %v4401_v49 }
 0x3d5   : > { %3971 = vmatprep.subr.bf16.mxu0 %v5218_v0 }
 0x3d6   : > { %v1922_v51 = vpop.f32.mrf.mxu0 }
 0x3d7   : > { %v1928_v52 = vmul.f32 0.35355338, %v1922_v51  ;;  %v4402_v51 = vld [vmem:[%s6148_s23] sm:$0xff]  }
 0x3d8   : > { %v3961_v53 = vpop.f32.mrf.mxu0  ;;  %3972 = vmatpush3.bf16.msra.mxu0 %v4402_v51 }
 0x3d9   : > { %v1929_v54 = vsel %vm1533_vm2, %v1928_v52, -inf  ;;  %3985 = vmatprep.subr.bf16.mxu0 %v5218_v0 }
 0x3da   : > { %1930 = vmax.xlane.f32.xlu1 %v1929_v54  ;;  %v1925_v55 = vpop.f32.mrf.mxu0 }
 0x3dc   : > { %v3962_v56 = vpop.f32.mrf.mxu0 }
 0x44b   : > { %v1583_v57 = vpop.xlane.xlu1 %1582 }
 0x44c   : > { %v1584_v58 = vsub.f32 %v1580_v34, %v1583_v57 }
 0x44e   : > { %v1585_v59 = vmul.f32 1.442695, %v1584_v58 }
 0x450   : > { %4425 = vpow2.f32 %v1585_v59 }
 0x453   : > { %v1697_v60 = vpop.xlane.xlu0 %1696 }
 0x454   : > { %v1698_v61 = vsub.f32 %v1694_v40, %v1697_v60 }
 0x456   : > { %v1699_v62 = vmul.f32 1.442695, %v1698_v61 }
 0x458   : > { %4427 = vpow2.f32 %v1699_v62 }
 0x45b   : > { %v1814_v63 = vpop.xlane.xlu0 %1813 }
 0x45c   : > { %v1815_v1 = vsub.f32 %v1811_v46, %v1814_v63 }
 0x45d   : > { %v4426_v2 = vpop.eup %4425 }
 0x45e   : > { %v1816_v4 = vmul.f32 1.442695, %v1815_v1  ;;  %v1587_v5 = vsel %vm1533_vm2, %v4426_v2, 0.0  ;;  %v3764_v1 = vld [vmem:[#allocation16] ss:$0 sm:$0xff] }
 0x45f   : > { %1588 = vadd.xlane.f32.xlu0 %v1587_v5 }
 0x460   : > { %4429 = vpow2.f32 %v1816_v4 }
 0x463   : > { %v1931_v12 = vpop.xlane.xlu1 %1930 }
 0x464   : > { %v1932_v13 = vsub.f32 %v1928_v52, %v1931_v12 }
 0x465   : > { %v4428_v6 = vpop.eup %4427 }
 0x466   : > { %v1701_v8 = vsel %vm1533_vm2, %v4428_v6, 0.0  ;;  %v1933_v14 = vmul.f32 1.442695, %v1932_v13 }
 0x467   : > { %1702 = vadd.xlane.f32.xlu1 %v1701_v8 }
 0x468   : > { %4431 = vpow2.f32 %v1933_v14 }
 0x46d   : > { %v4430_v9 = vpop.eup %4429 }
 0x46e   : > { %v1818_v10 = vsel %vm1533_vm2, %v4430_v9, 0.0 }
 0x46f   : > { %1819 = vadd.xlane.f32.xlu0 %v1818_v10 }
 0x475   : > { %v4432_v16 = vpop.eup %4431 }
 0x476   : > { %v1935_v17 = vsel %vm1533_vm2, %v4432_v16, 0.0 }
 0x478   : > { %1707 = vrot.lane.b32.xlu1 %v1529_v11, %s5227_s9  ;;  %s5233_s9 = smov 24  }
 0x485   : > { %1594 = vrot.lane.b32.xlu0 %v1529_v11, %s5228_s12  ;;  %s6149_s12 = sld [smem:[#allocation56_spill]] }
 0x489   : > { %1941 = vrot.lane.b32.xlu0 %v1529_v11, %s5229_s6  ;;  %s6150_s6 = sld [smem:[#allocation57_spill]] }
 0x48f   : > { %s1389_s20 = scalar_lea.vmem %s6150_s6, %s5752_s15 }
 0x49c   : > { %1936 = vadd.xlane.f32.xlu1 %v1935_v17  ;;  %v4403_v17 = vld [vmem:[#allocation20 + $0x8] sm:$0xff]  }
 0x4ad   : > { %1824 = vrot.lane.b32.xlu1 %v1529_v11, %s5230_s5  ;;  %s1384_s5 = scalar_lea.vmem %s6149_s12, %s5752_s15  ;;  %s5234_s15 = smov 32  }
 0x4ae   : > { %s3827_s12 = sshll.u32 %s5432_s18, 7 }
 0x4e8   : > { %v1589_v18 = vpop.xlane.xlu0 %1588 }
 0x4e9   : > { %4433 = vrcp.f32 %v1589_v18  ;;  %v4404_v18 = vld [vmem:[#allocation23 + $0x8] sm:$0xff]  }
 0x4f0   : > { %v1703_v19 = vpop.xlane.xlu1 %1702 }
 0x4f1   : > { %4435 = vrcp.f32 %v1703_v19  ;;  %v4405_v19 = vld [vmem:[#allocation20] sm:$0xff]  }
 0x4f4   : > { %v1708_v24 = vpop.permute.xlu1 %1707 }
 0x4f5   : > { %v1713_v27 = vsel %vm1599_vm3, %v1708_v24, 0 }
 0x4f6   : > { %v4434_v15 = vpop.eup %4433 }
 0x4f7   : > { %v1591_v21 = vmul.f32 %v4434_v15, %v4426_v2  ;;  %v4409_v15 = vld [vmem:[#allocation26 + $0x8] sm:$0xff]  }
 0x4f8   : > { %v1820_v20 = vpop.xlane.xlu0 %1819 }
 0x4f9   : > { %v1592_v25 = vpack.c.bf16 %v1591_v21, %v1591_v21  ;;  %4437 = vrcp.f32 %v1820_v20  ;;  %v4411_v20 = vld [vmem:[#allocation26] sm:$0xff]   ;;  %v4413_v21 = vld [vmem:[%s1384_s5] sm:$0xff]  }
 0x4fc   : > { %v1595_v22 = vpop.permute.xlu0 %1594 }
 0x4fd   : > { %v1601_v23 = vsel %vm1599_vm3, %v1595_v22, 0 }
 0x4fe   : > { %3928 = vmatpush3.bf16.msra.mxu1 %v1601_v23  ;;  %v4436_v26 = vpop.eup %4435 }
 0x4ff   : > { %3939 = vmatprep.subr.bf16.mxu1 %v5218_v0  ;;  %v1705_v28 = vmul.f32 %v4436_v26, %v4428_v6 }
 0x500   : > { %v1942_v35 = vpop.permute.xlu0 %1941 }
 0x501   : > { %3930 = vmatmul.mubr.msk.bf16.vlgmr.msra.gmra.mxu1 %vm1533_vm2, %v1592_v25  ;;  %v1706_v29 = vpack.c.bf16 %v1705_v28, %v1705_v28  ;;  %v1947_v37 = vsel %vm1599_vm3, %v1942_v35, 0  ;;  %v3768_v25 = vld [vmem:[#allocation17] ss:$0 sm:$0xff] }
 0x502   : > { %3940 = vmatpush3.bf16.msra.mxu1 %v1713_v27  ;;  %3941 = vmatprep.mubr.msk.bf16.mxu1 %vm5219_vm0, %v5218_v0  ;;  %v3769_v27 = vld [vmem:[#allocation19] ss:$0 sm:$0xff]  ;;  %v4412_v35 = vld [vmem:[#allocation29] sm:$0xff]  }
 0x503   : > { %3951 = vmatprep.subr.bf16.mxu1 %v5218_v0 }
 0x506   : > { %v4438_v30 = vpop.eup %4437 }
 0x507   : > { %v1822_v32 = vmul.f32 %v4438_v30, %v4430_v9  ;;  %v4407_v30 = vld [vmem:[#allocation31 + $0x8] sm:$0xff]  }
 0x509   : > { %3942 = vmatmul.mubr.msk.bf16.vlgmr.msra.gmra.mxu1 %vm1533_vm2, %v1706_v29  ;;  %v1823_v36 = vpack.c.bf16 %v1822_v32, %v1822_v32  ;;  %v4408_v32 = vld [vmem:[#allocation31] sm:$0xff]  }
 0x50a   : > { %3953 = vmatprep.mubr.msk.bf16.mxu1 %vm5219_vm0, %v5218_v0 }
 0x525   : > { %v1937_v31 = vpop.xlane.xlu1 %1936 }
 0x526   : > { %4439 = vrcp.f32 %v1937_v31 }
 0x529   : > { %v1825_v33 = vpop.permute.xlu1 %1824 }
 0x52a   : > { %v1830_v34 = vsel %vm1599_vm3, %v1825_v33, 0  ;;  %v2094_v33 = vld [vmem:[%s5694_s22] sm:$0xf]  ;;  %s6151_s22 = sld [smem:[#allocation71_spill]] }
 0x52b   : > { %3952 = vmatpush3.bf16.msra.mxu1 %v1830_v34  ;;  %v4410_v34 = vld [vmem:[#allocation29 + $0x8] sm:$0xff]  }
 0x52c   : > { %3963 = vmatprep.subr.bf16.mxu1 %v5218_v0 }
 0x52e   : > { %3954 = vmatmul.mubr.msk.bf16.vlgmr.msra.gmra.mxu1 %vm1533_vm2, %v1823_v36  ;;  %v4414_v36 = vld [vmem:[%s1389_s20] sm:$0xff]   ;;  %s6155_s20 = sld [smem:[#allocation78_spill]] }
 0x52f   : > { %3964 = vmatpush3.bf16.msra.mxu1 %v1947_v37  ;;  %3965 = vmatprep.mubr.msk.bf16.mxu1 %vm5219_vm0, %v5218_v0 }
 0x530   : > { %3977 = vmatprep.subr.bf16.mxu1 %v5218_v0 }
 0x533   : > { %v4440_v38 = vpop.eup %4439 }
 0x534   : > { %v1939_v39 = vmul.f32 %v4440_v38, %v4432_v16 }
 0x536   : > { %v1940_v40 = vpack.c.bf16 %v1939_v39, %v1939_v39 }
 0x538   : > { %3966 = vmatmul.mubr.msk.bf16.vlgmr.msra.gmra.mxu1 %vm1533_vm2, %v1940_v40 }
 0x539   : > { %3981 = vmatprep.mubr.msk.bf16.mxu1 %vm5219_vm0, %v5218_v0  ;;  %3978 = vmatpush3.bf16.msra.mxu1 %v4403_v17 }
 0x53a   : > { %3979 = vmatprep.subr.bf16.mxu1 %v5218_v0 }
 0x53d   : > { %3980 = vmatpush3.bf16.msra.mxu1 %v4405_v19 }
 0x53e   : > { %3993 = vmatprep.subr.bf16.mxu1 %v5218_v0 }
 0x5c1   : > { %v1637_v41 = vpop.f32.mrf.mxu1 }
 0x5c2   : > { %1643 = vst.msk [vmem:[#allocation2] sm:$0xff] %vm1533_vm2, %v1637_v41 }
 0x5c3   : > { %v3931_v42 = vpop.f32.mrf.mxu1 }
 0x5c5   : > { %v1640_v43 = vpop.f32.mrf.mxu1 }
 0x5c7   : > { %v3932_v44 = vpop.f32.mrf.mxu1 }
 0x5c9   : > { %v1749_v45 = vpop.f32.mrf.mxu1 }
 0x5ca   : > { %1756 = vrot.lane.b32.xlu1 %v1749_v45, %s5231_s26  ;;  %v3774_v45 = vld [vmem:[#allocation25] ss:$0 sm:$0xff] }
 0x5cb   : > { %v3943_v46 = vpop.f32.mrf.mxu1 }
 0x5cc   : > { %v3770_v46 = vld [vmem:[#allocation22] ss:$0 sm:$0xff] }
 0x5cd   : > { %v1752_v47 = vpop.f32.mrf.mxu1 }
 0x5cf   : > { %v3944_v48 = vpop.f32.mrf.mxu1 }
 0x5ee   : > { %v1866_v50 = vpop.f32.mrf.mxu1 }
 0x5ef   : > { %1873 = vrot.lane.b32.xlu0 %v1866_v50, %s5232_s3 }
 0x5f0   : > { %v3955_v52 = vpop.f32.mrf.mxu1 }
 0x5f2   : > { %v1869_v53 = vpop.f32.mrf.mxu1 }
 0x5f4   : > { %v3956_v54 = vpop.f32.mrf.mxu1 }
 0x5f8   : > { %v1983_v55 = vpop.f32.mrf.mxu1 }
 0x5f9   : > { %1990 = vrot.lane.b32.xlu1 %v1983_v55, %s5233_s9  ;;  %v3778_v55 = vld [vmem:[#allocation32] ss:$0 sm:$0xff] }
 0x5fa   : > { %v3967_v56 = vpop.f32.mrf.mxu1 }
 0x5fc   : > { %v1986_v57 = vpop.f32.mrf.mxu1 }
 0x5fe   : > { %v3968_v58 = vpop.f32.mrf.mxu1 }
 0x63c   : > { %v1757_v59 = vpop.permute.xlu1 %1756 }
 0x63d   : > { %1760 = vst.msk [vmem:[#allocation2] sm:$0xff] %vm1759_vm4, %v1757_v59 }
 0x661   : > { %v1874_v60 = vpop.permute.xlu0 %1873 }
 0x662   : > { %1877 = vst.msk [vmem:[#allocation2] sm:$0xff] %vm1876_vm5, %v1874_v60 }
 0x66b   : > { %v1991_v61 = vpop.permute.xlu1 %1990 }
 0x66c   : > { %1994 = vst.msk [vmem:[#allocation2] sm:$0xff] %vm1993_vm6, %v1991_v61  ;;  %v3784_v61 = vld [vmem:[#allocation28] ss:$0 sm:$0xff] }
 0x673   : > { %v1995_v62 = vld [vmem:[#allocation2] sm:$0xff] }
 0x674   : > { %v1996_v63 = vpack.c.bf16 %v1995_v62, %v1995_v62 }
 0x676   : > { %3974 = vmatmul.mubr.msk.bf16.vlgmr.msra.gmra.mxu0 %vm1417_vm1, %v1996_v63  ;;  %v3789_v63 = vld [vmem:[%s6151_s22] ss:$0 sm:$0xff] }
 0x677   : > { %3989 = vmatprep.mubr.msk.bf16.mxu0 %vm5219_vm0, %v5218_v0  ;;  %3986 = vmatpush3.bf16.msra.mxu0 %v4404_v18 }
 0x678   : > { %3987 = vmatprep.subr.bf16.mxu0 %v5218_v0 }
 0x736   : > { %v2057_v2 = vpop.f32.mrf.mxu0 }
 0x737   : > { %v2058_v4 = vadd.f32 %v3764_v1, %v2057_v2 }
 0x738   : > { %v3975_v5 = vpop.f32.mrf.mxu0 }
 0x739   : > { %v2063_v6 = vadd.f32 %v2058_v4, %v5756_v3  ;;  %v4406_v3 = vld [vmem:[#allocation23] sm:$0xff]  }
 0x73a   : > { %v2060_v8 = vpop.f32.mrf.mxu0  ;;  %3988 = vmatpush3.bf16.msra.mxu0 %v4406_v3 }
 0x73b   : > { %v2066_v9 = vsel %vm1417_vm1, %v2063_v6, 0.0  ;;  %4001 = vmatprep.subr.bf16.mxu0 %v5218_v0 }
 0x73c   : > { %2067 = vadd.xlane.f32.xlu0 %v2066_v9  ;;  %v3976_v10 = vpop.f32.mrf.mxu0 }
 0x73d   : > { %3990 = vmatmul.mubr.msk.bf16.vlgmr.msra.gmra.mxu0 %vm1417_vm1, %v5767_v7 }
 0x73e   : > { %4005 = vmatprep.mubr.msk.bf16.mxu0 %vm5219_vm0, %v5218_v0  ;;  %4002 = vmatpush3.bf16.msra.mxu0 %v4409_v15 }
 0x73f   : > { %4003 = vmatprep.subr.bf16.mxu0 %v5218_v0 }
 0x742   : > { %4004 = vmatpush3.bf16.msra.mxu0 %v4411_v20 }
 0x743   : > { %4017 = vmatprep.subr.bf16.mxu0 %v5218_v0 }
 0x745   : > { %4006 = vmatmul.mubr.msk.bf16.vlgmr.msra.gmra.mxu0 %vm1417_vm1, %v4413_v21 }
 0x746   : > { %4019 = vmatprep.mubr.msk.bf16.mxu0 %vm5219_vm0, %v5218_v0 }
 0x7c5   : > { %v2068_v11 = vpop.xlane.xlu0 %2067 }
 0x7c6   : > { %v2070_v12 = vmul.f32 0.03125, %v2068_v11 }
 0x7c8   : > { %v2071_v13 = vsub.f32 %v2063_v6, %v2070_v12 }
 0x7ca   : > { %v2072_v14 = vmul.f32 %v2071_v13, %v2071_v13 }
 0x7cc   : > { %v2073_v16 = vsel %vm1417_vm1, %v2072_v14, 0.0 }
 0x7cd   : > { %2074 = vadd.xlane.f32.xlu1 %v2073_v16 }
 0x7fd   : > { %v2219_v37 = vpop.f32.mrf.mxu0 }
 0x7fe   : > { %v2220_v47 = vadd.f32 %v3774_v45, %v2219_v37 }
 0x7ff   : > { %v3991_v38 = vpop.f32.mrf.mxu0 }
 0x801   : > { %v2222_v39 = vpop.f32.mrf.mxu0 }
 0x803   : > { %v3992_v40 = vpop.f32.mrf.mxu0 }
 0x805   : > { %v2406_v41 = vpop.f32.mrf.mxu0 }
 0x806   : > { %v5888_v1 = vadd.f32 %v3784_v61, %v2406_v41 }
 0x807   : > { %v4007_v42 = vpop.f32.mrf.mxu0 }
 0x809   : > { %v2409_v43 = vpop.f32.mrf.mxu0 }
 0x80a   : > { %v5891_v9 = vadd.f32 %v3784_v61, %v2409_v43 }
 0x80b   : > { %v4008_v44 = vpop.f32.mrf.mxu0 }
 0x856   : > { %v2075_v7 = vpop.xlane.xlu1 %2074 }
 0x857   : > { %v2076_v22 = vmul.f32 0.03125, %v2075_v7 }
 0x859   : > { %v2077_v23 = vadd.f32 1e-05, %v2076_v22 }
 0x85b   : > { %4441 = vrsqrt.f32 %v2077_v23 }
 0x868   : > { %v4442_v24 = vpop.eup %4441 }
 0x869   : > { %v2079_v26 = vmul.f32 %v4442_v24, %v2071_v13 }
 0x86b   : > { %v2086_v28 = vmul.f32 %v3768_v25, %v2079_v26 }
 0x86d   : > { %v5866_v29 = vadd.f32 %v3769_v27, %v2086_v28 }
 0x86f   : > { %v2095_v31 = vpack.c.bf16 %v5866_v29, %v5866_v29 }
 0x871   : > { %3982 = vmatmul.mubr.msk.bf16.vlgmr.msra.gmra.mxu1 %vm1417_vm1, %v2095_v31 }
 0x872   : > { %3994 = vmatpush3.bf16.msra.mxu1 %v4407_v30  ;;  %3997 = vmatprep.mubr.msk.bf16.mxu1 %vm5219_vm0, %v5218_v0 }
 0x873   : > { %3995 = vmatprep.subr.bf16.mxu1 %v5218_v0 }
 0x876   : > { %3996 = vmatpush3.bf16.msra.mxu1 %v4408_v32 }
 0x877   : > { %4009 = vmatprep.subr.bf16.mxu1 %v5218_v0 }
 0x879   : > { %3998 = vmatmul.mubr.msk.bf16.vlgmr.msra.gmra.mxu1 %vm1417_vm1, %v2094_v33 }
 0x87a   : > { %4010 = vmatpush3.bf16.msra.mxu1 %v4410_v34  ;;  %4013 = vmatprep.mubr.msk.bf16.mxu1 %vm5219_vm0, %v5218_v0 }
 0x87b   : > { %4011 = vmatprep.subr.bf16.mxu1 %v5218_v0 }
 0x87e   : > { %4012 = vmatpush3.bf16.msra.mxu1 %v4412_v35 }
 0x87f   : > { %4023 = vmatprep.subr.bf16.mxu1 %v5218_v0 }
 0x881   : > { %4014 = vmatmul.mubr.msk.bf16.vlgmr.msra.gmra.mxu1 %vm1417_vm1, %v4414_v36 }
 0x882   : > { %4025 = vmatprep.mubr.msk.bf16.mxu1 %vm5219_vm0, %v5218_v0 }
 0x931   : > { %v2156_v48 = vpop.f32.mrf.mxu1 }
 0x932   : > { %v2157_v49 = vadd.f32 %v3770_v46, %v2156_v48 }
 0x933   : > { %v3983_v50 = vpop.f32.mrf.mxu1 }
 0x934   : > { %v2225_v51 = vadd.f32 %v2220_v47, %v2157_v49 }
 0x935   : > { %v2159_v52 = vpop.f32.mrf.mxu1 }
 0x936   : > { %v2292_v53 = vpack.c.bf16 %v2225_v51, %v2225_v51 }
 0x937   : > { %v3984_v54 = vpop.f32.mrf.mxu1 }
 0x938   : > { %2307 = vrot.lane.b32.xlu1 %v2292_v53, %s5231_s26  ;;  %2295 = vst.msk [vmem:[#allocation3] sm:$0xf] %vm2294_vm7, %v2292_v53 }
 0x939   : > { %v2286_v56 = vpop.f32.mrf.mxu1 }
 0x93a   : > { %v2287_v57 = vadd.f32 %v3778_v55, %v2286_v56  ;;  %v2485_v56 = vpack.c.bf16 %v5891_v9, %v5888_v1 }
 0x93b   : > { %v3999_v58 = vpop.f32.mrf.mxu1 }
 0x93c   : > { %v3832_v59 = vpack.c.bf16 %v2287_v57, %v2287_v57 }
 0x93d   : > { %v2289_v60 = vpop.f32.mrf.mxu1 }
 0x93e   : > { %2299 = vrot.lane.b32.xlu0 %v3832_v59, %s5231_s26 }
 0x93f   : > { %v4000_v62 = vpop.f32.mrf.mxu1 }
 0x941   : > { %v2478_v2 = vpop.f32.mrf.mxu1 }
 0x942   : > { %v2479_v4 = vadd.f32 %v3789_v63, %v2478_v2 }
 0x943   : > { %v4015_v5 = vpop.f32.mrf.mxu1 }
 0x944   : > { %v2486_v6 = vadd.f32 %v2479_v4, %v5888_v1  ;;  %v3836_v8 = vpack.c.bf16 %v2479_v4, %v2479_v4 }
 0x945   : > { %v2481_v10 = vpop.f32.mrf.mxu1 }
 0x946   : > { %v3834_v11 = vpack.c.bf16 %v2486_v6, %v2486_v6  ;;  %v2482_v12 = vadd.f32 %v3789_v63, %v2481_v10  ;;  %2504 = vrot.lane.b32.xlu0 %v3836_v8, %s5231_s26 }
 0x947   : > { %v4016_v13 = vpop.f32.mrf.mxu1 }
 0x948   : > { %v2487_v14 = vadd.f32 %v2482_v12, %v5891_v9  ;;  %v3837_v16 = vpack.c.bf16 %v2482_v12, %v2482_v12  ;;  %2497 = vst.msk [vmem:[#allocation4] sm:$0xf] %vm2294_vm7, %v3834_v11 }
 0x94a   : > { %v3835_v17 = vpack.c.bf16 %v2487_v14, %v2487_v14  ;;  %2520 = vrot.lane.b32.xlu0 %v3836_v8, %s5232_s3  ;;  %2506 = vrot.lane.b32.xlu1 %v3837_v16, %s5231_s26 }
 0x94c   : > { %2498 = vst.msk [vmem:[#allocation4 + $0x4] sm:$0xf] %vm2294_vm7, %v3835_v17 }
 0x94e   : > { %2536 = vrot.lane.b32.xlu0 %v3836_v8, %s5233_s9  ;;  %2522 = vrot.lane.b32.xlu1 %v3837_v16, %s5232_s3 }
 0x952   : > { %2552 = vrot.lane.b32.xlu0 %v3836_v8, %s5234_s15  ;;  %2538 = vrot.lane.b32.xlu1 %v3837_v16, %s5233_s9 }
 0x956   : > { %2512 = vrot.lane.b32.xlu0 %v3834_v11, %s5231_s26  ;;  %2554 = vrot.lane.b32.xlu1 %v3837_v16, %s5234_s15 }
 0x95a   : > { %2528 = vrot.lane.b32.xlu0 %v3834_v11, %s5232_s3  ;;  %2514 = vrot.lane.b32.xlu1 %v3835_v17, %s5231_s26 }
 0x95e   : > { %2544 = vrot.lane.b32.xlu0 %v3834_v11, %s5233_s9  ;;  %2530 = vrot.lane.b32.xlu1 %v3835_v17, %s5232_s3 }
 0x962   : > { %2312 = vrot.lane.b32.xlu0 %v3832_v59, %s5232_s3  ;;  %2546 = vrot.lane.b32.xlu1 %v3835_v17, %s5233_s9 }
 0x966   : > { %2322 = vrot.lane.b32.xlu0 %v3832_v59, %s5233_s9  ;;  %2317 = vrot.lane.b32.xlu1 %v2292_v53, %s5232_s3 }
 0x96a   : > { %2332 = vrot.lane.b32.xlu0 %v3832_v59, %s5234_s15  ;;  %2327 = vrot.lane.b32.xlu1 %v2292_v53, %s5233_s9  ;;  %s3327_s15 = scalar_lea.sflag [#allocation7], %s5683_s4 }
 0x9aa   : > { %v2308_v19 = vpop.permute.xlu1 %2307 }
 0x9b0   : > { %v2300_v18 = vpop.permute.xlu0 %2299 }
 0x9b1   : > { %2303 = vst.msk [vmem:[#allocation3] sm:$0xf] %vm2302_vm8, %v2300_v18 }
 0x9b2   : > { %2311 = vst.msk [vmem:[#allocation3] sm:$0xf] %vm2310_vm9, %v2308_v19 }
 0x9b8   : > { %v2505_v3 = vpop.permute.xlu0 %2504 }
 0x9b9   : > { %2510 = vst.msk [vmem:[#allocation4] sm:$0xf] %vm2302_vm8, %v2505_v3 }
 0x9bc   : > { %v2521_v15 = vpop.permute.xlu0 %2520  ;;  %v2507_v20 = vpop.permute.xlu1 %2506 }
 0x9bd   : > { %2511 = vst.msk [vmem:[#allocation4 + $0x4] sm:$0xf] %vm2302_vm8, %v2507_v20 }
 0x9c0   : > { %v2537_v21 = vpop.permute.xlu0 %2536  ;;  %v2523_v7 = vpop.permute.xlu1 %2522 }
 0x9c4   : > { %v2553_v22 = vpop.permute.xlu0 %2552  ;;  %v2539_v23 = vpop.permute.xlu1 %2538 }
 0x9c8   : > { %v2513_v24 = vpop.permute.xlu0 %2512  ;;  %v2555_v25 = vpop.permute.xlu1 %2554 }
 0x9c9   : > { %2518 = vst.msk [vmem:[#allocation4] sm:$0xf] %vm2310_vm9, %v2513_v24 }
 0x9ca   : > { %2526 = vst.msk [vmem:[#allocation4] sm:$0xf] %vm2315_vm10, %v2521_v15 }
 0x9cc   : > { %v2529_v26 = vpop.permute.xlu0 %2528  ;;  %v2515_v27 = vpop.permute.xlu1 %2514 }
 0x9cd   : > { %2534 = vst.msk [vmem:[#allocation4] sm:$0xf] %vm2320_vm11, %v2529_v26 }
 0x9ce   : > { %2519 = vst.msk [vmem:[#allocation4 + $0x4] sm:$0xf] %vm2310_vm9, %v2515_v27 }
 0x9cf   : > { %2527 = vst.msk [vmem:[#allocation4 + $0x4] sm:$0xf] %vm2315_vm10, %v2523_v7 }
 0x9d0   : > { %2542 = vst.msk [vmem:[#allocation4] sm:$0xf] %vm2325_vm12, %v2537_v21  ;;  %v2545_v28 = vpop.permute.xlu0 %2544  ;;  %v2531_v30 = vpop.permute.xlu1 %2530 }
 0x9d1   : > { %2550 = vst.msk [vmem:[#allocation4] sm:$0xf] %vm2330_vm13, %v2545_v28 }
 0x9d2   : > { %2535 = vst.msk [vmem:[#allocation4 + $0x4] sm:$0xf] %vm2320_vm11, %v2531_v30 }
 0x9d3   : > { %2558 = vst.msk [vmem:[#allocation4] sm:$0xf] %vm2335_vm14, %v2553_v22 }
 0x9d4   : > { %2543 = vst.msk [vmem:[#allocation4 + $0x4] sm:$0xf] %vm2325_vm12, %v2539_v23  ;;  %v2313_v31 = vpop.permute.xlu0 %2312  ;;  %v2547_v32 = vpop.permute.xlu1 %2546 }
 0x9d5   : > { %2316 = vst.msk [vmem:[#allocation3] sm:$0xf] %vm2315_vm10, %v2313_v31 }
 0x9d6   : > { %2551 = vst.msk [vmem:[#allocation4 + $0x4] sm:$0xf] %vm2330_vm13, %v2547_v32 }
 0x9d7   : > { %2559 = vst.msk [vmem:[#allocation4 + $0x4] sm:$0xf] %vm2335_vm14, %v2555_v25 }
 0x9d8   : > { %v2323_v33 = vpop.permute.xlu0 %2322  ;;  %v2318_v34 = vpop.permute.xlu1 %2317 }
 0x9d9   : > { %2321 = vst.msk [vmem:[#allocation3] sm:$0xf] %vm2320_vm11, %v2318_v34 }
 0x9da   : > { %2326 = vst.msk [vmem:[#allocation3] sm:$0xf] %vm2325_vm12, %v2323_v33 }
 0x9dc   : > { %v2333_v35 = vpop.permute.xlu0 %2332  ;;  %v2328_v36 = vpop.permute.xlu1 %2327 }
 0x9dd   : > { %2331 = vst.msk [vmem:[#allocation3] sm:$0xf] %vm2330_vm13, %v2328_v36 }
 0x9de   : > { %v4415_v37 = vld [vmem:[#allocation4] sm:$0xff]   ;;  %2336 = vst.msk [vmem:[#allocation3] sm:$0xf] %vm2335_vm14, %v2333_v35 }
 0x9df   : > { %2684 = vrot.lane.b32.xlu1 %v4415_v37, %s5225_s14  ;;  %v2573_v38 = vsel %vm2568_vm15, %v4415_v37, 0 }
 0x9e0   : > { %4018 = vmatpush3.bf16.xpose.msra.mxu0 %v2573_v38 }
 0x9e1   : > { %4029 = vmatprep.subr.bf16.mxu0 %v5218_v0 }
 0x9e3   : > { %2797 = vrot.lane.b32.xlu1 %v4415_v37, %s5221_s19 }
 0x9e5   : > { %v2560_v39 = vld [vmem:[#allocation3] sm:$0xf] }
 0x9e6   : > { %v3801_v40 = vcombine.low %v2560_v39, %v2560_v39 }
 0x9e7   : > { %2910 = vrot.lane.b32.xlu1 %v4415_v37, %s5222_s16  ;;  %4020 = vmatmul.mubr.msk.bf16.vlgmr.msra.gmra.mxu0 %vm2568_vm15, %v2560_v39 }
 0x9e8   : > { %2682 = vrot.lane.b32.xlu0 %v3801_v40, %s5225_s14  ;;  %4031 = vmatprep.mubr.msk.bf16.mxu0 %vm5219_vm0, %v5218_v0  ;;  %s6157_s14 = sld [smem:[#allocation81_spill]] }
 0x9ec   : > { %2795 = vrot.lane.b32.xlu0 %v3801_v40, %s5221_s19 }
 0x9f0   : > { %2908 = vrot.lane.b32.xlu0 %v3801_v40, %s5222_s16 }
 0xa51   : > { %v2685_v41 = vpop.permute.xlu1 %2684 }
 0xa52   : > { %v2690_v42 = vsel %vm2568_vm15, %v2685_v41, 0 }
 0xa53   : > { %4030 = vmatpush3.bf16.xpose.msra.mxu0 %v2690_v42 }
 0xa54   : > { %4041 = vmatprep.subr.bf16.mxu0 %v5218_v0 }
 0xa55   : > { %v2798_v43 = vpop.permute.xlu1 %2797 }
 0xa56   : > { %v2803_v45 = vsel %vm2568_vm15, %v2798_v43, 0 }
 0xa59   : > { %v2911_v46 = vpop.permute.xlu1 %2910 }
 0xa5a   : > { %v2683_v44 = vpop.permute.xlu0 %2682  ;;  %v2916_v48 = vsel %vm2568_vm15, %v2911_v46, 0 }
 0xa5b   : > { %4032 = vmatmul.mubr.msk.bf16.vlgmr.msra.gmra.mxu0 %vm2568_vm15, %v2683_v44 }
 0xa5c   : > { %4042 = vmatpush3.bf16.xpose.msra.mxu0 %v2803_v45  ;;  %4043 = vmatprep.mubr.msk.bf16.mxu0 %vm5219_vm0, %v5218_v0 }
 0xa5d   : > { %4053 = vmatprep.subr.bf16.mxu0 %v5218_v0 }
 0xa5e   : > { %v2796_v47 = vpop.permute.xlu0 %2795 }
 0xa62   : > { %v2909_v49 = vpop.permute.xlu0 %2908 }
 0xa63   : > { %4044 = vmatmul.mubr.msk.bf16.vlgmr.msra.gmra.mxu0 %vm2568_vm15, %v2796_v47 }
 0xa64   : > { %4054 = vmatpush3.bf16.xpose.msra.mxu0 %v2916_v48  ;;  %4055 = vmatprep.mubr.msk.bf16.mxu0 %vm5219_vm0, %v5218_v0 }
 0xa65   : > { %4065 = vmatprep.subr.bf16.mxu0 %v5218_v0 }
 0xa6b   : > { %4056 = vmatmul.mubr.msk.bf16.vlgmr.msra.gmra.mxu0 %vm2568_vm15, %v2909_v49 }
 0xa6c   : > { %4069 = vmatprep.mubr.msk.bf16.mxu0 %vm5219_vm0, %v5218_v0 }
 0xaa7   : > { %v2609_v50 = vpop.f32.mrf.mxu0 }
 0xaa8   : > { %v2615_v51 = vmul.f32 0.25, %v2609_v50 }
 0xaa9   : > { %v4021_v52 = vpop.f32.mrf.mxu0 }
 0xaaa   : > { %v2616_v53 = vsel %vm2568_vm15, %v2615_v51, -inf }
 0xaab   : > { %2617 = vmax.xlane.f32.xlu1 %v2616_v53  ;;  %v2612_v54 = vpop.f32.mrf.mxu0 }
 0xaad   : > { %v4022_v55 = vpop.f32.mrf.mxu0 }
 0xabc   : > { %2748 = vrot.lane.b32.xlu1 %v2485_v56, %s5223_s28  ;;  %s6152_s28 = smov 72  }
 0xb1b   : > { %v2726_v57 = vpop.f32.mrf.mxu0 }
 0xb1c   : > { %v2732_v58 = vmul.f32 0.25, %v2726_v57 }
 0xb1d   : > { %v4033_v59 = vpop.f32.mrf.mxu0 }
 0xb1e   : > { %v2733_v60 = vsel %vm2568_vm15, %v2732_v58, -inf }
 0xb1f   : > { %2734 = vmax.xlane.f32.xlu0 %v2733_v60  ;;  %v2729_v61 = vpop.f32.mrf.mxu0 }
 0xb21   : > { %v4034_v62 = vpop.f32.mrf.mxu0 }
 0xb23   : > { %v2839_v63 = vpop.f32.mrf.mxu0 }
 0xb24   : > { %v2845_v2 = vmul.f32 0.25, %v2839_v63 }
 0xb25   : > { %v4045_v4 = vpop.f32.mrf.mxu0 }
 0xb26   : > { %v2846_v5 = vsel %vm2568_vm15, %v2845_v2, -inf }
 0xb27   : > { %2847 = vmax.xlane.f32.xlu0 %v2846_v5  ;;  %v2842_v6 = vpop.f32.mrf.mxu0 }
 0xb29   : > { %v4046_v8 = vpop.f32.mrf.mxu0 }
 0xb2b   : > { %v2952_v10 = vpop.f32.mrf.mxu0 }
 0xb2c   : > { %v2958_v1 = vmul.f32 0.25, %v2952_v10 }
 0xb2d   : > { %v4057_v9 = vpop.f32.mrf.mxu0 }
 0xb2e   : > { %v2959_v11 = vsel %vm2568_vm15, %v2958_v1, -inf }
 0xb2f   : > { %2960 = vmax.xlane.f32.xlu1 %v2959_v11  ;;  %v2955_v12 = vpop.f32.mrf.mxu0 }
 0xb31   : > { %v4058_v13 = vpop.f32.mrf.mxu0 }
 0xb34   : > { %v2618_v14 = vpop.xlane.xlu1 %2617 }
 0xb35   : > { %v2622_v16 = vsub.f32 %v2615_v51, %v2618_v14  ;;  %v2619_v41 = vsub.f32 -inf, %v2618_v14 }
 0xb37   : > { %v2623_v17 = vmul.f32 1.442695, %v2622_v16  ;;  %v2620_v42 = vmul.f32 1.442695, %v2619_v41 }
 0xb38   : > { %v2749_v22 = vpop.permute.xlu1 %2748 }
 0xb39   : > { %4443 = vpow2.f32 %v2623_v17 }
 0xb3d   : > { %2632 = vrot.lane.b32.xlu0 %v2485_v56, %s5221_s19  ;;  %s6153_s19 = sld [smem:[#allocation77_spill]] }
 0xb40   : > { %2861 = vrot.lane.b32.xlu1 %v2485_v56, %s5222_s16  ;;  %s6154_s16 = sld [smem:[#allocation79_spill]] }
 0xb41   : > { %2974 = vrot.lane.b32.xlu0 %v2485_v56, %s6152_s28 }
 0xb46   : > { %v4444_v21 = vpop.eup %4443 }
 0xb47   : > { %v2630_v24 = vpack.c.bf16 %v4444_v21, %v4444_v21  ;;  %v2626_v33 = vsel %vm2568_vm15, %v4444_v21, 0.0 }
 0xba8   : > { %v2735_v18 = vpop.xlane.xlu0 %2734 }
 0xba9   : > { %v2739_v19 = vsub.f32 %v2732_v58, %v2735_v18  ;;  %v2736_v43 = vsub.f32 -inf, %v2735_v18 }
 0xbab   : > { %v2740_v3 = vmul.f32 1.442695, %v2739_v19  ;;  %v2737_v44 = vmul.f32 1.442695, %v2736_v43 }
 0xbad   : > { %4445 = vpow2.f32 %v2740_v3  ;;  %v4417_v3 = vld [vmem:[#allocation34 + $0x8] sm:$0xff]  }
 0xbae   : > { %4066 = vmatpush3.bf16.msra.mxu0 %v4417_v3 }
 0xbaf   : > { %4067 = vmatprep.subr.bf16.mxu0 %v5218_v0 }
 0xbb0   : > { %v2848_v15 = vpop.xlane.xlu0 %2847 }
 0xbb1   : > { %v2852_v20 = vsub.f32 %v2845_v2, %v2848_v15  ;;  %v2849_v45 = vsub.f32 -inf, %v2848_v15 }
 0xbb3   : > { %v2853_v7 = vmul.f32 1.442695, %v2852_v20  ;;  %v2850_v47 = vmul.f32 1.442695, %v2849_v45 }
 0xbb4   : > { %v2633_v23 = vpop.permute.xlu0 %2632 }
 0xbb5   : > { %4024 = vmatpush3.bf16.msra.mxu1 %v2633_v23  ;;  %4447 = vpow2.f32 %v2853_v7  ;;  %v4418_v7 = vld [vmem:[#allocation34] sm:$0xff]  }
 0xbb6   : > { %4035 = vmatprep.subr.bf16.mxu1 %v5218_v0  ;;  %4068 = vmatpush3.bf16.msra.mxu0 %v4418_v7 }
 0xbb7   : > { %4081 = vmatprep.subr.bf16.mxu0 %v5218_v0 }
 0xbb8   : > { %4026 = vmatmul.mubr.msk.bf16.vlgmr.msra.gmra.mxu1 %vm2568_vm15, %v2630_v24  ;;  %v2961_v25 = vpop.xlane.xlu1 %2960  ;;  %v2975_v37 = vpop.permute.xlu0 %2974 }
 0xbb9   : > { %v2965_v26 = vsub.f32 %v2958_v1, %v2961_v25  ;;  %4036 = vmatpush3.bf16.msra.mxu1 %v2749_v22  ;;  %4037 = vmatprep.mubr.msk.bf16.mxu1 %vm5219_vm0, %v5218_v0  ;;  %v2962_v50 = vsub.f32 -inf, %v2961_v25 }
 0xbba   : > { %4047 = vmatprep.subr.bf16.mxu1 %v5218_v0  ;;  %v4446_v27 = vpop.eup %4445 }
 0xbbb   : > { %v2966_v28 = vmul.f32 1.442695, %v2965_v26  ;;  %v2743_v30 = vsel %vm2568_vm15, %v4446_v27, 0.0  ;;  %v2747_v31 = vpack.c.bf16 %v4446_v27, %v4446_v27  ;;  %v2963_v53 = vmul.f32 1.442695, %v2962_v50 }
 0xbbc   : > { %2744 = vadd.xlane.f32.xlu1 %v2743_v30  ;;  %v2862_v32 = vpop.permute.xlu1 %2861 }
 0xbbd   : > { %4449 = vpow2.f32 %v2966_v28 }
 0xbbe   : > { %4451 = vpow2.f32 %v2620_v42 }
 0xbbf   : > { %4453 = vpow2.f32 %v2737_v44 }
 0xbc0   : > { %4038 = vmatmul.mubr.msk.bf16.vlgmr.msra.gmra.mxu1 %vm2568_vm15, %v2747_v31  ;;  %2627 = vadd.xlane.f32.xlu1 %v2626_v33  ;;  %4455 = vpow2.f32 %v2850_v47 }
 0xbc1   : > { %4048 = vmatpush3.bf16.msra.mxu1 %v2862_v32  ;;  %4049 = vmatprep.mubr.msk.bf16.mxu1 %vm5219_vm0, %v5218_v0 }
 0xbc2   : > { %4059 = vmatprep.subr.bf16.mxu1 %v5218_v0  ;;  %v4448_v34 = vpop.eup %4447 }
 0xbc3   : > { %v2856_v35 = vsel %vm2568_vm15, %v4448_v34, 0.0  ;;  %v2860_v36 = vpack.c.bf16 %v4448_v34, %v4448_v34 }
 0xbc4   : > { %2857 = vadd.xlane.f32.xlu0 %v2856_v35 }
 0xbc8   : > { %4050 = vmatmul.mubr.msk.bf16.vlgmr.msra.gmra.mxu1 %vm2568_vm15, %v2860_v36 }
 0xbc9   : > { %4060 = vmatpush3.bf16.msra.mxu1 %v2975_v37  ;;  %4061 = vmatprep.mubr.msk.bf16.mxu1 %vm5219_vm0, %v5218_v0 }
 0xbca   : > { %4073 = vmatprep.subr.bf16.mxu1 %v5218_v0  ;;  %v4450_v38 = vpop.eup %4449 }
 0xbcb   : > { %v2969_v39 = vsel %vm2568_vm15, %v4450_v38, 0.0  ;;  %v2973_v40 = vpack.c.bf16 %v4450_v38, %v4450_v38  ;;  %v4452_v48 = vpop.eup %4451  ;;  %v3808_v38 = vld [vmem:[#allocation35] ss:$0 sm:$0xff] }
 0xbcc   : > { %2970 = vadd.xlane.f32.xlu0 %v2969_v39  ;;  %v2625_v51 = vmul.f32 0.0, %v4452_v48  ;;  %v4454_v54 = vpop.eup %4453 }
 0xbcd   : > { %v2742_v55 = vmul.f32 0.0, %v4454_v54  ;;  %v4456_v57 = vpop.eup %4455 }
 0xbce   : > { %v2855_v59 = vmul.f32 0.0, %v4456_v57 }
 0xbd0   : > { %4062 = vmatmul.mubr.msk.bf16.vlgmr.msra.gmra.mxu1 %vm2568_vm15, %v2973_v40 }
 0xbd1   : > { %4077 = vmatprep.mubr.msk.bf16.mxu1 %vm5219_vm0, %v5218_v0 }
 0xc45   : > { %v2745_v46 = vpop.xlane.xlu1 %2744 }
 0xc46   : > { %v2746_v56 = vadd.f32 %v2745_v46, %v2742_v55 }
 0xc49   : > { %v2628_v49 = vpop.xlane.xlu1 %2627 }
 0xc4a   : > { %v2629_v52 = vadd.f32 %v2628_v49, %v2625_v51 }
 0xc4c   : > { %4457 = vrcp.f32 %v2629_v52  ;;  %v4420_v52 = vld [vmem:[%s6153_s19] sm:$0xff]  }
 0xc4d   : > { %4459 = vpow2.f32 %v2963_v53  ;;  %v2858_v58 = vpop.xlane.xlu0 %2857  ;;  %v4422_v53 = vld [vmem:[%s6154_s16 + $0x10] sm:$0xff]  }
 0xc4e   : > { %4461 = vrcp.f32 %v2746_v56  ;;  %v2859_v61 = vadd.f32 %v2858_v58, %v2855_v59  ;;  %v3812_v58 = vld [vmem:[#allocation37] ss:$0 sm:$0xff] }
 0xc50   : > { %4463 = vrcp.f32 %v2859_v61 }
 0xc55   : > { %v2971_v8 = vpop.xlane.xlu0 %2970 }
 0xc59   : > { %v4458_v63 = vpop.eup %4457 }
 0xc5a   : > { %v4460_v5 = vpop.eup %4459 }
 0xc5b   : > { %v2968_v1 = vmul.f32 0.0, %v4460_v5  ;;  %v4462_v13 = vpop.eup %4461  ;;  %v3814_v5 = vld [vmem:[%s6155_s20] ss:$0 sm:$0xff]  ;;  %s5235_s20 = smov [#allocation40]  }
 0xc5d   : > { %v2972_v11 = vadd.f32 %v2971_v8, %v2968_v1  ;;  %v4464_v20 = vpop.eup %4463 }
 0xc5f   : > { %4465 = vrcp.f32 %v2972_v11 }
 0xc6c   : > { %v4466_v27 = vpop.eup %4465 }
 0xc78   : > { %v2672_v60 = vpop.f32.mrf.mxu1 }
 0xc79   : > { %v2678_v62 = vadd.f32 %v2672_v60, %v2625_v51  ;;  %v4419_v51 = vld [vmem:[%s6153_s19 + $0x8] sm:$0xff]   ;;  %v3813_v60 = vld [vmem:[#allocation38] ss:$0 sm:$0xff] }
 0xc7a   : > { %v4027_v2 = vpop.f32.mrf.mxu1  ;;  %4074 = vmatpush3.bf16.msra.mxu1 %v4419_v51 }
 0xc7b   : > { %v3022_v4 = vmul.f32 %v4458_v63, %v2678_v62  ;;  %4075 = vmatprep.subr.bf16.mxu1 %v5218_v0  ;;  %v4423_v2 = vld [vmem:[%s6154_s16 + $0x8] sm:$0xff]  }
 0xc7c   : > { %v2675_v6 = vpop.f32.mrf.mxu1 }
 0xc7d   : > { %3023 = vst.msk [vmem:[#allocation2] sm:$0xff] %vm1533_vm2, %v3022_v4  ;;  %v4424_v4 = vld [vmem:[%s6154_s16] sm:$0xff]  }
 0xc7e   : > { %v4028_v10 = vpop.f32.mrf.mxu1  ;;  %4076 = vmatpush3.bf16.msra.mxu1 %v4420_v52 }
 0xc80   : > { %v2788_v9 = vpop.f32.mrf.mxu1 }
 0xc81   : > { %v2794_v12 = vadd.f32 %v2788_v9, %v2742_v55 }
 0xc82   : > { %v4039_v14 = vpop.f32.mrf.mxu1 }
 0xc83   : > { %v3025_v16 = vmul.f32 %v4462_v13, %v2794_v12  ;;  %v3818_v13 = vld [vmem:[%s6156_s13] ss:$0 sm:$0xff]  ;;  %s5051_s13 = sshll.u32 %s5235_s20, 4  ;;  %s5052_s13 = int_to_ptr.vmem [resolvable:$false] %s5051_s13 }
 0xc84   : > { %v2791_v17 = vpop.f32.mrf.mxu1 }
 0xc85   : > { %3027 = vrot.lane.b32.xlu0 %v3025_v16, %s5231_s26  ;;  %s6158_s26 = sld [smem:[#allocation82_spill]] }
 0xc86   : > { %v4040_v18 = vpop.f32.mrf.mxu1 }
 0xc88   : > { %v2901_v19 = vpop.f32.mrf.mxu1 }
 0xc89   : > { %v2907_v15 = vadd.f32 %v2901_v19, %v2855_v59 }
 0xc8a   : > { %v4051_v21 = vpop.f32.mrf.mxu1 }
 0xc8b   : > { %v3032_v22 = vmul.f32 %v4464_v20, %v2907_v15 }
 0xc8c   : > { %v2904_v23 = vpop.f32.mrf.mxu1 }
 0xc8d   : > { %3034 = vrot.lane.b32.xlu1 %v3032_v22, %s5232_s3  ;;  %s6159_s3 = sld [smem:[#allocation83_spill]] }
 0xc8e   : > { %v4052_v24 = vpop.f32.mrf.mxu1 }
 0xc90   : > { %v3014_v25 = vpop.f32.mrf.mxu1 }
 0xc91   : > { %v3020_v26 = vadd.f32 %v3014_v25, %v2968_v1 }
 0xc92   : > { %v4063_v28 = vpop.f32.mrf.mxu1 }
 0xc93   : > { %v3039_v30 = vmul.f32 %v4466_v27, %v3020_v26  ;;  %v3824_v27 = vld [vmem:[%s6157_s14] ss:$0 sm:$0xff]  ;;  %s3338_s22 = scalar_lea.hbm %s6159_s3, %s3827_s12  ;;  %s5053_s14 = scalar_lea.vmem %s5052_s13, 256 }
 0xc94   : > { %v3017_v31 = vpop.f32.mrf.mxu1 }
 0xc95   : > { %3041 = vrot.lane.b32.xlu1 %v3039_v30, %s5233_s9  ;;  %s3742_s9 = sshll.u32 %s5683_s4, 3  ;;  %v3825_v30 = vld [vmem:[%s6158_s26] ss:$0 sm:$0xff] }
 0xc96   : > { %v4064_v32 = vpop.f32.mrf.mxu1  ;;  %s1375_s6 = scalar_lea.vmem [#allocation40], %s3742_s9 }
 0xc97   : > { %s3340_s5 = sshll.u32 %s1375_s6, 4  ;;  %s3341_s5 = int_to_ptr.vmem [resolvable:$true] %s3340_s5 }
 0xc98   : > { %s5047_s28 = scalar_lea.vmem %s3341_s5, 128  ;;  %p5054_p7 = scmp.lt.s32.totalorder %s3341_s5, %s5052_s13 }
 0xc99   : > { %p5048_p12 = scmp.ne.s32.totalorder %s3341_s5, %s5047_s28  ;;  %p5055_p0 = scmp.lt.s32.totalorder %s5053_s14, %s5047_s28 }
 0xc9b   : > { %p5049_p5 = pnand %p5048_p12, %p6160_p2  ;;  %p5056_p9 = por %p5055_p0, %p5054_p7 }
 0xc9d   : > { %p5050_p10 = pneg %p5049_p5 }
 0xc9f   : > { %p5057_p13 = pnand %p5056_p9, %p5050_p10 }
 0xcf7   : > { %v3028_v33 = vpop.permute.xlu0 %3027 }
 0xcf8   : > { %3030 = vst.msk [vmem:[#allocation2] sm:$0xff] %vm1759_vm4, %v3028_v33 }
 0xcff   : > { %v3035_v34 = vpop.permute.xlu1 %3034 }
 0xd00   : > { %3037 = vst.msk [vmem:[#allocation2] sm:$0xff] %vm1876_vm5, %v3035_v34 }
 0xd07   : > { %v3042_v35 = vpop.permute.xlu1 %3041 }
 0xd08   : > { %3044 = vst.msk [vmem:[#allocation2] sm:$0xff] %vm1993_vm6, %v3042_v35 }
 0xd0f   : > { %v3045_v36 = vld [vmem:[#allocation2] sm:$0xff] }
 0xd10   : > { %v3046_v37 = vpack.c.bf16 %v3045_v36, %v3045_v36 }
 0xd12   : > { %4070 = vmatmul.mubr.msk.bf16.vlgmr.msra.gmra.mxu0 %vm1417_vm1, %v3046_v37 }
 0xd13   : > { %4089 = vmatprep.mubr.msk.bf16.mxu0 %vm5219_vm0, %v5218_v0  ;;  %vm3251_vm0 = vcmask 523264  }
 0xdd2   : > { %v3107_v39 = vpop.f32.mrf.mxu0 }
 0xdd3   : > { %v3108_v40 = vadd.f32 %v3808_v38, %v3107_v39 }
 0xdd4   : > { %v4071_v41 = vpop.f32.mrf.mxu0 }
 0xdd5   : > { %v3113_v42 = vadd.f32 %v3108_v40, %v5866_v29  ;;  %v4421_v29 = vld [vmem:[%s6154_s16 + $0x18] sm:$0xff]  }
 0xdd6   : > { %v3110_v43 = vpop.f32.mrf.mxu0  ;;  %4082 = vmatpush3.bf16.msra.mxu0 %v4421_v29 }
 0xdd7   : > { %v3116_v44 = vsel %vm1417_vm1, %v3113_v42, 0.0  ;;  %4083 = vmatprep.subr.bf16.mxu0 %v5218_v0 }
 0xdd8   : > { %3117 = vadd.xlane.f32.xlu0 %v3116_v44  ;;  %v4072_v45 = vpop.f32.mrf.mxu0 }
 0xdda   : > { %4084 = vmatpush3.bf16.msra.mxu0 %v4422_v53 }
 0xddb   : > { %4085 = vmatprep.subr.bf16.mxu0 %v5218_v0 }
 0xdde   : > { %4086 = vmatpush3.bf16.msra.mxu0 %v4423_v2 }
 0xddf   : > { %4087 = vmatprep.subr.bf16.mxu0 %v5218_v0 }
 0xde2   : > { %4088 = vmatpush3.bf16.msra.mxu0 %v4424_v4 }
 0xe61   : > { %v3118_v46 = vpop.xlane.xlu0 %3117 }
 0xe62   : > { %v3119_v47 = vmul.f32 0.03125, %v3118_v46 }
 0xe64   : > { %v3120_v48 = vsub.f32 %v3113_v42, %v3119_v47 }
 0xe66   : > { %v3121_v49 = vmul.f32 %v3120_v48, %v3120_v48 }
 0xe68   : > { %v3122_v50 = vsel %vm1417_vm1, %v3121_v49, 0.0 }
 0xe69   : > { %3123 = vadd.xlane.f32.xlu1 %v3122_v50 }
 0xef2   : > { %v3124_v54 = vpop.xlane.xlu1 %3123 }
 0xef3   : > { %v3125_v55 = vmul.f32 0.03125, %v3124_v54 }
 0xef5   : > { %v3126_v56 = vadd.f32 1e-05, %v3125_v55 }
 0xef7   : > { %4467 = vrsqrt.f32 %v3126_v56 }
 0xf04   : > { %v4468_v57 = vpop.eup %4467 }
 0xf05   : > { %v3128_v59 = vmul.f32 %v4468_v57, %v3120_v48 }
 0xf07   : > { %v3135_v61 = vmul.f32 %v3812_v58, %v3128_v59 }
 0xf09   : > { %v3142_v62 = vadd.f32 %v3813_v60, %v3135_v61 }
 0xf0b   : > { %v3143_v63 = vpack.c.bf16 %v3142_v62, %v3142_v62 }
 0xf0d   : > { %4078 = vmatmul.mubr.msk.bf16.vlgmr.msra.gmra.mxu1 %vm1417_vm1, %v3143_v63 }
 0xfcd   : > { %v3204_v6 = vpop.f32.mrf.mxu1 }
 0xfce   : > { %v3205_v8 = vadd.f32 %v3814_v5, %v3204_v6 }
 0xfcf   : > { %v4079_v10 = vpop.f32.mrf.mxu1 }
 0xfd0   : > { %v3210_v1 = vmax.f32 %v3205_v8, 0.0 }
 0xfd1   : > { %v3207_v9 = vpop.f32.mrf.mxu1 }
 0xfd2   : > { %v3211_v11 = vpack.c.bf16 %v3210_v1, %v3210_v1 }
 0xfd3   : > { %v4080_v12 = vpop.f32.mrf.mxu1 }
 0xfd4   : > { %4090 = vmatmul.mubr.msk.bf16.vlgmr.msra.gmra.mxu0 %vm3251_vm0, %v3211_v11 }
0x1094   : > { %v3289_v14 = vpop.f32.mrf.mxu0 }
0x1095   : > { %v3290_v16 = vadd.f32 %v3818_v13, %v3289_v14 }
0x1096   : > { %v4091_v17 = vpop.f32.mrf.mxu0 }
0x1097   : > { %v3295_v18 = vadd.f32 %v3290_v16, %v3142_v62 }
0x1098   : > { %v3292_v19 = vpop.f32.mrf.mxu0 }
0x1099   : > { %v3298_v0 = vsel %vm1417_vm1, %v3295_v18, 0.0 }
0x109a   : > { %3299 = vadd.xlane.f32.xlu0 %v3298_v0  ;;  %v4092_v3 = vpop.f32.mrf.mxu0 }
0x1123   : > { %v3300_v15 = vpop.xlane.xlu0 %3299 }
0x1124   : > { %v3301_v20 = vmul.f32 0.03125, %v3300_v15 }
0x1126   : > { %v3302_v21 = vsub.f32 %v3295_v18, %v3301_v20 }
0x1128   : > { %v3303_v7 = vmul.f32 %v3302_v21, %v3302_v21 }
0x112a   : > { %v3304_v22 = vsel %vm1417_vm1, %v3303_v7, 0.0 }
0x112b   : > { %3305 = vadd.xlane.f32.xlu0 %v3304_v22 }
0x11b4   : > { %v3306_v23 = vpop.xlane.xlu0 %3305 }
0x11b5   : > { %v3307_v24 = vmul.f32 0.03125, %v3306_v23 }
0x11b7   : > { %v3308_v25 = vadd.f32 1e-05, %v3307_v24 }
0x11b9   : > { %4469 = vrsqrt.f32 %v3308_v25 }
0x11c6   : > { %v4470_v26 = vpop.eup %4469 }
0x11c7   : > { %v3310_v28 = vmul.f32 %v4470_v26, %v3302_v21 }
0x11c9   : > { %v3317_v31 = vmul.f32 %v3824_v27, %v3310_v28 }
0x11cb   : > { %v3324_v32 = vadd.f32 %v3825_v30, %v3317_v31 }
0x11cd   : > { %3325 = vst.msk [vmem:[%s1375_s6] sm:$0xff] %vm1417_vm1, %v3324_v32 }
0x11ce   : > { %5060 = shalt.err (!%p5057_p13)
}
0x11cf   : > { %s5061_s18 = scalar_lea.hbm %s3338_s22, 128  ;;  %s5065_s4 = scalar_lea.hbm %s6159_s3, 256 }
0x11d0   : > { %p5062_p6 = scmp.ne.s32.totalorder %s3338_s22, %s5061_s18  ;;  %p5066_p3 = scmp.lt.s32.totalorder %s3338_s22, %s6159_s3 }
0x11d1   : > { %p5067_p8 = scmp.lt.s32.totalorder %s5065_s4, %s5061_s18 }
0x11d2   : > { %p5063_p1 = pnand %p5062_p6, %p6160_p2 }
0x11d3   : > { %p5068_p11 = por %p5067_p8, %p5066_p3 }
0x11d4   : > { %p5064_p4 = pneg %p5063_p1 }
0x11d6   : > { %p5069_p12 = pnand %p5068_p11, %p5064_p4 }
0x11d8   : > { %5072 = shalt.err (!%p5069_p12)
}
0x11d9   : > { %4177 = dma.vmem_to_hbm [thread:$0]  (%p6160_p2), %s3341_s5, 128, %s3338_s22, %s3327_s15  }
0x11da PF: > { %s3352_s13 = sand.u32 1, %s5147_s7   ;;  %p6161_p5 = scmp.ne.s32.totalorder %s6121_s1, 0 }
0x11db   : > { %p6162_p10 = scmp.ge.s32.totalorder %s5159_s11, 2  ;;  %s3353_s26 = scalar_lea.sflag [#allocation7], %s3352_s13 }
0x11dd   : > { %p4248_p7 = pnand %p6162_p10, %p6161_p5 }
0x11df   : > { %p4249_p0 = pneg %p4248_p7 }
0x11e1   : > { %5142 = dma.done.wait (%p4249_p0), %s3353_s26, 128  }
0x11e2   : > { %5144 = vsyncadd (%p4249_p0), %s3353_s26, 4294967168  ;;  %p93_p9 = scmp.ge.s32.totalorder %s5590_s27, 4   ;;  %s6163_s7 = smov %s5151_s0 }
0x11e3   : > { %s6164_s0 = smov %s5155_s10  ;;  %s6165_s10 = smov %s5601_s8 }
0x11e4   : > { %s6166_s11 = smov %s5590_s27  ;;  %95 = sbr.rel (!%p93_p9) target bundleno = 84 (0x54), region = 332 }
0x11e9   :  { %3358 = vsyncpa [#allocation6], 1 }
0x11ea   :  { %3360 = vsyncpa [#allocation6 + $0x1], 1 }
0x11eb   :  { %3361 = vsyncpa [#allocation9], 1 }
0x11ec   :  { %3363 = vsyncpa [#allocation9 + $0x1], 1 }
0x11ed   :  { %3364 = vsyncpa [#allocation12], 1 }
0x11ee   :  { %3365 = vsyncpa [#allocation15], 1 }
0x11ef   :  { %3366 = vsyncpa [#allocation18], 1 }
0x11f0   :  { %3367 = vsyncpa [#allocation21], 1 }
0x11f1   :  { %3368 = vsyncpa [#allocation24], 1 }
0x11f2   :  { %3369 = vsyncpa [#allocation27], 1 }
0x11f3   :  { %3370 = vsyncpa [#allocation30], 1 }
0x11f4   :  { %3371 = vsyncpa [#allocation33], 1 }
0x11f5   :  { %3372 = vsyncpa [#allocation36], 1 }
0x11f6   :  { %3373 = vsyncpa [#allocation39], 1 }
0x11f7   :  { %3374 = vsyncpa [#allocation7], 1 }
0x11f8   :  { %3376 = vsyncpa [#allocation7 + $0x1], 1 }

</bundles_post_ra>
